<compile_context>
chip_gen: v6e
topology: v6e:2x2x1
jax: 0.10.0
libtpu: 0.0.40
codegen_flags: <defaults>
</compile_context>

<pallas_src>
import jax
import jax.numpy as jnp
from jax import lax
from jax.experimental import pallas as pl
from jax.experimental.pallas import tpu as pltpu

# ---- small config consistent with the module structure ----
NOISE_DIM = 16
NUM_CATEGORIES = 4
CONT_DIM = 5
IMG_CHANNELS = 3
IMG_SIZE = 16              # scaled down from 256; the 4 strided convs take 16 -> 1
IMG_FEATURE_DIM = 512
NUM_POINTS = 128           # scaled down from 26404
POINT_CLOUD_DIM = NUM_POINTS * 3
BATCH = 2
BN_EPS = 1e-5

Z_DIM = NOISE_DIM + NUM_CATEGORIES + CONT_DIM      # 25
Z_PAD = 128                                        # K of fc_noise_cat_cont, padded once
K1 = 16 * IMG_CHANNELS                             # 48 = 4*4*3
K1_PAD = 128                                       # K of conv1, padded once

_COMPILER_PARAMS = pltpu.CompilerParams(vmem_limit_bytes=32 * 1024 * 1024)


# ---------------------------------------------------------------------------
# shared epilogue: training-mode BatchNorm (biased var, eps=1e-5) + ReLU
# over the rows of a (M, C) activation (M == N*H*W for the conv layers).
# ---------------------------------------------------------------------------
def _bn_relu(x, gamma, beta):
    mean = jnp.mean(x, axis=0, keepdims=True)
    var = jnp.mean(jnp.square(x - mean), axis=0, keepdims=True)
    return jnp.maximum((x - mean) * lax.rsqrt(var + BN_EPS) * gamma + beta, 0.0)


# ---------------------------------------------------------------------------
# Kernel 1/2: one im2col conv layer:  epilogue(patches @ w + bias)
#   p_ref packs [bias] (ReLU-only) or [bias; gamma; beta] (BN+ReLU) as rows.
# ---------------------------------------------------------------------------
def _make_conv_kernel(use_bn):
    def kernel(x_ref, w_ref, p_ref, o_ref):
        acc = jnp.dot(x_ref[...], w_ref[...], preferred_element_type=jnp.float32)
        acc = acc + p_ref[0:1, :]
        if use_bn:
            acc = _bn_relu(acc, p_ref[1:2, :], p_ref[2:3, :])
        else:
            acc = jnp.maximum(acc, 0.0)
        o_ref[...] = acc.astype(o_ref.dtype)
    return kernel


def conv_block(patches, w, p, *, use_bn):
    """Grid-free single-shot call: whole operands resident in VMEM, bf16 out."""
    m, n = patches.shape[0], w.shape[1]
    return pl.pallas_call(
        _make_conv_kernel(use_bn),
        out_shape=jax.ShapeDtypeStruct((m, n), jnp.bfloat16),
        compiler_params=_COMPILER_PARAMS,
    )(patches, w, p)


# ---------------------------------------------------------------------------
# Kernel 3: fused tail
#   conv3(+bias+BN+ReLU) -> conv4(+bias+BN+ReLU) -> fc_img(+ReLU)
#   fc_noise_cat_cont, fc_combined — one launch, activations stay in registers.
# ---------------------------------------------------------------------------
def _tail_kernel(x3_ref, z_ref, w3_ref, p3_ref, w4_ref, p4_ref,
                 wnc_ref, bnc_ref, wimg_ref, bimg_ref,
                 wtop_ref, wbot_ref, bcomb_ref, o_ref):
    f32 = jnp.float32

    # conv3 + bias + BN + ReLU :  (B*4, 2048) @ (2048, 256)
    c3 = jnp.dot(x3_ref[...], w3_ref[...], preferred_element_type=f32) + p3_ref[0:1, :]
    c3 = _bn_relu(c3, p3_ref[1:2, :], p3_ref[2:3, :])                  # (B*4, 256) f32

    # conv4 + bias + BN + ReLU.
    # k=4, s=2, p=1 on the 2x2 conv3 map gives a 1x1 output where only the 4
    # central taps (kh,kw) in {1,2}^2 touch real data (the rest hit padding):
    #   out[n] = sum_{ih,iw in {0,1}} c3[n, ih, iw, :] @ W4[kh=ih+1, kw=iw+1]
    # w4_ref stacks exactly those 4 (256, 512) tap blocks, (ih, iw)-major.
    b = c3.shape[0] // 4
    acc4 = None
    for j in range(4):                                                 # j = ih*2 + iw
        rows = jnp.concatenate(
            [c3[n * 4 + j:n * 4 + j + 1, :] for n in range(b)], axis=0)   # (B, 256)
        part = jnp.dot(rows.astype(jnp.bfloat16),
                       w4_ref[j * 256:(j + 1) * 256, :],
                       preferred_element_type=f32)
        acc4 = part if acc4 is None else acc4 + part
    c4 = _bn_relu(acc4 + p4_ref[0:1, :], p4_ref[1:2, :], p4_ref[2:3, :])   # (B, 512) f32

    # fc_img + ReLU (Flatten of (B, 512, 1, 1) is just (B, 512))
    img_feat = jnp.maximum(
        jnp.dot(c4.astype(jnp.bfloat16), wimg_ref[...], preferred_element_type=f32)
        + bimg_ref[...], 0.0)

    # fc_noise_cat_cont
    t_noise = jnp.dot(z_ref[...], wnc_ref[...], preferred_element_type=f32) + bnc_ref[...]

    # fc_combined(concat(img_feat, t_noise)) == img_feat @ W_top + t_noise @ W_bot
    o_ref[...] = (
        jnp.dot(img_feat.astype(jnp.bfloat16), wtop_ref[...], preferred_element_type=f32)
        + jnp.dot(t_noise.astype(jnp.bfloat16), wbot_ref[...], preferred_element_type=f32)
        + bcomb_ref[...])


def fused_tail(x3_patches, z_padded, p):
    b = z_padded.shape[0]
    return pl.pallas_call(
        _tail_kernel,
        out_shape=jax.ShapeDtypeStruct((b, POINT_CLOUD_DIM), jnp.float32),
        compiler_params=_COMPILER_PARAMS,
    )(x3_patches, z_padded,
      p["conv3_w"], p["conv3_p"], p["conv4_w_c"], p["conv4_p"],
      p["fc_nc_w"], p["fc_nc_b"], p["fc_img_w"], p["fc_img_b"],
      p["fc_comb_w_top"], p["fc_comb_w_bot"], p["fc_comb_b"])


# ---------------------------------------------------------------------------
# im2col glue (XLA) for Conv2d(kernel=4, stride=2, padding=1), NHWC input.
# Feature order of the columns is taps-major (kh, kw, c_in), matching the
# (kh*kw*c_in, c_out) weight layout (torch weight -> permute(2,3,1,0).reshape).
# ---------------------------------------------------------------------------
def im2col(x, kh=4, kw=4, stride=2, pad=1):
    n, h, w, c = x.shape
    xp = jnp.pad(x, ((0, 0), (pad, pad), (pad, pad), (0, 0)))
    ho = (h + 2 * pad - kh) // stride + 1
    wo = (w + 2 * pad - kw) // stride + 1
    cols = [xp[:, i:i + stride * ho:stride, j:j + stride * wo:stride, :]
            for i in range(kh) for j in range(kw)]
    patches = jnp.concatenate(cols, axis=-1)          # (N, Ho, Wo, KH*KW*C)
    return patches.reshape(n * ho * wo, kh * kw * c), (n, ho, wo)


# ---------------------------------------------------------------------------
# Deterministic synthetic parameters, pre-padded / pre-packed in final layout
# (outside the jit hot path): weights bf16 (K padded to 128 where needed),
# bias / BN params packed as f32 rows [bias] or [bias; gamma; beta].
# ---------------------------------------------------------------------------
def init_params(key):
    def wmat(k, kin, kout, kpad=None):
        w = 0.02 * jax.random.normal(k, (kin, kout), jnp.float32)
        if kpad is not None and kpad > kin:
            w = jnp.pad(w, ((0, kpad - kin), (0, 0)))
        return w.astype(jnp.bfloat16)

    def bias(k, n):
        return 0.02 * jax.random.normal(k, (1, n), jnp.float32)

    def bn_pack(b):
        n = b.shape[1]
        return jnp.concatenate(
            [b, jnp.ones((1, n), jnp.float32), jnp.zeros((1, n), jnp.float32)], axis=0)

    ks = jax.random.split(key, 14)
    p = {}
    p["fc_nc_w"] = wmat(ks[0], Z_DIM, IMG_FEATURE_DIM, Z_PAD)          # (128, 512)
    p["fc_nc_b"] = bias(ks[1], IMG_FEATURE_DIM)

    p["conv1_w"] = wmat(ks[2], K1, 64, K1_PAD)                          # (128, 64)
    p["conv1_p"] = bias(ks[3], 64)                                      # [bias]

    p["conv2_w"] = wmat(ks[4], 16 * 64, 128)                            # (1024, 128)
    p["conv2_p"] = bn_pack(bias(ks[5], 128))                            # [bias; gamma; beta]

    p["conv3_w"] = wmat(ks[6], 16 * 128, 256)                           # (2048, 256)
    p["conv3_p"] = bn_pack(bias(ks[7], 256))

    w4_full = wmat(ks[8], 16 * 256, 512)                                # (4096, 512), rows (kh, kw, cin)
    p["conv4_w_full"] = w4_full                                         # reference / general img_size
    # 4 central taps (kh, kw) in {1,2}^2 -> flat tap ids 5, 6, 9, 10, (ih, iw)-major
    p["conv4_w_c"] = jnp.concatenate(
        [w4_full[t * 256:(t + 1) * 256] for t in (5, 6, 9, 10)], axis=0)  # (1024, 512)
    p["conv4_p"] = bn_pack(bias(ks[9], 512))

    flat_dim = 512 * (IMG_SIZE // 16) * (IMG_SIZE // 16)
    p["fc_img_w"] = wmat(ks[10], flat_dim, IMG_FEATURE_DIM)             # (512, 512)
    p["fc_img_b"] = bias(ks[11], IMG_FEATURE_DIM)

    w_comb = wmat(ks[12], IMG_FEATURE_DIM * 2, POINT_CLOUD_DIM)         # (1024, 384)
    p["fc_comb_w_top"] = w_comb[:IMG_FEATURE_DIM]
    p["fc_comb_w_bot"] = w_comb[IMG_FEATURE_DIM:]
    p["fc_comb_b"] = bias(ks[13], POINT_CLOUD_DIM)
    return p


# ---------------------------------------------------------------------------
# Forward pass (mirrors the PyTorch module)
# ---------------------------------------------------------------------------
@jax.jit
def forward(params, img, noise, c_cat, c_cont):
    x = jnp.transpose(img, (0, 2, 3, 1)).astype(jnp.bfloat16)           # NCHW -> NHWC, bf16

    # conv1 + ReLU (bias/ReLU fused in the matmul epilogue)
    p1, (n, h, w) = im2col(x)                                           # (128, 48)
    p1 = jnp.pad(p1, ((0, 0), (0, K1_PAD - p1.shape[1])))               # K -> 128
    a1 = conv_block(p1, params["conv1_w"], params["conv1_p"], use_bn=False)
    a1 = a1.reshape(n, h, w, 64)

    # conv2 + BN + ReLU (all fused)
    p2, (n, h, w) = im2col(a1)                                          # (32, 1024)
    a2 = conv_block(p2, params["conv2_w"], params["conv2_p"], use_bn=True)
    a2 = a2.reshape(n, h, w, 128)

    # conv3 patches feed the fully fused tail kernel
    p3, _ = im2col(a2)                                                  # (8, 2048)

    z = jnp.concatenate([noise, c_cat, c_cont], axis=1).astype(jnp.bfloat16)
    z = jnp.pad(z, ((0, 0), (0, Z_PAD - z.shape[1])))                   # (B, 128)

    point_cloud = fused_tail(p3, z, params)                             # (B, 384) f32
    return point_cloud.reshape(-1, NUM_POINTS, 3)


# ---------------------------------------------------------------------------
# Pure-XLA reference with the same bf16 operand quantization (correctness check)
# ---------------------------------------------------------------------------
def reference_forward(params, img, noise, c_cat, c_cont):
    f32 = jnp.float32
    dn = ("NHWC", "HWIO", "NHWC")

    def conv(x, w_mat, cin, cout):
        w = w_mat.reshape(4, 4, cin, cout)
        return lax.conv_general_dilated(x, w, (2, 2), ((1, 1), (1, 1)),
                                        dimension_numbers=dn,
                                        preferred_element_type=f32)

    def bn_relu(x, g, bta):
        m = jnp.mean(x, axis=(0, 1, 2), keepdims=True)
        v = jnp.mean(jnp.square(x - m), axis=(0, 1, 2), keepdims=True)
        return jnp.maximum((x - m) * lax.rsqrt(v + BN_EPS) * g + bta, 0.0)

    x = jnp.transpose(img, (0, 2, 3, 1)).astype(jnp.bfloat16)
    h = jnp.maximum(conv(x, params["conv1_w"][:K1], IMG_CHANNELS, 64)
                    + params["conv1_p"][0], 0.0).astype(jnp.bfloat16)
    h = conv(h, params["conv2_w"], 64, 128) + params["conv2_p"][0]
    h = bn_relu(h, params["conv2_p"][1], params["conv2_p"][2]).astype(jnp.bfloat16)
    h = conv(h, params["conv3_w"], 128, 256) + params["conv3_p"][0]
    h = bn_relu(h, params["conv3_p"][1], params["conv3_p"][2]).astype(jnp.bfloat16)
    h = conv(h, params["conv4_w_full"], 256, 512) + params["conv4_p"][0]
    h = bn_relu(h, params["conv4_p"][1], params["conv4_p"][2])
    flat = jnp.transpose(h, (0, 3, 1, 2)).reshape(img.shape[0], -1).astype(jnp.bfloat16)
    img_feat = jnp.maximum(
        jnp.dot(flat, params["fc_img_w"], preferred_element_type=f32)
        + params["fc_img_b"], 0.0).astype(jnp.bfloat16)
    z = jnp.concatenate([noise, c_cat, c_cont], axis=1).astype(jnp.bfloat16)
    z = jnp.pad(z, ((0, 0), (0, Z_PAD - z.shape[1])))
    t_noise = (jnp.dot(z, params["fc_nc_w"], preferred_element_type=f32)
               + params["fc_nc_b"]).astype(jnp.bfloat16)
    out = (jnp.dot(img_feat, params["fc_comb_w_top"], preferred_element_type=f32)
           + jnp.dot(t_noise, params["fc_comb_w_bot"], preferred_element_type=f32)
           + params["fc_comb_b"])
    return out.reshape(-1, NUM_POINTS, 3)


if __name__ == "__main__":
    key = jax.random.PRNGKey(0)
    k_img, k_noise, k_cat, k_cont, k_params = jax.random.split(key, 5)

    img = jax.random.normal(k_img, (BATCH, IMG_CHANNELS, IMG_SIZE, IMG_SIZE), jnp.float32)
    noise = jax.random.normal(k_noise, (BATCH, NOISE_DIM), jnp.float32)
    cat_idx = jax.random.randint(k_cat, (BATCH,), 0, NUM_CATEGORIES)
    c_cat = jax.nn.one_hot(cat_idx, NUM_CATEGORIES, dtype=jnp.float32)
    c_cont = jax.random.uniform(k_cont, (BATCH, CONT_DIM), jnp.float32, -1.0, 1.0)

    params = init_params(k_params)

    out = jax.block_until_ready(forward(params, img, noise, c_cat, c_cont))
    assert out.shape == (BATCH, NUM_POINTS, 3), out.shape
    assert bool(jnp.all(jnp.isfinite(out)))

    ref = jax.block_until_ready(jax.jit(reference_forward)(params, img, noise, c_cat, c_cont))
    assert jnp.allclose(out, ref, rtol=2e-2, atol=2e-2), float(jnp.max(jnp.abs(out - ref)))

    print("KERNEL_OK")
</pallas_src>

<mosaic_0001>
module attributes {stable_mosaic.version = 11 : i64} {
  func.func @kernel(%arg0: memref<128x128xbf16, #tpu.memory_space<vmem>>, %arg1: memref<128x64xbf16, #tpu.memory_space<vmem>>, %arg2: memref<1x64xf32, #tpu.memory_space<vmem>>, %arg3: memref<128x64xbf16, #tpu.memory_space<vmem>>) attributes {dimension_semantics = [], scalar_prefetch = 0 : i64, scratch_operands = 0 : i64, tpu.core_type = #tpu.core_type<tc>} {
    %c0 = arith.constant 0 : index
    %c0_0 = arith.constant 0 : index
    %0 = vector.load %arg0[%c0, %c0_0] : memref<128x128xbf16, #tpu.memory_space<vmem>>, vector<128x128xbf16>
    %c0_1 = arith.constant 0 : index
    %c0_2 = arith.constant 0 : index
    %1 = vector.load %arg1[%c0_1, %c0_2] : memref<128x64xbf16, #tpu.memory_space<vmem>>, vector<128x64xbf16>
    %cst = arith.constant dense<0.000000e+00> : vector<128x64xf32>
    %2 = tpu.matmul %0, %1, %cst {dimension_numbers = #tpu.dot_dimension_numbers<[1], [0], [0], [1], [0, 0, 1, 1], [], []>} : vector<128x128xbf16>, vector<128x64xbf16>, vector<128x64xf32> -> vector<128x64xf32>
    %c0_3 = arith.constant 0 : index
    %c0_4 = arith.constant 0 : index
    %3 = vector.load %arg2[%c0_3, %c0_4] : memref<1x64xf32, #tpu.memory_space<vmem>>, vector<1x64xf32>
    %4 = vector.broadcast %3 : vector<1x64xf32> to vector<128x64xf32>
    %5 = arith.addf %2, %4 : vector<128x64xf32>
    %cst_5 = arith.constant 0.000000e+00 : f32
    %6 = vector.broadcast %cst_5 : f32 to vector<128x64xf32>
    %7 = arith.maximumf %5, %6 : vector<128x64xf32>
    %8 = arith.truncf %7 : vector<128x64xf32> to vector<128x64xbf16>
    %c0_6 = arith.constant 0 : index
    %c0_7 = arith.constant 0 : index
    %9 = vector.load %arg3[%c0_6, %c0_7] : memref<128x64xbf16, #tpu.memory_space<vmem>>, vector<128x64xbf16>
    tpu.vector_store %arg3[%c0_6, %c0_7], %8 {strides = array<i32>} : memref<128x64xbf16, #tpu.memory_space<vmem>>, vector<128x64xbf16>,
    return
  }
}

module attributes {stable_mosaic.version = 11 : i64} {
  func.func @kernel(%arg0: memref<32x1024xbf16, #tpu.memory_space<vmem>>, %arg1: memref<1024x128xbf16, #tpu.memory_space<vmem>>, %arg2: memref<3x128xf32, #tpu.memory_space<vmem>>, %arg3: memref<32x128xbf16, #tpu.memory_space<vmem>>) attributes {dimension_semantics = [], scalar_prefetch = 0 : i64, scratch_operands = 0 : i64, tpu.core_type = #tpu.core_type<tc>} {
    %c0 = arith.constant 0 : index
    %c0_0 = arith.constant 0 : index
    %0 = vector.load %arg0[%c0, %c0_0] : memref<32x1024xbf16, #tpu.memory_space<vmem>>, vector<32x1024xbf16>
    %c0_1 = arith.constant 0 : index
    %c0_2 = arith.constant 0 : index
    %1 = vector.load %arg1[%c0_1, %c0_2] : memref<1024x128xbf16, #tpu.memory_space<vmem>>, vector<1024x128xbf16>
    %cst = arith.constant dense<0.000000e+00> : vector<32x128xf32>
    %2 = tpu.matmul %0, %1, %cst {dimension_numbers = #tpu.dot_dimension_numbers<[1], [0], [0], [1], [0, 0, 1, 1], [], []>} : vector<32x1024xbf16>, vector<1024x128xbf16>, vector<32x128xf32> -> vector<32x128xf32>
    %c0_3 = arith.constant 0 : index
    %c0_4 = arith.constant 0 : index
    %3 = vector.load %arg2[%c0_3, %c0_4] : memref<3x128xf32, #tpu.memory_space<vmem>>, vector<1x128xf32>
    %4 = vector.broadcast %3 : vector<1x128xf32> to vector<32x128xf32>
    %5 = arith.addf %2, %4 : vector<32x128xf32>
    %c1 = arith.constant 1 : index
    %c0_5 = arith.constant 0 : index
    %6 = vector.load %arg2[%c1, %c0_5] : memref<3x128xf32, #tpu.memory_space<vmem>>, vector<1x128xf32>
    %c2 = arith.constant 2 : index
    %c0_6 = arith.constant 0 : index
    %7 = vector.load %arg2[%c2, %c0_6] : memref<3x128xf32, #tpu.memory_space<vmem>>, vector<1x128xf32>
    %cst_7 = arith.constant dense<0.000000e+00> : vector<128xf32>
    %8 = vector.multi_reduction <add>, %5, %cst_7 [0] : vector<32x128xf32> to vector<128xf32>
    %9 = vector.shape_cast %8 : vector<128xf32> to vector<1x128xf32>
    %cst_8 = arith.constant 3.200000e+01 : f32
    %10 = vector.broadcast %cst_8 : f32 to vector<1x128xf32>
    %11 = arith.divf %9, %10 : vector<1x128xf32>
    %12 = vector.broadcast %11 : vector<1x128xf32> to vector<32x128xf32>
    %13 = arith.subf %5, %12 : vector<32x128xf32>
    %14 = arith.mulf %13, %13 : vector<32x128xf32>
    %cst_9 = arith.constant dense<0.000000e+00> : vector<128xf32>
    %15 = vector.multi_reduction <add>, %14, %cst_9 [0] : vector<32x128xf32> to vector<128xf32>
    %16 = vector.shape_cast %15 : vector<128xf32> to vector<1x128xf32>
    %cst_10 = arith.constant 3.200000e+01 : f32
    %17 = vector.broadcast %cst_10 : f32 to vector<1x128xf32>
    %18 = arith.divf %16, %17 : vector<1x128xf32>
    %19 = vector.broadcast %11 : vector<1x128xf32> to vector<32x128xf32>
    %20 = arith.subf %5, %19 : vector<32x128xf32>
    %cst_11 = arith.constant 9.99999974E-6 : f32
    %21 = vector.broadcast %cst_11 : f32 to vector<1x128xf32>
    %22 = arith.addf %18, %21 : vector<1x128xf32>
    %23 = math.rsqrt %22 : vector<1x128xf32>
    %24 = vector.broadcast %23 : vector<1x128xf32> to vector<32x128xf32>
    %25 = arith.mulf %20, %24 : vector<32x128xf32>
    %26 = vector.broadcast %6 : vector<1x128xf32> to vector<32x128xf32>
    %27 = arith.mulf %25, %26 : vector<32x128xf32>
    %28 = vector.broadcast %7 : vector<1x128xf32> to vector<32x128xf32>
    %29 = arith.addf %27, %28 : vector<32x128xf32>
    %cst_12 = arith.constant 0.000000e+00 : f32
    %30 = vector.broadcast %cst_12 : f32 to vector<32x128xf32>
    %31 = arith.maximumf %29, %30 : vector<32x128xf32>
    %32 = arith.truncf %31 : vector<32x128xf32> to vector<32x128xbf16>
    %c0_13 = arith.constant 0 : index
    %c0_14 = arith.constant 0 : index
    %33 = vector.load %arg3[%c0_13, %c0_14] : memref<32x128xbf16, #tpu.memory_space<vmem>>, vector<32x128xbf16>
    tpu.vector_store %arg3[%c0_13, %c0_14], %32 {strides = array<i32>} : memref<32x128xbf16, #tpu.memory_space<vmem>>, vector<32x128xbf16>,
    return
  }
}

module attributes {stable_mosaic.version = 11 : i64} {
  func.func @_tail_kernel(%arg0: memref<8x2048xbf16, #tpu.memory_space<vmem>>, %arg1: memref<2x128xbf16, #tpu.memory_space<vmem>>, %arg2: memref<2048x256xbf16, #tpu.memory_space<vmem>>, %arg3: memref<3x256xf32, #tpu.memory_space<vmem>>, %arg4: memref<1024x512xbf16, #tpu.memory_space<vmem>>, %arg5: memref<3x512xf32, #tpu.memory_space<vmem>>, %arg6: memref<128x512xbf16, #tpu.memory_space<vmem>>, %arg7: memref<1x512xf32, #tpu.memory_space<vmem>>, %arg8: memref<512x512xbf16, #tpu.memory_space<vmem>>, %arg9: memref<1x512xf32, #tpu.memory_space<vmem>>, %arg10: memref<512x384xbf16, #tpu.memory_space<vmem>>, %arg11: memref<512x384xbf16, #tpu.memory_space<vmem>>, %arg12: memref<1x384xf32, #tpu.memory_space<vmem>>, %arg13: memref<2x384xf32, #tpu.memory_space<vmem>>) attributes {dimension_semantics = [], scalar_prefetch = 0 : i64, scratch_operands = 0 : i64, tpu.core_type = #tpu.core_type<tc>} {
    %c0 = arith.constant 0 : index
    %c0_0 = arith.constant 0 : index
    %0 = vector.load %arg0[%c0, %c0_0] : memref<8x2048xbf16, #tpu.memory_space<vmem>>, vector<8x2048xbf16>
    %c0_1 = arith.constant 0 : index
    %c0_2 = arith.constant 0 : index
    %1 = vector.load %arg2[%c0_1, %c0_2] : memref<2048x256xbf16, #tpu.memory_space<vmem>>, vector<2048x256xbf16>
    %cst = arith.constant dense<0.000000e+00> : vector<8x256xf32>
    %2 = tpu.matmul %0, %1, %cst {dimension_numbers = #tpu.dot_dimension_numbers<[1], [0], [0], [1], [0, 0, 1, 1], [], []>} : vector<8x2048xbf16>, vector<2048x256xbf16>, vector<8x256xf32> -> vector<8x256xf32>
    %c0_3 = arith.constant 0 : index
    %c0_4 = arith.constant 0 : index
    %3 = vector.load %arg3[%c0_3, %c0_4] : memref<3x256xf32, #tpu.memory_space<vmem>>, vector<1x256xf32>
    %4 = vector.broadcast %3 : vector<1x256xf32> to vector<8x256xf32>
    %5 = arith.addf %2, %4 : vector<8x256xf32>
    %c1 = arith.constant 1 : index
    %c0_5 = arith.constant 0 : index
    %6 = vector.load %arg3[%c1, %c0_5] : memref<3x256xf32, #tpu.memory_space<vmem>>, vector<1x256xf32>
    %c2 = arith.constant 2 : index
    %c0_6 = arith.constant 0 : index
    %7 = vector.load %arg3[%c2, %c0_6] : memref<3x256xf32, #tpu.memory_space<vmem>>, vector<1x256xf32>
    %cst_7 = arith.constant dense<0.000000e+00> : vector<256xf32>
    %8 = vector.multi_reduction <add>, %5, %cst_7 [0] : vector<8x256xf32> to vector<256xf32>
    %9 = vector.shape_cast %8 : vector<256xf32> to vector<1x256xf32>
    %cst_8 = arith.constant 8.000000e+00 : f32
    %10 = vector.broadcast %cst_8 : f32 to vector<1x256xf32>
    %11 = arith.divf %9, %10 : vector<1x256xf32>
    %12 = vector.broadcast %11 : vector<1x256xf32> to vector<8x256xf32>
    %13 = arith.subf %5, %12 : vector<8x256xf32>
    %14 = arith.mulf %13, %13 : vector<8x256xf32>
    %cst_9 = arith.constant dense<0.000000e+00> : vector<256xf32>
    %15 = vector.multi_reduction <add>, %14, %cst_9 [0] : vector<8x256xf32> to vector<256xf32>
    %16 = vector.shape_cast %15 : vector<256xf32> to vector<1x256xf32>
    %cst_10 = arith.constant 8.000000e+00 : f32
    %17 = vector.broadcast %cst_10 : f32 to vector<1x256xf32>
    %18 = arith.divf %16, %17 : vector<1x256xf32>
    %19 = vector.broadcast %11 : vector<1x256xf32> to vector<8x256xf32>
    %20 = arith.subf %5, %19 : vector<8x256xf32>
    %cst_11 = arith.constant 9.99999974E-6 : f32
    %21 = vector.broadcast %cst_11 : f32 to vector<1x256xf32>
    %22 = arith.addf %18, %21 : vector<1x256xf32>
    %23 = math.rsqrt %22 : vector<1x256xf32>
    %24 = vector.broadcast %23 : vector<1x256xf32> to vector<8x256xf32>
    %25 = arith.mulf %20, %24 : vector<8x256xf32>
    %26 = vector.broadcast %6 : vector<1x256xf32> to vector<8x256xf32>
    %27 = arith.mulf %25, %26 : vector<8x256xf32>
    %28 = vector.broadcast %7 : vector<1x256xf32> to vector<8x256xf32>
    %29 = arith.addf %27, %28 : vector<8x256xf32>
    %cst_12 = arith.constant 0.000000e+00 : f32
    %30 = vector.broadcast %cst_12 : f32 to vector<8x256xf32>
    %31 = arith.maximumf %29, %30 : vector<8x256xf32>
    %32 = vector.extract_strided_slice %31 {offsets = [0, 0], sizes = [1, 256], strides = [1, 1]} : vector<8x256xf32> to vector<1x256xf32>
    %33 = vector.extract_strided_slice %31 {offsets = [4, 0], sizes = [1, 256], strides = [1, 1]} : vector<8x256xf32> to vector<1x256xf32>
    %34 = tpu.concatenate %32, %33 in 0 : vector<1x256xf32>, vector<1x256xf32> -> vector<2x256xf32>
    %35 = arith.truncf %34 : vector<2x256xf32> to vector<2x256xbf16>
    %c0_13 = arith.constant 0 : index
    %c0_14 = arith.constant 0 : index
    %36 = vector.load %arg4[%c0_13, %c0_14] : memref<1024x512xbf16, #tpu.memory_space<vmem>>, vector<256x512xbf16>
    %cst_15 = arith.constant dense<0.000000e+00> : vector<2x512xf32>
    %37 = tpu.matmul %35, %36, %cst_15 {dimension_numbers = #tpu.dot_dimension_numbers<[1], [0], [0], [1], [0, 0, 1, 1], [], []>} : vector<2x256xbf16>, vector<256x512xbf16>, vector<2x512xf32> -> vector<2x512xf32>
    %38 = vector.extract_strided_slice %31 {offsets = [1, 0], sizes = [1, 256], strides = [1, 1]} : vector<8x256xf32> to vector<1x256xf32>
    %39 = vector.extract_strided_slice %31 {offsets = [5, 0], sizes = [1, 256], strides = [1, 1]} : vector<8x256xf32> to vector<1x256xf32>
    %40 = tpu.concatenate %38, %39 in 0 : vector<1x256xf32>, vector<1x256xf32> -> vector<2x256xf32>
    %41 = arith.truncf %40 : vector<2x256xf32> to vector<2x256xbf16>
    %c256 = arith.constant 256 : index
    %c0_16 = arith.constant 0 : index
    %42 = vector.load %arg4[%c256, %c0_16] : memref<1024x512xbf16, #tpu.memory_space<vmem>>, vector<256x512xbf16>
    %cst_17 = arith.constant dense<0.000000e+00> : vector<2x512xf32>
    %43 = tpu.matmul %41, %42, %cst_17 {dimension_numbers = #tpu.dot_dimension_numbers<[1], [0], [0], [1], [0, 0, 1, 1], [], []>} : vector<2x256xbf16>, vector<256x512xbf16>, vector<2x512xf32> -> vector<2x512xf32>
    %44 = arith.addf %37, %43 : vector<2x512xf32>
    %45 = vector.extract_strided_slice %31 {offsets = [2, 0], sizes = [1, 256], strides = [1, 1]} : vector<8x256xf32> to vector<1x256xf32>
    %46 = vector.extract_strided_slice %31 {offsets = [6, 0], sizes = [1, 256], strides = [1, 1]} : vector<8x256xf32> to vector<1x256xf32>
    %47 = tpu.concatenate %45, %46 in 0 : vector<1x256xf32>, vector<1x256xf32> -> vector<2x256xf32>
    %48 = arith.truncf %47 : vector<2x256xf32> to vector<2x256xbf16>
    %c512 = arith.constant 512 : index
    %c0_18 = arith.constant 0 : index
    %49 = vector.load %arg4[%c512, %c0_18] : memref<1024x512xbf16, #tpu.memory_space<vmem>>, vector<256x512xbf16>
    %cst_19 = arith.constant dense<0.000000e+00> : vector<2x512xf32>
    %50 = tpu.matmul %48, %49, %cst_19 {dimension_numbers = #tpu.dot_dimension_numbers<[1], [0], [0], [1], [0, 0, 1, 1], [], []>} : vector<2x256xbf16>, vector<256x512xbf16>, vector<2x512xf32> -> vector<2x512xf32>
    %51 = arith.addf %44, %50 : vector<2x512xf32>
    %52 = vector.extract_strided_slice %31 {offsets = [3, 0], sizes = [1, 256], strides = [1, 1]} : vector<8x256xf32> to vector<1x256xf32>
    %53 = vector.extract_strided_slice %31 {offsets = [7, 0], sizes = [1, 256], strides = [1, 1]} : vector<8x256xf32> to vector<1x256xf32>
    %54 = tpu.concatenate %52, %53 in 0 : vector<1x256xf32>, vector<1x256xf32> -> vector<2x256xf32>
    %55 = arith.truncf %54 : vector<2x256xf32> to vector<2x256xbf16>
    %c768 = arith.constant 768 : index
    %c0_20 = arith.constant 0 : index
    %56 = vector.load %arg4[%c768, %c0_20] : memref<1024x512xbf16, #tpu.memory_space<vmem>>, vector<256x512xbf16>
    %cst_21 = arith.constant dense<0.000000e+00> : vector<2x512xf32>
    %57 = tpu.matmul %55, %56, %cst_21 {dimension_numbers = #tpu.dot_dimension_numbers<[1], [0], [0], [1], [0, 0, 1, 1], [], []>} : vector<2x256xbf16>, vector<256x512xbf16>, vector<2x512xf32> -> vector<2x512xf32>
    %58 = arith.addf %51, %57 : vector<2x512xf32>
    %c0_22 = arith.constant 0 : index
    %c0_23 = arith.constant 0 : index
    %59 = vector.load %arg5[%c0_22, %c0_23] : memref<3x512xf32, #tpu.memory_space<vmem>>, vector<1x512xf32>
    %60 = vector.broadcast %59 : vector<1x512xf32> to vector<2x512xf32>
    %61 = arith.addf %58, %60 : vector<2x512xf32>
    %c1_24 = arith.constant 1 : index
    %c0_25 = arith.constant 0 : index
    %62 = vector.load %arg5[%c1_24, %c0_25] : memref<3x512xf32, #tpu.memory_space<vmem>>, vector<1x512xf32>
    %c2_26 = arith.constant 2 : index
    %c0_27 = arith.constant 0 : index
    %63 = vector.load %arg5[%c2_26, %c0_27] : memref<3x512xf32, #tpu.memory_space<vmem>>, vector<1x512xf32>
    %cst_28 = arith.constant dense<0.000000e+00> : vector<512xf32>
    %64 = vector.multi_reduction <add>, %61, %cst_28 [0] : vector<2x512xf32> to vector<512xf32>
    %65 = vector.shape_cast %64 : vector<512xf32> to vector<1x512xf32>
    %cst_29 = arith.constant 2.000000e+00 : f32
    %66 = vector.broadcast %cst_29 : f32 to vector<1x512xf32>
    %67 = arith.divf %65, %66 : vector<1x512xf32>
    %68 = vector.broadcast %67 : vector<1x512xf32> to vector<2x512xf32>
    %69 = arith.subf %61, %68 : vector<2x512xf32>
    %70 = arith.mulf %69, %69 : vector<2x512xf32>
    %cst_30 = arith.constant dense<0.000000e+00> : vector<512xf32>
    %71 = vector.multi_reduction <add>, %70, %cst_30 [0] : vector<2x512xf32> to vector<512xf32>
    %72 = vector.shape_cast %71 : vector<512xf32> to vector<1x512xf32>
    %cst_31 = arith.constant 2.000000e+00 : f32
    %73 = vector.broadcast %cst_31 : f32 to vector<1x512xf32>
    %74 = arith.divf %72, %73 : vector<1x512xf32>
    %75 = vector.broadcast %67 : vector<1x512xf32> to vector<2x512xf32>
    %76 = arith.subf %61, %75 : vector<2x512xf32>
    %cst_32 = arith.constant 9.99999974E-6 : f32
    %77 = vector.broadcast %cst_32 : f32 to vector<1x512xf32>
    %78 = arith.addf %74, %77 : vector<1x512xf32>
    %79 = math.rsqrt %78 : vector<1x512xf32>
    %80 = vector.broadcast %79 : vector<1x512xf32> to vector<2x512xf32>
    %81 = arith.mulf %76, %80 : vector<2x512xf32>
    %82 = vector.broadcast %62 : vector<1x512xf32> to vector<2x512xf32>
    %83 = arith.mulf %81, %82 : vector<2x512xf32>
    %84 = vector.broadcast %63 : vector<1x512xf32> to vector<2x512xf32>
    %85 = arith.addf %83, %84 : vector<2x512xf32>
    %cst_33 = arith.constant 0.000000e+00 : f32
    %86 = vector.broadcast %cst_33 : f32 to vector<2x512xf32>
    %87 = arith.maximumf %85, %86 : vector<2x512xf32>
    %88 = arith.truncf %87 : vector<2x512xf32> to vector<2x512xbf16>
    %c0_34 = arith.constant 0 : index
    %c0_35 = arith.constant 0 : index
    %89 = vector.load %arg8[%c0_34, %c0_35] : memref<512x512xbf16, #tpu.memory_space<vmem>>, vector<512x512xbf16>
    %cst_36 = arith.constant dense<0.000000e+00> : vector<2x512xf32>
    %90 = tpu.matmul %88, %89, %cst_36 {dimension_numbers = #tpu.dot_dimension_numbers<[1], [0], [0], [1], [0, 0, 1, 1], [], []>} : vector<2x512xbf16>, vector<512x512xbf16>, vector<2x512xf32> -> vector<2x512xf32>
    %c0_37 = arith.constant 0 : index
    %c0_38 = arith.constant 0 : index
    %91 = vector.load %arg9[%c0_37, %c0_38] : memref<1x512xf32, #tpu.memory_space<vmem>>, vector<1x512xf32>
    %92 = vector.broadcast %91 : vector<1x512xf32> to vector<2x512xf32>
    %93 = arith.addf %90, %92 : vector<2x512xf32>
    %cst_39 = arith.constant 0.000000e+00 : f32
    %94 = vector.broadcast %cst_39 : f32 to vector<2x512xf32>
    %95 = arith.maximumf %93, %94 : vector<2x512xf32>
    %c0_40 = arith.constant 0 : index
    %c0_41 = arith.constant 0 : index
    %96 = vector.load %arg1[%c0_40, %c0_41] : memref<2x128xbf16, #tpu.memory_space<vmem>>, vector<2x128xbf16>
    %c0_42 = arith.constant 0 : index
    %c0_43 = arith.constant 0 : index
    %97 = vector.load %arg6[%c0_42, %c0_43] : memref<128x512xbf16, #tpu.memory_space<vmem>>, vector<128x512xbf16>
    %cst_44 = arith.constant dense<0.000000e+00> : vector<2x512xf32>
    %98 = tpu.matmul %96, %97, %cst_44 {dimension_numbers = #tpu.dot_dimension_numbers<[1], [0], [0], [1], [0, 0, 1, 1], [], []>} : vector<2x128xbf16>, vector<128x512xbf16>, vector<2x512xf32> -> vector<2x512xf32>
    %c0_45 = arith.constant 0 : index
    %c0_46 = arith.constant 0 : index
    %99 = vector.load %arg7[%c0_45, %c0_46] : memref<1x512xf32, #tpu.memory_space<vmem>>, vector<1x512xf32>
    %100 = vector.broadcast %99 : vector<1x512xf32> to vector<2x512xf32>
    %101 = arith.addf %98, %100 : vector<2x512xf32>
    %102 = arith.truncf %95 : vector<2x512xf32> to vector<2x512xbf16>
    %c0_47 = arith.constant 0 : index
    %c0_48 = arith.constant 0 : index
    %103 = vector.load %arg10[%c0_47, %c0_48] : memref<512x384xbf16, #tpu.memory_space<vmem>>, vector<512x384xbf16>
    %cst_49 = arith.constant dense<0.000000e+00> : vector<2x384xf32>
    %104 = tpu.matmul %102, %103, %cst_49 {dimension_numbers = #tpu.dot_dimension_numbers<[1], [0], [0], [1], [0, 0, 1, 1], [], []>} : vector<2x512xbf16>, vector<512x384xbf16>, vector<2x384xf32> -> vector<2x384xf32>
    %105 = arith.truncf %101 : vector<2x512xf32> to vector<2x512xbf16>
    %c0_50 = arith.constant 0 : index
    %c0_51 = arith.constant 0 : index
    %106 = vector.load %arg11[%c0_50, %c0_51] : memref<512x384xbf16, #tpu.memory_space<vmem>>, vector<512x384xbf16>
    %cst_52 = arith.constant dense<0.000000e+00> : vector<2x384xf32>
    %107 = tpu.matmul %105, %106, %cst_52 {dimension_numbers = #tpu.dot_dimension_numbers<[1], [0], [0], [1], [0, 0, 1, 1], [], []>} : vector<2x512xbf16>, vector<512x384xbf16>, vector<2x384xf32> -> vector<2x384xf32>
    %108 = arith.addf %104, %107 : vector<2x384xf32>
    %c0_53 = arith.constant 0 : index
    %c0_54 = arith.constant 0 : index
    %109 = vector.load %arg12[%c0_53, %c0_54] : memref<1x384xf32, #tpu.memory_space<vmem>>, vector<1x384xf32>
    %110 = vector.broadcast %109 : vector<1x384xf32> to vector<2x384xf32>
    %111 = arith.addf %108, %110 : vector<2x384xf32>
    %c0_55 = arith.constant 0 : index
    %c0_56 = arith.constant 0 : index
    %112 = vector.load %arg13[%c0_55, %c0_56] : memref<2x384xf32, #tpu.memory_space<vmem>>, vector<2x384xf32>
    tpu.vector_store %arg13[%c0_55, %c0_56], %111 {strides = array<i32>} : memref<2x384xf32, #tpu.memory_space<vmem>>, vector<2x384xf32>,
    return
  }
}

</mosaic_0001>

<bundles_post_ra>
// kernel: forward.3
= control target key start
LH: loop header
LB: loop body
LE: loop exit
PB: predicated region body
PF: predicated region fallthrough
CT: control target
= control target key end

     0   :  { %8 = vsyncpa [#allocation3], 0  ;;  %s513_s12 = smov [#allocation2]   ;;  %s667_s0 = inlined_call_operand.vmem [shape: bf16[128,128], index: 0, kind: input, shape index: {}]   ;;  %s668_s1 = inlined_call_operand.vmem [shape: bf16[128,64], index: 1, kind: input, shape index: {}]   ;;  %s669_s2 = inlined_call_operand.hbm [shape: f32[1,64], index: 2, kind: input, shape index: {}]   ;;  %s670_s3 = inlined_call_operand.vmem [shape: bf16[128,64], index: 3, kind: output, shape index: {}]  }
   0x1   :  { %s19_s13 = sshll.u32 %s513_s12, 4  ;;  %s20_s13 = int_to_ptr.vmem [resolvable:$true] %s19_s13 }
   0x2   :  { %s499_s14 = scalar_lea.vmem %s20_s13, 16  ;;  %s503_s15 = scalar_lea.vmem %s20_s13, 32 }
   0x3   :  { %p500_p0 = scmp.ne.s32.totalorder %s20_s13, %s499_s14  ;;  %p504_p1 = scmp.lt.s32.totalorder %s20_s13, %s20_s13 }
   0x4   :  { %p505_p2 = scmp.lt.s32.totalorder %s503_s15, %s499_s14 }
   0x6   :  { %p506_p3 = por %p505_p2, %p504_p1 }
   0x8   :  { %p507_p4 = pnand %p506_p3, %p500_p0 }
   0xa   :  { %510 = shalt.err (!%p507_p4)
}
   0xb   :  { %22 = dma.hbm_to_vmem [thread:$0]  %s669_s2, 16, %s20_s13, [#allocation3]  }
   0xc   :  { %511 = dma.done.wait [#allocation3], 16  }
   0xd   :  { %512 = vsyncadd [#allocation3], 4294967280  ;;  %v475_v0 = vld [vmem:[%s668_s1 + $0x38] sm:$0xff]   ;;  %v476_v1 = vld [vmem:[%s668_s1 + $0x30] sm:$0xff]   ;;  %vm339_vm0 = vcmask 519168  }
   0xe   :  { %426 = vmatprep.subr.bf16.mxu0 %v475_v0  ;;  %458 = vmatprep.subr.bf16.mxu1 %v475_v0  ;;  %v477_v2 = vld [vmem:[%s668_s1 + $0x28] sm:$0xff]   ;;  %v478_v3 = vld [vmem:[%s668_s1 + $0x20] sm:$0xff]   ;;  %v479_v6 = vld [vmem:[%s668_s1 + $0x18] sm:$0xff]  }
   0xf   :  { %427 = vmatpush3.bf16.msra.mxu0 %v475_v0  ;;  %466 = vmatpush3.bf16.msra.mxu1 %v475_v0  ;;  %v483_v4 = vld [vmem:[%s667_s0] sm:$0xff]   ;;  %v480_v7 = vld [vmem:[%s668_s1 + $0x10] sm:$0xff]   ;;  %v481_v8 = vld [vmem:[%s668_s1 + $0x8] sm:$0xff]  }
  0x10   :  { %428 = vmatprep.subr.bf16.mxu0 %v476_v1  ;;  %459 = vmatprep.subr.bf16.mxu1 %v476_v1  ;;  %v484_v5 = vld [vmem:[%s667_s0 + $0x20] sm:$0xff]   ;;  %v485_v10 = vld [vmem:[%s667_s0 + $0x8] sm:$0xff]   ;;  %v487_v12 = vld [vmem:[%s667_s0 + $0x10] sm:$0xff]  }
  0x11   :  { %442 = vmatprep.mubr.bf16.mxu0 %v483_v4  ;;  %450 = vmatprep.mubr.bf16.mxu1 %v484_v5  ;;  %v482_v9 = vld [vmem:[%s668_s1] sm:$0xff]   ;;  %v486_v11 = vld [vmem:[%s667_s0 + $0x28] sm:$0xff]   ;;  %v488_v13 = vld [vmem:[%s667_s0 + $0x30] sm:$0xff]  }
  0x12   :  { %v489_v14 = vld [vmem:[%s667_s0 + $0x18] sm:$0xff]   ;;  %v585_v16 = vld [vmem:[#allocation2] ss:$0 sm:$0xff] }
  0x13   :  { %429 = vmatpush3.bf16.msra.mxu0 %v476_v1  ;;  %467 = vmatpush3.bf16.msra.mxu1 %v476_v1  ;;  %v490_v15 = vld [vmem:[%s667_s0 + $0x38] sm:$0xff]  }
  0x14   :  { %430 = vmatprep.subr.bf16.mxu0 %v477_v2  ;;  %460 = vmatprep.subr.bf16.mxu1 %v477_v2 }
  0x17   :  { %431 = vmatpush3.bf16.msra.mxu0 %v477_v2  ;;  %468 = vmatpush3.bf16.msra.mxu1 %v477_v2 }
  0x18   :  { %432 = vmatprep.subr.bf16.mxu0 %v478_v3  ;;  %461 = vmatprep.subr.bf16.mxu1 %v478_v3 }
  0x1b   :  { %433 = vmatpush3.bf16.msra.mxu0 %v478_v3  ;;  %469 = vmatpush3.bf16.msra.mxu1 %v478_v3 }
  0x1c   :  { %434 = vmatprep.subr.bf16.mxu0 %v479_v6  ;;  %462 = vmatprep.subr.bf16.mxu1 %v479_v6 }
  0x1f   :  { %435 = vmatpush3.bf16.msra.mxu0 %v479_v6  ;;  %470 = vmatpush3.bf16.msra.mxu1 %v479_v6 }
  0x20   :  { %436 = vmatprep.subr.bf16.mxu0 %v480_v7  ;;  %463 = vmatprep.subr.bf16.mxu1 %v480_v7 }
  0x23   :  { %437 = vmatpush3.bf16.msra.mxu0 %v480_v7  ;;  %471 = vmatpush3.bf16.msra.mxu1 %v480_v7 }
  0x24   :  { %438 = vmatprep.subr.bf16.mxu0 %v481_v8  ;;  %464 = vmatprep.subr.bf16.mxu1 %v481_v8 }
  0x27   :  { %439 = vmatpush3.bf16.msra.mxu0 %v481_v8  ;;  %472 = vmatpush3.bf16.msra.mxu1 %v481_v8 }
  0x28   :  { %440 = vmatprep.subr.bf16.mxu0 %v482_v9  ;;  %465 = vmatprep.subr.bf16.mxu1 %v482_v9 }
  0x2b   :  { %441 = vmatpush3.bf16.msra.mxu0 %v482_v9  ;;  %473 = vmatpush3.bf16.msra.mxu1 %v482_v9 }
  0x2e   :  { %443 = vmatmul.mubr.bf16.vlgmr.msra.gmra.mxu0 %v485_v10  ;;  %451 = vmatmul.mubr.bf16.vlgmr.msra.gmra.mxu1 %v486_v11 }
  0x2f   :  { %446 = vmatprep.mubr.bf16.mxu0 %v487_v12  ;;  %454 = vmatprep.mubr.bf16.mxu1 %v488_v13 }
  0x36   :  { %447 = vmatmul.mubr.bf16.gmra.mxu0 %v489_v14  ;;  %455 = vmatmul.mubr.bf16.gmra.mxu1 %v490_v15 }
  0xee   :  { %v444_v17 = vpop.f32.mrf.mxu0  ;;  %v452_v18 = vpop.f32.mrf.mxu1 }
  0xef   :  { %v205_v19 = vadd.f32 %v444_v17, %v585_v16  ;;  %v237_v20 = vadd.f32 %v452_v18, %v585_v16 }
  0xf0   :  { %v196_v21 = vpop.f32.mrf.mxu0  ;;  %v228_v22 = vpop.f32.mrf.mxu1 }
  0xf1   :  { %v261_v23 = vmax.f32 %v205_v19, 0.0  ;;  %v269_v24 = vmax.f32 %v237_v20, 0.0  ;;  %v197_v25 = vadd.f32 %v585_v16, %v196_v21  ;;  %v229_v26 = vadd.f32 %v585_v16, %v228_v22 }
  0xf2   :  { %v445_v27 = vpop.f32.mrf.mxu0  ;;  %v453_v28 = vpop.f32.mrf.mxu1 }
  0xf3   :  { %v396_v29 = vpack.c.bf16 %v261_v23, %v261_v23  ;;  %v404_v30 = vpack.c.bf16 %v269_v24, %v269_v24  ;;  %v259_v31 = vmax.f32 %v197_v25, 0.0  ;;  %v267_v32 = vmax.f32 %v229_v26, 0.0 }
  0xf4   :  { %v208_v33 = vadd.f32 %v445_v27, %v585_v16  ;;  %v240_v34 = vadd.f32 %v453_v28, %v585_v16  ;;  %v199_v35 = vpop.f32.mrf.mxu0  ;;  %v231_v36 = vpop.f32.mrf.mxu1 }
  0xf5   :  { %342 = vst.msk [vmem:[%s670_s3 + $0x8] sm:$0xf] %vm339_vm0, %v396_v29  ;;  %350 = vst.msk [vmem:[%s670_s3 + $0x28] sm:$0xf] %vm339_vm0, %v404_v30  ;;  %v394_v37 = vpack.c.bf16 %v259_v31, %v259_v31  ;;  %v402_v38 = vpack.c.bf16 %v267_v32, %v267_v32  ;;  %v200_v39 = vadd.f32 %v585_v16, %v199_v35 }
  0xf6   :  { %v232_v40 = vadd.f32 %v585_v16, %v231_v36  ;;  %v262_v41 = vmax.f32 %v208_v33, 0.0  ;;  %v270_v42 = vmax.f32 %v240_v34, 0.0  ;;  %v448_v43 = vpop.f32.mrf.mxu0  ;;  %v456_v44 = vpop.f32.mrf.mxu1 }
  0xf7   :  { %340 = vst.msk [vmem:[%s670_s3] sm:$0xf] %vm339_vm0, %v394_v37  ;;  %348 = vst.msk [vmem:[%s670_s3 + $0x20] sm:$0xf] %vm339_vm0, %v402_v38  ;;  %v260_v45 = vmax.f32 %v200_v39, 0.0  ;;  %v221_v47 = vadd.f32 %v448_v43, %v585_v16  ;;  %v253_v48 = vadd.f32 %v456_v44, %v585_v16 }
  0xf8   :  { %v268_v46 = vmax.f32 %v232_v40, 0.0  ;;  %v397_v49 = vpack.c.bf16 %v262_v41, %v262_v41  ;;  %v405_v50 = vpack.c.bf16 %v270_v42, %v270_v42  ;;  %v212_v51 = vpop.f32.mrf.mxu0  ;;  %v244_v52 = vpop.f32.mrf.mxu1 }
  0xf9   :  { %v395_v53 = vpack.c.bf16 %v260_v45, %v260_v45  ;;  %v265_v55 = vmax.f32 %v221_v47, 0.0  ;;  %v273_v56 = vmax.f32 %v253_v48, 0.0  ;;  %v213_v57 = vadd.f32 %v585_v16, %v212_v51 }
  0xfa   :  { %v403_v54 = vpack.c.bf16 %v268_v46, %v268_v46  ;;  %343 = vst.msk [vmem:[%s670_s3 + $0xc] sm:$0xf] %vm339_vm0, %v397_v49  ;;  %351 = vst.msk [vmem:[%s670_s3 + $0x2c] sm:$0xf] %vm339_vm0, %v405_v50  ;;  %v245_v58 = vadd.f32 %v585_v16, %v244_v52  ;;  %v449_v59 = vpop.f32.mrf.mxu0  ;;  %v457_v60 = vpop.f32.mrf.mxu1 }
  0xfb   :  { %341 = vst.msk [vmem:[%s670_s3 + $0x4] sm:$0xf] %vm339_vm0, %v395_v53  ;;  %v400_v61 = vpack.c.bf16 %v265_v55, %v265_v55  ;;  %v408_v62 = vpack.c.bf16 %v273_v56, %v273_v56  ;;  %v224_v63 = vadd.f32 %v449_v59, %v585_v16  ;;  %v256_v0 = vadd.f32 %v457_v60, %v585_v16 }
  0xfc   :  { %349 = vst.msk [vmem:[%s670_s3 + $0x24] sm:$0xf] %vm339_vm0, %v403_v54  ;;  %v263_v1 = vmax.f32 %v213_v57, 0.0  ;;  %v271_v2 = vmax.f32 %v245_v58, 0.0  ;;  %v215_v3 = vpop.f32.mrf.mxu0  ;;  %v247_v4 = vpop.f32.mrf.mxu1 }
  0xfd   :  { %346 = vst.msk [vmem:[%s670_s3 + $0x18] sm:$0xf] %vm339_vm0, %v400_v61  ;;  %354 = vst.msk [vmem:[%s670_s3 + $0x38] sm:$0xf] %vm339_vm0, %v408_v62  ;;  %v266_v5 = vmax.f32 %v224_v63, 0.0  ;;  %v274_v6 = vmax.f32 %v256_v0, 0.0  ;;  %v216_v7 = vadd.f32 %v585_v16, %v215_v3  ;;  %v248_v8 = vadd.f32 %v585_v16, %v247_v4 }
  0xfe   :  { %v398_v9 = vpack.c.bf16 %v263_v1, %v263_v1  ;;  %v406_v10 = vpack.c.bf16 %v271_v2, %v271_v2 }
  0xff   :  { %v401_v11 = vpack.c.bf16 %v266_v5, %v266_v5  ;;  %v409_v12 = vpack.c.bf16 %v274_v6, %v274_v6  ;;  %v264_v13 = vmax.f32 %v216_v7, 0.0  ;;  %v272_v14 = vmax.f32 %v248_v8, 0.0 }
 0x100   :  { %344 = vst.msk [vmem:[%s670_s3 + $0x10] sm:$0xf] %vm339_vm0, %v398_v9  ;;  %352 = vst.msk [vmem:[%s670_s3 + $0x30] sm:$0xf] %vm339_vm0, %v406_v10 }
 0x101   :  { %347 = vst.msk [vmem:[%s670_s3 + $0x1c] sm:$0xf] %vm339_vm0, %v401_v11  ;;  %355 = vst.msk [vmem:[%s670_s3 + $0x3c] sm:$0xf] %vm339_vm0, %v409_v12  ;;  %v399_v15 = vpack.c.bf16 %v264_v13, %v264_v13  ;;  %v407_v16 = vpack.c.bf16 %v272_v14, %v272_v14 }
 0x103   :  { %345 = vst.msk [vmem:[%s670_s3 + $0x14] sm:$0xf] %vm339_vm0, %v399_v15  ;;  %353 = vst.msk [vmem:[%s670_s3 + $0x34] sm:$0xf] %vm339_vm0, %v407_v16 }
 0x104   :  { %360 = vsyncpa [#allocation3], 1 }

// kernel: forward.4
= control target key start
LH: loop header
LB: loop body
LE: loop exit
PB: predicated region body
PF: predicated region fallthrough
CT: control target
= control target key end

     0   :  { %8 = vsyncpa [#allocation3], 0  ;;  %s1221_s12 = smov [#allocation2]   ;;  %s1491_s0 = inlined_call_operand.vmem [shape: bf16[32,1024], index: 0, kind: input, shape index: {}]   ;;  %s1492_s1 = inlined_call_operand.vmem [shape: bf16[1024,128], index: 1, kind: input, shape index: {}]   ;;  %s1493_s2 = inlined_call_operand.hbm [shape: f32[3,128], index: 2, kind: input, shape index: {}]   ;;  %s1494_s3 = inlined_call_operand.vmem [shape: bf16[32,128], index: 3, kind: output, shape index: {}]  }
   0x1   :  { %s19_s13 = sshll.u32 %s1221_s12, 4  ;;  %s20_s13 = int_to_ptr.vmem [resolvable:$true] %s19_s13 }
   0x2   :  { %s1207_s14 = scalar_lea.vmem %s20_s13, 64  ;;  %p1212_p1 = scmp.lt.s32.totalorder %s20_s13, %s20_s13 }
   0x3   :  { %p1208_p0 = scmp.ne.s32.totalorder %s20_s13, %s1207_s14  ;;  %p1213_p2 = scmp.lt.s32.totalorder %s1207_s14, %s1207_s14 }
   0x5   :  { %p1214_p3 = por %p1213_p2, %p1212_p1 }
   0x7   :  { %p1215_p4 = pnand %p1214_p3, %p1208_p0 }
   0x9   :  { %1218 = shalt.err (!%p1215_p4)
}
   0xa   :  { %22 = dma.hbm_to_vmem [thread:$0]  %s1493_s2, 64, %s20_s13, [#allocation3]  }
   0xb   :  { %1219 = dma.done.wait [#allocation3], 64  }
   0xc   :  { %1220 = vsyncadd [#allocation3], 4294967232  ;;  %v1133_v0 = vld [vmem:[%s1492_s1 + $0x78] sm:$0xff]   ;;  %v1137_v4 = vld [vmem:[%s1492_s1 + $0x70] sm:$0xff]  }
   0xd   :  { %v1134_v1 = vld [vmem:[%s1492_s1 + $0xf8] sm:$0xff]   ;;  %1020 = vmatprep.subr.bf16.mxu0 %v1133_v0  ;;  %v1138_v5 = vld [vmem:[%s1492_s1 + $0xf0] sm:$0xff]   ;;  %v1141_v8 = vld [vmem:[%s1492_s1 + $0x68] sm:$0xff]  }
   0xe   :  { %v1135_v2 = vld [vmem:[%s1492_s1 + $0x38] sm:$0xff]   ;;  %1048 = vmatprep.subr.bf16.mxu1 %v1134_v1  ;;  %v1139_v6 = vld [vmem:[%s1492_s1 + $0x30] sm:$0xff]   ;;  %v1142_v9 = vld [vmem:[%s1492_s1 + $0xe8] sm:$0xff]  }
   0xf   :  { %v1136_v3 = vld [vmem:[%s1492_s1 + $0xb8] sm:$0xff]   ;;  %1021 = vmatpush3.bf16.msra.mxu0 %v1135_v2  ;;  %v1140_v7 = vld [vmem:[%s1492_s1 + $0xb0] sm:$0xff]   ;;  %v1143_v10 = vld [vmem:[%s1492_s1 + $0x28] sm:$0xff]  }
  0x10   :  { %1049 = vmatpush3.bf16.msra.mxu1 %v1136_v3  ;;  %1022 = vmatprep.subr.bf16.mxu0 %v1137_v4  ;;  %v1144_v11 = vld [vmem:[%s1492_s1 + $0xa8] sm:$0xff]   ;;  %v1145_v12 = vld [vmem:[%s1492_s1 + $0x60] sm:$0xff]   ;;  %v1149_v16 = vld [vmem:[%s1492_s1 + $0x58] sm:$0xff]  }
  0x11   :  { %1050 = vmatprep.subr.bf16.mxu1 %v1138_v5  ;;  %v1146_v13 = vld [vmem:[%s1492_s1 + $0xe0] sm:$0xff]   ;;  %v1150_v17 = vld [vmem:[%s1492_s1 + $0xd8] sm:$0xff]   ;;  %v1153_v20 = vld [vmem:[%s1492_s1 + $0x50] sm:$0xff]  }
  0x12   :  { %v1147_v14 = vld [vmem:[%s1492_s1 + $0x20] sm:$0xff]   ;;  %v1151_v18 = vld [vmem:[%s1492_s1 + $0x18] sm:$0xff]   ;;  %v1154_v21 = vld [vmem:[%s1492_s1 + $0xd0] sm:$0xff]  }
  0x13   :  { %1023 = vmatpush3.bf16.msra.mxu0 %v1139_v6  ;;  %v1148_v15 = vld [vmem:[%s1492_s1 + $0xa0] sm:$0xff]   ;;  %v1152_v19 = vld [vmem:[%s1492_s1 + $0x98] sm:$0xff]   ;;  %v1155_v22 = vld [vmem:[%s1492_s1 + $0x10] sm:$0xff]  }
  0x14   :  { %1051 = vmatpush3.bf16.msra.mxu1 %v1140_v7  ;;  %1024 = vmatprep.subr.bf16.mxu0 %v1141_v8  ;;  %v1156_v23 = vld [vmem:[%s1492_s1 + $0x90] sm:$0xff]   ;;  %v1157_v24 = vld [vmem:[%s1492_s1 + $0x48] sm:$0xff]   ;;  %v1161_v28 = vld [vmem:[%s1492_s1 + $0x40] sm:$0xff]  }
  0x15   :  { %1052 = vmatprep.subr.bf16.mxu1 %v1142_v9  ;;  %v1158_v25 = vld [vmem:[%s1492_s1 + $0xc8] sm:$0xff]   ;;  %v1162_v29 = vld [vmem:[%s1492_s1 + $0xc0] sm:$0xff]   ;;  %v1165_v40 = vld [vmem:[%s1492_s1 + $0x178] sm:$0xff]  }
  0x16   :  { %v1159_v26 = vld [vmem:[%s1492_s1 + $0x8] sm:$0xff]   ;;  %v1163_v30 = vld [vmem:[%s1492_s1] sm:$0xff]   ;;  %v1166_v41 = vld [vmem:[%s1492_s1 + $0x1f8] sm:$0xff]  }
  0x17   :  { %1025 = vmatpush3.bf16.msra.mxu0 %v1143_v10  ;;  %v1160_v27 = vld [vmem:[%s1492_s1 + $0x88] sm:$0xff]   ;;  %v1164_v31 = vld [vmem:[%s1492_s1 + $0x80] sm:$0xff]   ;;  %v1167_v42 = vld [vmem:[%s1492_s1 + $0x138] sm:$0xff]  }
  0x18   :  { %1053 = vmatpush3.bf16.msra.mxu1 %v1144_v11  ;;  %1026 = vmatprep.subr.bf16.mxu0 %v1145_v12  ;;  %v27_v32 = vld [vmem:[%s1491_s0] sm:$0xff]  ;;  %v28_v34 = vld [vmem:[%s1491_s0 + $0x8] sm:$0xff]  ;;  %v1168_v43 = vld [vmem:[%s1492_s1 + $0x1b8] sm:$0xff]  }
  0x19   :  { %1054 = vmatprep.subr.bf16.mxu1 %v1146_v13  ;;  %v31_v33 = vld [vmem:[%s1491_s0 + $0x20] sm:$0xff]  ;;  %v32_v37 = vld [vmem:[%s1491_s0 + $0x28] sm:$0xff]  ;;  %v1169_v44 = vld [vmem:[%s1492_s1 + $0x170] sm:$0xff]  }
  0x1a   :  { %v919_v35 = vcombine.low %v27_v32, %v31_v33  ;;  %v920_v36 = vcombine.high %v27_v32, %v31_v33  ;;  %v921_v38 = vcombine.low %v28_v34, %v32_v37  ;;  %v922_v39 = vcombine.high %v28_v34, %v32_v37  ;;  %v1170_v45 = vld [vmem:[%s1492_s1 + $0x1f0] sm:$0xff]   ;;  %v1173_v48 = vld [vmem:[%s1492_s1 + $0x168] sm:$0xff]   ;;  %v1177_v52 = vld [vmem:[%s1492_s1 + $0x160] sm:$0xff]  }
  0x1b   :  { %1027 = vmatpush3.bf16.msra.mxu0 %v1147_v14  ;;  %v1171_v46 = vld [vmem:[%s1492_s1 + $0x130] sm:$0xff]   ;;  %v1174_v49 = vld [vmem:[%s1492_s1 + $0x1e8] sm:$0xff]   ;;  %v1178_v53 = vld [vmem:[%s1492_s1 + $0x1e0] sm:$0xff]  }
  0x1c   :  { %1055 = vmatpush3.bf16.msra.mxu1 %v1148_v15  ;;  %1028 = vmatprep.subr.bf16.mxu0 %v1149_v16  ;;  %v1172_v47 = vld [vmem:[%s1492_s1 + $0x1b0] sm:$0xff]   ;;  %v1175_v50 = vld [vmem:[%s1492_s1 + $0x128] sm:$0xff]   ;;  %v1179_v54 = vld [vmem:[%s1492_s1 + $0x120] sm:$0xff]  }
  0x1d   :  { %1056 = vmatprep.subr.bf16.mxu1 %v1150_v17  ;;  %672 = vmatprep.mubr.bf16.mxu0 %v920_v36  ;;  %v1176_v51 = vld [vmem:[%s1492_s1 + $0x1a8] sm:$0xff]   ;;  %v1180_v55 = vld [vmem:[%s1492_s1 + $0x1a0] sm:$0xff]   ;;  %v1181_v56 = vld [vmem:[%s1492_s1 + $0x158] sm:$0xff]  }
  0x1e   :  { %721 = vmatprep.mubr.bf16.mxu1 %v922_v39  ;;  %v1182_v57 = vld [vmem:[%s1492_s1 + $0x1d8] sm:$0xff]   ;;  %v35_v58 = vld [vmem:[%s1491_s0 + $0x40] sm:$0xff]  ;;  %v36_v0 = vld [vmem:[%s1491_s0 + $0x48] sm:$0xff] }
  0x1f   :  { %1029 = vmatpush3.bf16.msra.mxu0 %v1151_v18  ;;  %v39_v59 = vld [vmem:[%s1491_s0 + $0x60] sm:$0xff]  ;;  %v1183_v61 = vld [vmem:[%s1492_s1 + $0x118] sm:$0xff]   ;;  %v40_v1 = vld [vmem:[%s1491_s0 + $0x68] sm:$0xff] }
  0x20   :  { %1057 = vmatpush3.bf16.msra.mxu1 %v1152_v19  ;;  %1030 = vmatprep.subr.bf16.mxu0 %v1153_v20  ;;  %v928_v60 = vcombine.high %v35_v58, %v39_v59  ;;  %v927_v62 = vcombine.low %v35_v58, %v39_v59  ;;  %v1184_v63 = vld [vmem:[%s1492_s1 + $0x198] sm:$0xff]   ;;  %v930_v2 = vcombine.high %v36_v0, %v40_v1  ;;  %v1185_v4 = vld [vmem:[%s1492_s1 + $0x150] sm:$0xff]   ;;  %v1189_v8 = vld [vmem:[%s1492_s1 + $0x148] sm:$0xff]  }
  0x21   :  { %1058 = vmatprep.subr.bf16.mxu1 %v1154_v21  ;;  %v929_v3 = vcombine.low %v36_v0, %v40_v1  ;;  %v1186_v5 = vld [vmem:[%s1492_s1 + $0x1d0] sm:$0xff]   ;;  %v1190_v9 = vld [vmem:[%s1492_s1 + $0x1c8] sm:$0xff]   ;;  %v1193_v12 = vld [vmem:[%s1492_s1 + $0x140] sm:$0xff]  }
  0x22   :  { %v1187_v6 = vld [vmem:[%s1492_s1 + $0x110] sm:$0xff]   ;;  %v1191_v10 = vld [vmem:[%s1492_s1 + $0x108] sm:$0xff]   ;;  %v1194_v13 = vld [vmem:[%s1492_s1 + $0x1c0] sm:$0xff]  }
  0x23   :  { %1031 = vmatpush3.bf16.msra.mxu0 %v1155_v22  ;;  %v1188_v7 = vld [vmem:[%s1492_s1 + $0x190] sm:$0xff]   ;;  %v1192_v11 = vld [vmem:[%s1492_s1 + $0x188] sm:$0xff]   ;;  %v1195_v14 = vld [vmem:[%s1492_s1 + $0x100] sm:$0xff]  }
  0x24   :  { %1059 = vmatpush3.bf16.msra.mxu1 %v1156_v23  ;;  %1032 = vmatprep.subr.bf16.mxu0 %v1157_v24  ;;  %v1196_v15 = vld [vmem:[%s1492_s1 + $0x180] sm:$0xff]   ;;  %v29_v16 = vld [vmem:[%s1491_s0 + $0x10] sm:$0xff]  ;;  %v30_v18 = vld [vmem:[%s1491_s0 + $0x18] sm:$0xff] }
  0x25   :  { %1060 = vmatprep.subr.bf16.mxu1 %v1158_v25  ;;  %v33_v17 = vld [vmem:[%s1491_s0 + $0x30] sm:$0xff]  ;;  %v34_v19 = vld [vmem:[%s1491_s0 + $0x38] sm:$0xff] }
  0x26   :  { %v923_v20 = vcombine.low %v29_v16, %v33_v17  ;;  %v924_v21 = vcombine.high %v29_v16, %v33_v17  ;;  %v925_v22 = vcombine.low %v30_v18, %v34_v19  ;;  %v926_v23 = vcombine.high %v30_v18, %v34_v19  ;;  %v37_v24 = vld [vmem:[%s1491_s0 + $0x50] sm:$0xff] }
  0x27   :  { %1033 = vmatpush3.bf16.msra.mxu0 %v1159_v26  ;;  %v41_v25 = vld [vmem:[%s1491_s0 + $0x70] sm:$0xff]  ;;  %v38_v26 = vld [vmem:[%s1491_s0 + $0x58] sm:$0xff] }
  0x28   :  { %1061 = vmatpush3.bf16.msra.mxu1 %v1160_v27  ;;  %1034 = vmatprep.subr.bf16.mxu0 %v1161_v28  ;;  %v932_v27 = vcombine.high %v37_v24, %v41_v25  ;;  %v42_v28 = vld [vmem:[%s1491_s0 + $0x78] sm:$0xff] }
  0x29   :  { %1062 = vmatprep.subr.bf16.mxu1 %v1162_v29  ;;  %v934_v29 = vcombine.high %v38_v26, %v42_v28 }
  0x2b   :  { %1035 = vmatpush3.bf16.msra.mxu0 %v1163_v30  ;;  %v931_v30 = vcombine.low %v37_v24, %v41_v25 }
  0x2c   :  { %1063 = vmatpush3.bf16.msra.mxu1 %v1164_v31  ;;  %1076 = vmatprep.subr.bf16.mxu0 %v1165_v40  ;;  %v933_v31 = vcombine.low %v38_v26, %v42_v28 }
  0x2d   :  { %1104 = vmatprep.subr.bf16.mxu1 %v1166_v41 }
  0x2e   :  { %673 = vmatmul.mubr.bf16.vlgmr.msra.gmra.mxu0 %v919_v35 }
  0x2f   :  { %722 = vmatmul.mubr.bf16.vlgmr.msra.gmra.mxu1 %v921_v38  ;;  %1077 = vmatpush3.bf16.msra.mxu0 %v1167_v42 }
  0x30   :  { %1105 = vmatpush3.bf16.msra.mxu1 %v1168_v43  ;;  %1078 = vmatprep.subr.bf16.mxu0 %v1169_v44 }
  0x31   :  { %1106 = vmatprep.subr.bf16.mxu1 %v1170_v45  ;;  %680 = vmatprep.mubr.bf16.mxu0 %v928_v60 }
  0x32   :  { %729 = vmatprep.mubr.bf16.mxu1 %v930_v2 }
  0x33   :  { %1079 = vmatpush3.bf16.msra.mxu0 %v1171_v46 }
  0x34   :  { %1107 = vmatpush3.bf16.msra.mxu1 %v1172_v47  ;;  %1080 = vmatprep.subr.bf16.mxu0 %v1173_v48 }
  0x35   :  { %1108 = vmatprep.subr.bf16.mxu1 %v1174_v49 }
  0x36   :  { %681 = vmatmul.mubr.bf16.gmra.mxu0 %v927_v62 }
  0x37   :  { %1081 = vmatpush3.bf16.msra.mxu0 %v1175_v50  ;;  %730 = vmatmul.mubr.bf16.gmra.mxu1 %v929_v3 }
  0x38   :  { %1109 = vmatpush3.bf16.msra.mxu1 %v1176_v51  ;;  %1082 = vmatprep.subr.bf16.mxu0 %v1177_v52  ;;  %v918_v52 = vld [vmem:[#allocation2] ss:$0 sm:$0xff] }
  0x39   :  { %1110 = vmatprep.subr.bf16.mxu1 %v1178_v53  ;;  %770 = vmatprep.mubr.bf16.mxu0 %v924_v21 }
  0x3a   :  { %819 = vmatprep.mubr.bf16.mxu1 %v926_v23 }
  0x3b   :  { %1083 = vmatpush3.bf16.msra.mxu0 %v1179_v54 }
  0x3c   :  { %1111 = vmatpush3.bf16.msra.mxu1 %v1180_v55  ;;  %1084 = vmatprep.subr.bf16.mxu0 %v1181_v56 }
  0x3d   :  { %1112 = vmatprep.subr.bf16.mxu1 %v1182_v57 }
  0x3f   :  { %1085 = vmatpush3.bf16.msra.mxu0 %v1183_v61 }
  0x40   :  { %1113 = vmatpush3.bf16.msra.mxu1 %v1184_v63  ;;  %1086 = vmatprep.subr.bf16.mxu0 %v1185_v4 }
  0x41   :  { %1114 = vmatprep.subr.bf16.mxu1 %v1186_v5 }
  0x43   :  { %1087 = vmatpush3.bf16.msra.mxu0 %v1187_v6 }
  0x44   :  { %1115 = vmatpush3.bf16.msra.mxu1 %v1188_v7  ;;  %1088 = vmatprep.subr.bf16.mxu0 %v1189_v8 }
  0x45   :  { %1116 = vmatprep.subr.bf16.mxu1 %v1190_v9 }
  0x47   :  { %1089 = vmatpush3.bf16.msra.mxu0 %v1191_v10 }
  0x48   :  { %1117 = vmatpush3.bf16.msra.mxu1 %v1192_v11  ;;  %1090 = vmatprep.subr.bf16.mxu0 %v1193_v12 }
  0x49   :  { %1118 = vmatprep.subr.bf16.mxu1 %v1194_v13 }
  0x4b   :  { %1091 = vmatpush3.bf16.msra.mxu0 %v1195_v14 }
  0x4c   :  { %1119 = vmatpush3.bf16.msra.mxu1 %v1196_v15 }
  0x4e   :  { %771 = vmatmul.mubr.bf16.vlgmr.msra.gmra.mxu0 %v923_v20 }
  0x4f   :  { %820 = vmatmul.mubr.bf16.vlgmr.msra.gmra.mxu1 %v925_v22  ;;  %778 = vmatprep.mubr.bf16.mxu0 %v932_v27 }
  0x50   :  { %827 = vmatprep.mubr.bf16.mxu1 %v934_v29 }
  0x56   :  { %779 = vmatmul.mubr.bf16.gmra.mxu0 %v931_v30 }
  0x57   :  { %828 = vmatmul.mubr.bf16.gmra.mxu1 %v933_v31 }
  0xee   :  { %v1036_v32 = vpop.f32.mrf.mxu0 }
  0xef   :  { %v1064_v33 = vpop.f32.mrf.mxu1 }
  0xf0   :  { %v1037_v34 = vpop.f32.mrf.mxu0 }
  0xf1   :  { %v1065_v35 = vpop.f32.mrf.mxu1  ;;  %v1038_v51 = vadd.f32 %v1037_v34, %v1036_v32 }
  0xf2   :  { %v1039_v36 = vpop.f32.mrf.mxu0  ;;  %v1066_v60 = vadd.f32 %v1065_v35, %v1064_v33 }
  0xf3   :  { %v1067_v37 = vpop.f32.mrf.mxu1  ;;  %v675_v59 = vadd.f32 %v1038_v51, %v918_v52 }
  0xf4   :  { %v1040_v38 = vpop.f32.mrf.mxu0 }
  0xf5   :  { %v1068_v39 = vpop.f32.mrf.mxu1  ;;  %v1041_v48 = vadd.f32 %v1040_v38, %v1039_v36  ;;  %v724_v8 = vadd.f32 %v1066_v60, %v675_v59 }
  0xf6   :  { %v1042_v40 = vpop.f32.mrf.mxu0  ;;  %v1069_v61 = vadd.f32 %v1068_v39, %v1067_v37 }
  0xf7   :  { %v1070_v41 = vpop.f32.mrf.mxu1  ;;  %v678_v56 = vadd.f32 %v1041_v48, %v918_v52 }
  0xf8   :  { %v1043_v42 = vpop.f32.mrf.mxu0 }
  0xf9   :  { %v1071_v43 = vpop.f32.mrf.mxu1  ;;  %v1044_v53 = vadd.f32 %v1043_v42, %v1042_v40  ;;  %v727_v3 = vadd.f32 %v1069_v61, %v678_v56 }
  0xfa   :  { %v1045_v44 = vpop.f32.mrf.mxu0  ;;  %v1072_v63 = vadd.f32 %v1071_v43, %v1070_v41 }
  0xfb   :  { %v1073_v45 = vpop.f32.mrf.mxu1  ;;  %v683_v62 = vadd.f32 %v1044_v53, %v918_v52 }
  0xfc   :  { %v1046_v46 = vpop.f32.mrf.mxu0 }
  0xfd   :  { %v1074_v47 = vpop.f32.mrf.mxu1  ;;  %v1047_v0 = vadd.f32 %v1046_v46, %v1045_v44  ;;  %v732_v10 = vadd.f32 %v1072_v63, %v683_v62  ;;  %v999_v63 = vld [vmem:[#allocation2 + $0x1] ss:$0 sm:$0xff] }
  0xfe   :  { %v1075_v14 = vadd.f32 %v1074_v47, %v1073_v45 }
  0xff   :  { %v686_v11 = vadd.f32 %v1047_v0, %v918_v52 }
 0x101   :  { %v735_v26 = vadd.f32 %v1075_v14, %v686_v11 }
 0x10e   :  { %v1092_v49 = vpop.f32.mrf.mxu0 }
 0x10f   :  { %v1120_v50 = vpop.f32.mrf.mxu1 }
 0x110   :  { %v1093_v54 = vpop.f32.mrf.mxu0 }
 0x111   :  { %v1121_v55 = vpop.f32.mrf.mxu1  ;;  %v1094_v4 = vadd.f32 %v1093_v54, %v1092_v49 }
 0x112   :  { %v1095_v57 = vpop.f32.mrf.mxu0  ;;  %v1122_v20 = vadd.f32 %v1121_v55, %v1120_v50 }
 0x113   :  { %v1123_v58 = vpop.f32.mrf.mxu1  ;;  %v773_v15 = vadd.f32 %v1094_v4, %v724_v8  ;;  %v1000_v4 = vld [vmem:[#allocation2 + $0x2] ss:$0 sm:$0xff] }
 0x114   :  { %v1096_v1 = vpop.f32.mrf.mxu0 }
 0x115   :  { %v1124_v2 = vpop.f32.mrf.mxu1  ;;  %v1097_v5 = vadd.f32 %v1096_v1, %v1095_v57  ;;  %v822_v27 = vadd.f32 %v1122_v20, %v773_v15 }
 0x116   :  { %v1098_v6 = vpop.f32.mrf.mxu0  ;;  %v1125_v16 = vadd.f32 %v1124_v2, %v1123_v58 }
 0x117   :  { %v1126_v7 = vpop.f32.mrf.mxu1  ;;  %v776_v9 = vadd.f32 %v1097_v5, %v727_v3 }
 0x118   :  { %v1099_v12 = vpop.f32.mrf.mxu0 }
 0x119   :  { %v1127_v13 = vpop.f32.mrf.mxu1  ;;  %v1100_v17 = vadd.f32 %v1099_v12, %v1098_v6  ;;  %v825_v21 = vadd.f32 %v1125_v16, %v776_v9 }
 0x11a   :  { %v1101_v18 = vpop.f32.mrf.mxu0  ;;  %v1128_v23 = vadd.f32 %v1127_v13, %v1126_v7 }
 0x11b   :  { %v1129_v19 = vpop.f32.mrf.mxu1  ;;  %v781_v22 = vadd.f32 %v1100_v17, %v732_v10  ;;  %v838_v30 = vadd.f32 %v825_v21, %v822_v27 }
 0x11c   :  { %v1102_v24 = vpop.f32.mrf.mxu0 }
 0x11d   :  { %v1130_v25 = vpop.f32.mrf.mxu1  ;;  %v830_v28 = vadd.f32 %v1128_v23, %v781_v22  ;;  %v1103_v29 = vadd.f32 %v1102_v24, %v1101_v18 }
 0x11e   :  { %v1131_v32 = vadd.f32 %v1130_v25, %v1129_v19 }
 0x11f   :  { %v784_v31 = vadd.f32 %v1103_v29, %v735_v26  ;;  %v839_v33 = vadd.f32 %v838_v30, %v830_v28 }
 0x121   :  { %v833_v34 = vadd.f32 %v1131_v32, %v784_v31 }
 0x123   :  { %v840_v35 = vadd.f32 %v839_v33, %v833_v34 }
 0x125   :  { %v841_v36 = vrot.slane %v840_v35, 4 }
 0x127   :  { %v842_v37 = vadd.f32 %v841_v36, %v840_v35 }
 0x129   :  { %v843_v38 = vrot.slane %v842_v37, 2 }
 0x12b   :  { %v844_v39 = vadd.f32 %v843_v38, %v842_v37 }
 0x12d   :  { %v845_v40 = vrot.slane %v844_v39, 1 }
 0x12f   :  { %v846_v41 = vadd.f32 %v845_v40, %v844_v39 }
 0x131   :  { %v848_v42 = vmul.f32 0.03125, %v846_v41 }
 0x133   :  { %v849_v43 = vsub.f32 %v822_v27, %v848_v42  ;;  %v850_v44 = vsub.f32 %v825_v21, %v848_v42  ;;  %v851_v45 = vsub.f32 %v830_v28, %v848_v42  ;;  %v852_v46 = vsub.f32 %v833_v34, %v848_v42 }
 0x135   :  { %v853_v47 = vmul.f32 %v849_v43, %v849_v43  ;;  %v854_v48 = vmul.f32 %v850_v44, %v850_v44  ;;  %v855_v49 = vmul.f32 %v851_v45, %v851_v45  ;;  %v856_v51 = vmul.f32 %v852_v46, %v852_v46 }
 0x137   :  { %v857_v50 = vadd.f32 %v854_v48, %v853_v47 }
 0x139   :  { %v858_v52 = vadd.f32 %v857_v50, %v855_v49 }
 0x13b   :  { %v859_v53 = vadd.f32 %v858_v52, %v856_v51 }
 0x13d   :  { %v860_v54 = vrot.slane %v859_v53, 4 }
 0x13f   :  { %v861_v55 = vadd.f32 %v860_v54, %v859_v53 }
 0x141   :  { %v862_v56 = vrot.slane %v861_v55, 2 }
 0x143   :  { %v863_v57 = vadd.f32 %v862_v56, %v861_v55 }
 0x145   :  { %v864_v58 = vrot.slane %v863_v57, 1 }
 0x147   :  { %v865_v59 = vadd.f32 %v864_v58, %v863_v57 }
 0x149   :  { %v866_v60 = vmul.f32 0.03125, %v865_v59 }
 0x14b   :  { %v867_v61 = vadd.f32 1e-05, %v866_v60 }
 0x14d   :  { %1197 = vrsqrt.f32 %v867_v61 }
 0x15a   :  { %v1198_v62 = vpop.eup %1197 }
 0x15b   :  { %v869_v0 = vmul.f32 %v1198_v62, %v849_v43  ;;  %v870_v1 = vmul.f32 %v1198_v62, %v850_v44  ;;  %v871_v2 = vmul.f32 %v1198_v62, %v851_v45  ;;  %v872_v3 = vmul.f32 %v1198_v62, %v852_v46 }
 0x15d   :  { %v877_v5 = vmul.f32 %v999_v63, %v869_v0  ;;  %v878_v6 = vmul.f32 %v999_v63, %v870_v1  ;;  %v879_v7 = vmul.f32 %v999_v63, %v871_v2  ;;  %v880_v8 = vmul.f32 %v999_v63, %v872_v3 }
 0x15f   :  { %v885_v9 = vadd.f32 %v1000_v4, %v877_v5  ;;  %v886_v10 = vadd.f32 %v1000_v4, %v878_v6  ;;  %v887_v11 = vadd.f32 %v1000_v4, %v879_v7  ;;  %v888_v12 = vadd.f32 %v1000_v4, %v880_v8 }
 0x161   :  { %v889_v13 = vmax.f32 %v885_v9, 0.0  ;;  %v890_v14 = vmax.f32 %v886_v10, 0.0  ;;  %v891_v15 = vmax.f32 %v887_v11, 0.0  ;;  %v892_v16 = vmax.f32 %v888_v12, 0.0 }
 0x163   :  { %v1012_v17 = vpack.c.bf16 %v890_v14, %v889_v13  ;;  %v1017_v18 = vpack.c.bf16 %v892_v16, %v891_v15 }
 0x165   :  { %1013 = vst [vmem:[%s1494_s3] sm:$0xff] %v1012_v17   ;;  %1019 = vst [vmem:[%s1494_s3 + $0x8] sm:$0xff] %v1017_v18  }
 0x166   :  { %917 = vsyncpa [#allocation3], 1 }

// kernel: forward.5
= control target key start
LH: loop header
LB: loop body
LE: loop exit
PB: predicated region body
PF: predicated region fallthrough
CT: control target
= control target key end

     0   :  { %18 = vsyncpa [#allocation3], 0  ;;  %s12025_s0 = inlined_call_operand.vmem [shape: bf16[8,2048], index: 0, kind: input, shape index: {}]   ;;  %s12026_s1 = inlined_call_operand.vmem [shape: bf16[2,128], index: 1, kind: input, shape index: {}]   ;;  %s12027_s2 = inlined_call_operand.vmem [shape: bf16[2048,256], index: 2, kind: input, shape index: {}]   ;;  %s12028_s3 = inlined_call_operand.hbm [shape: f32[3,256], index: 3, kind: input, shape index: {}]   ;;  %s12029_s4 = inlined_call_operand.vmem [shape: bf16[1024,512], index: 4, kind: input, shape index: {}]   ;;  %s12030_s5 = inlined_call_operand.vmem [shape: f32[3,512], index: 5, kind: input, shape index: {}]   ;;  %s12031_s6 = inlined_call_operand.hbm [shape: bf16[128,512], index: 6, kind: input, shape index: {}]   ;;  %s12032_s7 = inlined_call_operand.hbm [shape: f32[1,512], index: 7, kind: input, shape index: {}]   ;;  %s12033_s8 = inlined_call_operand.vmem [shape: bf16[512,512], index: 8, kind: input, shape index: {}]   ;;  %s12034_s9 = inlined_call_operand.hbm [shape: f32[1,512], index: 9, kind: input, shape index: {}]   ;;  %s12035_s10 = inlined_call_operand.vmem [shape: bf16[512,384], index: 10, kind: input, shape index: {}]   ;;  %s12036_s11 = inlined_call_operand.hbm [shape: bf16[512,384], index: 11, kind: input, shape index: {}]   ;;  %s12037_s12 = inlined_call_operand.vmem [shape: f32[1,384], index: 12, kind: input, shape index: {}]   ;;  %s12038_s13 = inlined_call_operand.vmem [shape: f32[2,384], index: 13, kind: output, shape index: {}]  }
   0x1   :  { %19 = vsyncpa [#allocation5], 0 }
   0x2   :  { %20 = vsyncpa [#allocation8], 0  ;;  %s9501_s25 = smov [#allocation4]  }
   0x3   :  { %s46_s26 = sshll.u32 %s9501_s25, 4  ;;  %s47_s26 = int_to_ptr.vmem [resolvable:$true] %s46_s26 }
   0x4   :  { %s9403_s27 = scalar_lea.vmem %s47_s26, 4096  ;;  %p9408_p1 = scmp.lt.s32.totalorder %s47_s26, %s47_s26 }
   0x5   :  { %p9404_p0 = scmp.ne.s32.totalorder %s47_s26, %s9403_s27  ;;  %p9409_p2 = scmp.lt.s32.totalorder %s9403_s27, %s9403_s27 }
   0x7   :  { %p9410_p3 = por %p9409_p2, %p9408_p1 }
   0x9   :  { %p9411_p4 = pnand %p9410_p3, %p9404_p0 }
   0xb   :  { %9414 = shalt.err (!%p9411_p4)
}
   0xc   :  { %s9502_s28 = smov 256   ;;  %s9503_s29 = smov 16  }
   0xd   :  { %52 = dma.hbm_to_vmem [thread:$0]  %s12031_s6, 4096, %s47_s26, [#allocation5], %s9502_s28, %s9502_s28, %s9503_s29  }
   0xe   :  { %s9504_s15 = smov [#allocation7]   ;;  %s9505_s17 = smov [#allocation2]  }
   0xf   :  { %s71_s16 = sshll.u32 %s9504_s15, 4  ;;  %s33_s18 = sshll.u32 %s9505_s17, 4  ;;  %s72_s16 = int_to_ptr.vmem [resolvable:$true] %s71_s16  ;;  %s34_s18 = int_to_ptr.vmem [resolvable:$true] %s33_s18 }
  0x10   :  { %s9423_s19 = scalar_lea.vmem %s72_s16, 64  ;;  %p9428_p6 = scmp.lt.s32.totalorder %s72_s16, %s72_s16 }
  0x11   :  { %p9424_p5 = scmp.ne.s32.totalorder %s72_s16, %s9423_s19  ;;  %p9429_p7 = scmp.lt.s32.totalorder %s9423_s19, %s9423_s19 }
  0x13   :  { %p9430_p8 = por %p9429_p7, %p9428_p6 }
  0x15   :  { %p9431_p9 = pnand %p9430_p8, %p9424_p5 }
  0x17   :  { %9434 = shalt.err (!%p9431_p9)
}
  0x18   :  { %74 = dma.hbm_to_vmem [thread:$0]  %s12034_s9, 64, %s72_s16, [#allocation8]  }
  0x19   :  { %s9443_s22 = scalar_lea.vmem %s34_s18, 128  ;;  %p9448_p11 = scmp.lt.s32.totalorder %s34_s18, %s34_s18 }
  0x1a   :  { %p9444_p10 = scmp.ne.s32.totalorder %s34_s18, %s9443_s22  ;;  %p9449_p12 = scmp.lt.s32.totalorder %s9443_s22, %s9443_s22 }
  0x1c   :  { %p9450_p13 = por %p9449_p12, %p9448_p11 }
  0x1e   :  { %p9451_p0 = pnand %p9450_p13, %p9444_p10 }
  0x20   :  { %9454 = shalt.err (!%p9451_p0)
}
  0x21   :  { %36 = dma.hbm_to_vmem [thread:$0]  %s12028_s3, 128, %s34_s18, [#allocation3]  }
  0x22   :  { %s9506_s24 = smov [#allocation6]   ;;  %s9507_s26 = smov [#allocation9]  }
  0x23   :  { %s59_s25 = sshll.u32 %s9506_s24, 4  ;;  %s82_s27 = sshll.u32 %s9507_s26, 4  ;;  %s60_s25 = int_to_ptr.vmem [resolvable:$true] %s59_s25  ;;  %s83_s27 = int_to_ptr.vmem [resolvable:$true] %s82_s27 }
  0x24   :  { %s9463_s28 = scalar_lea.vmem %s60_s25, 64  ;;  %p9468_p2 = scmp.lt.s32.totalorder %s60_s25, %s60_s25 }
  0x25   :  { %p9464_p1 = scmp.ne.s32.totalorder %s60_s25, %s9463_s28  ;;  %p9469_p3 = scmp.lt.s32.totalorder %s9463_s28, %s9463_s28 }
  0x27   :  { %p9470_p4 = por %p9469_p3, %p9468_p2 }
  0x29   :  { %p9471_p5 = pnand %p9470_p4, %p9464_p1 }
  0x2b   :  { %9474 = shalt.err (!%p9471_p5)
}
  0x2c   :  { %62 = dma.hbm_to_vmem [thread:$0]  %s12032_s7, 64, %s60_s25, [#allocation5]  }
  0x2d   :  { %s9483_s30 = scalar_lea.vmem %s83_s27, 12288  ;;  %p9488_p7 = scmp.lt.s32.totalorder %s83_s27, %s83_s27 }
  0x2e   :  { %p9484_p6 = scmp.ne.s32.totalorder %s83_s27, %s9483_s30  ;;  %p9489_p8 = scmp.lt.s32.totalorder %s9483_s30, %s9483_s30 }
  0x30   :  { %p9490_p9 = por %p9489_p8, %p9488_p7 }
  0x32   :  { %p9491_p10 = pnand %p9490_p9, %p9484_p6 }
  0x34   :  { %9494 = shalt.err (!%p9491_p10)
}
  0x35   :  { %s9508_s3 = smov 192   ;;  %s9509_s14 = smov 12  }
  0x36   :  { %88 = dma.hbm_to_vmem [thread:$0]  %s12036_s11, 12288, %s83_s27, [#allocation8], %s9508_s3, %s9508_s3, %s9509_s14  }
  0x37   :  { %9495 = dma.done.wait [#allocation3], 128  }
  0x38   :  { %9496 = vsyncadd [#allocation3], 4294967168 }
  0x39   :  { %9497 = dma.done.wait [#allocation5], 4160  }
  0x3a   :  { %9498 = vsyncadd [#allocation5], 4294963136 }
  0x3b   :  { %9499 = dma.done.wait [#allocation8], 12352  }
  0x3c   :  { %9500 = vsyncadd [#allocation8], 4294954944  ;;  %v8103_v0 = vld [vmem:[%s12027_s2 + $0x74] ss:$8 sps:$4 sm:$0xff]   ;;  %v8107_v2 = vld [vmem:[%s12027_s2 + $0x70] ss:$8 sps:$4 sm:$0xff]  }
  0x3d   :  { %v8105_v1 = vld [vmem:[%s12027_s2 + $0x174] ss:$8 sps:$4 sm:$0xff]   ;;  %1719 = vmatprep.subr.bf16.mxu0 %v8103_v0  ;;  %v8108_v3 = vld [vmem:[%s12027_s2 + $0x170] ss:$8 sps:$4 sm:$0xff]   ;;  %v8109_v4 = vld [vmem:[%s12027_s2 + $0x64] ss:$8 sps:$4 sm:$0xff]  }
  0x3e   :  { %1760 = vmatprep.subr.bf16.mxu1 %v8105_v1  ;;  %1720 = vmatpush1.bf16.msra.mxu0 %v8107_v2  ;;  %v8111_v5 = vld [vmem:[%s12027_s2 + $0x164] ss:$8 sps:$4 sm:$0xff]   ;;  %v8113_v6 = vld [vmem:[%s12027_s2 + $0x60] ss:$8 sps:$4 sm:$0xff]   ;;  %v8115_v8 = vld [vmem:[%s12027_s2 + $0x54] ss:$8 sps:$4 sm:$0xff]  }
  0x3f   :  { %1761 = vmatpush1.bf16.msra.mxu1 %v8108_v3  ;;  %1721 = vmatprep.subr.bf16.mxu0 %v8109_v4  ;;  %v8114_v7 = vld [vmem:[%s12027_s2 + $0x160] ss:$8 sps:$4 sm:$0xff]   ;;  %v8117_v9 = vld [vmem:[%s12027_s2 + $0x154] ss:$8 sps:$4 sm:$0xff]   ;;  %v8119_v10 = vld [vmem:[%s12027_s2 + $0x50] ss:$8 sps:$4 sm:$0xff]  }
  0x40   :  { %1762 = vmatprep.subr.bf16.mxu1 %v8111_v5  ;;  %v8120_v11 = vld [vmem:[%s12027_s2 + $0x150] ss:$8 sps:$4 sm:$0xff]   ;;  %v8121_v12 = vld [vmem:[%s12027_s2 + $0x44] ss:$8 sps:$4 sm:$0xff]   ;;  %v8125_v14 = vld [vmem:[%s12027_s2 + $0x40] ss:$8 sps:$4 sm:$0xff]  }
  0x41   :  { %v8123_v13 = vld [vmem:[%s12027_s2 + $0x144] ss:$8 sps:$4 sm:$0xff]   ;;  %v8126_v15 = vld [vmem:[%s12027_s2 + $0x140] ss:$8 sps:$4 sm:$0xff]   ;;  %v8127_v16 = vld [vmem:[%s12027_s2 + $0x34] ss:$8 sps:$4 sm:$0xff]  }
  0x42   :  { %1722 = vmatpush1.bf16.msra.mxu0 %v8113_v6  ;;  %v8129_v17 = vld [vmem:[%s12027_s2 + $0x134] ss:$8 sps:$4 sm:$0xff]   ;;  %v8131_v18 = vld [vmem:[%s12027_s2 + $0x30] ss:$8 sps:$4 sm:$0xff]   ;;  %v8133_v20 = vld [vmem:[%s12027_s2 + $0x24] ss:$8 sps:$4 sm:$0xff]  }
  0x43   :  { %1763 = vmatpush1.bf16.msra.mxu1 %v8114_v7  ;;  %1723 = vmatprep.subr.bf16.mxu0 %v8115_v8  ;;  %v8132_v19 = vld [vmem:[%s12027_s2 + $0x130] ss:$8 sps:$4 sm:$0xff]   ;;  %v8135_v21 = vld [vmem:[%s12027_s2 + $0x124] ss:$8 sps:$4 sm:$0xff]   ;;  %v8137_v22 = vld [vmem:[%s12027_s2 + $0x20] ss:$8 sps:$4 sm:$0xff]  }
  0x44   :  { %1764 = vmatprep.subr.bf16.mxu1 %v8117_v9  ;;  %v8138_v23 = vld [vmem:[%s12027_s2 + $0x120] ss:$8 sps:$4 sm:$0xff]   ;;  %v8139_v24 = vld [vmem:[%s12027_s2 + $0x14] ss:$8 sps:$4 sm:$0xff]   ;;  %v8143_v26 = vld [vmem:[%s12027_s2 + $0x10] ss:$8 sps:$4 sm:$0xff]  }
  0x45   :  { %v8141_v25 = vld [vmem:[%s12027_s2 + $0x114] ss:$8 sps:$4 sm:$0xff]   ;;  %v8144_v27 = vld [vmem:[%s12027_s2 + $0x110] ss:$8 sps:$4 sm:$0xff]   ;;  %v8145_v28 = vld [vmem:[%s12027_s2 + $0x4] ss:$8 sps:$4 sm:$0xff]  }
  0x46   :  { %1724 = vmatpush1.bf16.msra.mxu0 %v8119_v10  ;;  %v8147_v29 = vld [vmem:[%s12027_s2 + $0x104] ss:$8 sps:$4 sm:$0xff]   ;;  %v8149_v30 = vld [vmem:[%s12027_s2] ss:$8 sps:$4 sm:$0xff]   ;;  %v8151_v32 = vld [vmem:[%s12027_s2 + $0xf4] ss:$8 sps:$4 sm:$0xff]  }
  0x47   :  { %1765 = vmatpush1.bf16.msra.mxu1 %v8120_v11  ;;  %1725 = vmatprep.subr.bf16.mxu0 %v8121_v12  ;;  %v8150_v31 = vld [vmem:[%s12027_s2 + $0x100] ss:$8 sps:$4 sm:$0xff]   ;;  %v8153_v33 = vld [vmem:[%s12027_s2 + $0x1f4] ss:$8 sps:$4 sm:$0xff]   ;;  %v8155_v34 = vld [vmem:[%s12027_s2 + $0xf0] ss:$8 sps:$4 sm:$0xff]  }
  0x48   :  { %1766 = vmatprep.subr.bf16.mxu1 %v8123_v13  ;;  %v8156_v35 = vld [vmem:[%s12027_s2 + $0x1f0] ss:$8 sps:$4 sm:$0xff]   ;;  %v8157_v36 = vld [vmem:[%s12027_s2 + $0xe4] ss:$8 sps:$4 sm:$0xff]   ;;  %v8161_v38 = vld [vmem:[%s12027_s2 + $0xe0] ss:$8 sps:$4 sm:$0xff]  }
  0x49   :  { %v8159_v37 = vld [vmem:[%s12027_s2 + $0x1e4] ss:$8 sps:$4 sm:$0xff]   ;;  %v8162_v39 = vld [vmem:[%s12027_s2 + $0x1e0] ss:$8 sps:$4 sm:$0xff]   ;;  %v8163_v40 = vld [vmem:[%s12027_s2 + $0xd4] ss:$8 sps:$4 sm:$0xff]  }
  0x4a   :  { %1726 = vmatpush1.bf16.msra.mxu0 %v8125_v14  ;;  %v8165_v41 = vld [vmem:[%s12027_s2 + $0x1d4] ss:$8 sps:$4 sm:$0xff]   ;;  %v8167_v42 = vld [vmem:[%s12027_s2 + $0xd0] ss:$8 sps:$4 sm:$0xff]   ;;  %v8169_v44 = vld [vmem:[%s12027_s2 + $0xc4] ss:$8 sps:$4 sm:$0xff]  }
  0x4b   :  { %1767 = vmatpush1.bf16.msra.mxu1 %v8126_v15  ;;  %1727 = vmatprep.subr.bf16.mxu0 %v8127_v16  ;;  %v8168_v43 = vld [vmem:[%s12027_s2 + $0x1d0] ss:$8 sps:$4 sm:$0xff]   ;;  %v8171_v45 = vld [vmem:[%s12027_s2 + $0x1c4] ss:$8 sps:$4 sm:$0xff]   ;;  %v8173_v49 = vld [vmem:[%s12027_s2 + $0xc0] ss:$8 sps:$4 sm:$0xff]  }
  0x4c   :  { %1768 = vmatprep.subr.bf16.mxu1 %v8129_v17  ;;  %v107_v46 = vld [vmem:[%s12025_s0] sm:$0xff]  ;;  %v108_v48 = vld [vmem:[%s12025_s0 + $0x8] sm:$0xff]  ;;  %v8175_v52 = vld [vmem:[%s12027_s2 + $0xb4] ss:$8 sps:$4 sm:$0xff]   ;;  %vm2124_vm0 = vcmask 1040384   ;;  %vm4063_vm1 = vcmask 1041408  }
  0x4d   :  { %v7123_v47 = vcombine.high %v107_v46, %v107_v46  ;;  %v8174_v50 = vld [vmem:[%s12027_s2 + $0x1c0] ss:$8 sps:$4 sm:$0xff]   ;;  %v7125_v51 = vcombine.high %v108_v48, %v108_v48  ;;  %v8177_v53 = vld [vmem:[%s12027_s2 + $0x1b4] ss:$8 sps:$4 sm:$0xff]   ;;  %v8179_v54 = vld [vmem:[%s12027_s2 + $0xb0] ss:$8 sps:$4 sm:$0xff]   ;;  %v7122_v6 = vcombine.low %v107_v46, %v107_v46  ;;  %v7124_v7 = vcombine.low %v108_v48, %v108_v48 }
  0x4e   :  { %1728 = vmatpush1.bf16.msra.mxu0 %v8131_v18  ;;  %v8180_v55 = vld [vmem:[%s12027_s2 + $0x1b0] ss:$8 sps:$4 sm:$0xff]   ;;  %v8181_v56 = vld [vmem:[%s12027_s2 + $0xa4] ss:$8 sps:$4 sm:$0xff]   ;;  %v8185_v58 = vld [vmem:[%s12027_s2 + $0xa0] ss:$8 sps:$4 sm:$0xff]  }
  0x4f   :  { %1769 = vmatpush1.bf16.msra.mxu1 %v8132_v19  ;;  %1729 = vmatprep.subr.bf16.mxu0 %v8133_v20  ;;  %v8183_v57 = vld [vmem:[%s12027_s2 + $0x1a4] ss:$8 sps:$4 sm:$0xff]   ;;  %v8186_v59 = vld [vmem:[%s12027_s2 + $0x1a0] ss:$8 sps:$4 sm:$0xff]   ;;  %v8187_v60 = vld [vmem:[%s12027_s2 + $0x94] ss:$8 sps:$4 sm:$0xff]  }
  0x50   :  { %1770 = vmatprep.subr.bf16.mxu1 %v8135_v21  ;;  %1751 = vmatprep.mubr.bf16.mxu0 %v7123_v47  ;;  %v8189_v61 = vld [vmem:[%s12027_s2 + $0x194] ss:$8 sps:$4 sm:$0xff]   ;;  %v8191_v62 = vld [vmem:[%s12027_s2 + $0x90] ss:$8 sps:$4 sm:$0xff]   ;;  %v8193_v0 = vld [vmem:[%s12027_s2 + $0x84] ss:$8 sps:$4 sm:$0xff]  }
  0x51   :  { %1792 = vmatprep.mubr.bf16.mxu1 %v7125_v51  ;;  %v8192_v63 = vld [vmem:[%s12027_s2 + $0x190] ss:$8 sps:$4 sm:$0xff]   ;;  %v8195_v1 = vld [vmem:[%s12027_s2 + $0x184] ss:$8 sps:$4 sm:$0xff]   ;;  %v8197_v2 = vld [vmem:[%s12027_s2 + $0x80] ss:$8 sps:$4 sm:$0xff]  }
  0x52   :  { %1730 = vmatpush1.bf16.msra.mxu0 %v8137_v22  ;;  %v8198_v3 = vld [vmem:[%s12027_s2 + $0x180] ss:$8 sps:$4 sm:$0xff]   ;;  %v8205_v4 = vld [vmem:[%s12027_s2 + $0x274] ss:$8 sps:$4 sm:$0xff]   ;;  %v8203_v8 = vld [vmem:[%s12027_s2 + $0x270] ss:$8 sps:$4 sm:$0xff]  }
  0x53   :  { %1771 = vmatpush1.bf16.msra.mxu1 %v8138_v23  ;;  %1731 = vmatprep.subr.bf16.mxu0 %v8139_v24  ;;  %v8208_v5 = vld [vmem:[%s12027_s2 + $0x374] ss:$8 sps:$4 sm:$0xff]   ;;  %v8206_v9 = vld [vmem:[%s12027_s2 + $0x370] ss:$8 sps:$4 sm:$0xff]   ;;  %v8211_v10 = vld [vmem:[%s12027_s2 + $0x264] ss:$8 sps:$4 sm:$0xff]  }
  0x54   :  { %1772 = vmatprep.subr.bf16.mxu1 %v8141_v25  ;;  %v8214_v11 = vld [vmem:[%s12027_s2 + $0x364] ss:$8 sps:$4 sm:$0xff]   ;;  %v8209_v12 = vld [vmem:[%s12027_s2 + $0x260] ss:$8 sps:$4 sm:$0xff]   ;;  %v8217_v14 = vld [vmem:[%s12027_s2 + $0x254] ss:$8 sps:$4 sm:$0xff]  }
  0x55   :  { %v8212_v13 = vld [vmem:[%s12027_s2 + $0x360] ss:$8 sps:$4 sm:$0xff]   ;;  %v8220_v15 = vld [vmem:[%s12027_s2 + $0x354] ss:$8 sps:$4 sm:$0xff]   ;;  %v8215_v16 = vld [vmem:[%s12027_s2 + $0x250] ss:$8 sps:$4 sm:$0xff]  }
  0x56   :  { %1732 = vmatpush1.bf16.msra.mxu0 %v8143_v26  ;;  %v8218_v17 = vld [vmem:[%s12027_s2 + $0x350] ss:$8 sps:$4 sm:$0xff]   ;;  %v8223_v18 = vld [vmem:[%s12027_s2 + $0x244] ss:$8 sps:$4 sm:$0xff]   ;;  %v8221_v20 = vld [vmem:[%s12027_s2 + $0x240] ss:$8 sps:$4 sm:$0xff]  }
  0x57   :  { %1773 = vmatpush1.bf16.msra.mxu1 %v8144_v27  ;;  %1733 = vmatprep.subr.bf16.mxu0 %v8145_v28  ;;  %v8226_v19 = vld [vmem:[%s12027_s2 + $0x344] ss:$8 sps:$4 sm:$0xff]   ;;  %v8224_v21 = vld [vmem:[%s12027_s2 + $0x340] ss:$8 sps:$4 sm:$0xff]   ;;  %v8229_v22 = vld [vmem:[%s12027_s2 + $0x234] ss:$8 sps:$4 sm:$0xff]  }
  0x58   :  { %1774 = vmatprep.subr.bf16.mxu1 %v8147_v29  ;;  %v8232_v23 = vld [vmem:[%s12027_s2 + $0x334] ss:$8 sps:$4 sm:$0xff]   ;;  %v8227_v24 = vld [vmem:[%s12027_s2 + $0x230] ss:$8 sps:$4 sm:$0xff]   ;;  %v8235_v26 = vld [vmem:[%s12027_s2 + $0x224] ss:$8 sps:$4 sm:$0xff]  }
  0x59   :  { %v8230_v25 = vld [vmem:[%s12027_s2 + $0x330] ss:$8 sps:$4 sm:$0xff]   ;;  %v8238_v27 = vld [vmem:[%s12027_s2 + $0x324] ss:$8 sps:$4 sm:$0xff]   ;;  %v8233_v28 = vld [vmem:[%s12027_s2 + $0x220] ss:$8 sps:$4 sm:$0xff]  }
  0x5a   :  { %1734 = vmatpush1.bf16.msra.mxu0 %v8149_v30  ;;  %v8236_v29 = vld [vmem:[%s12027_s2 + $0x320] ss:$8 sps:$4 sm:$0xff]   ;;  %v8241_v30 = vld [vmem:[%s12027_s2 + $0x214] ss:$8 sps:$4 sm:$0xff]   ;;  %v8259_v46 = vld [vmem:[%s12027_s2 + $0x2e4] ss:$8 sps:$4 sm:$0xff]  }
  0x5b   :  { %1775 = vmatpush1.bf16.msra.mxu1 %v8150_v31  ;;  %1735 = vmatprep.subr.bf16.mxu0 %v8151_v32  ;;  %v8244_v31 = vld [vmem:[%s12027_s2 + $0x314] ss:$8 sps:$4 sm:$0xff]   ;;  %v8262_v47 = vld [vmem:[%s12027_s2 + $0x3e4] ss:$8 sps:$4 sm:$0xff]   ;;  %v8257_v48 = vld [vmem:[%s12027_s2 + $0x2e0] ss:$8 sps:$4 sm:$0xff]  }
  0x5c   :  { %1776 = vmatprep.subr.bf16.mxu1 %v8153_v33  ;;  %v9876_v32 = vld [vmem:[%s12025_s0 + $0x10] sm:$0xff]  ;;  %v9881_v33 = vld [vmem:[%s12025_s0 + $0x18] sm:$0xff] }
  0x5d   :  { %v8268_v51 = vld [vmem:[%s12027_s2 + $0x3d4] ss:$8 sps:$4 sm:$0xff]  }
  0x5e   :  { %1736 = vmatpush2.bf16.msra.mxu0 %v8155_v34  ;;  %v8239_v34 = vld [vmem:[%s12027_s2 + $0x210] ss:$8 sps:$4 sm:$0xff]  }
  0x5f   :  { %1777 = vmatpush2.bf16.msra.mxu1 %v8156_v35  ;;  %1737 = vmatprep.subr.bf16.mxu0 %v8157_v36  ;;  %v8242_v35 = vld [vmem:[%s12027_s2 + $0x310] ss:$8 sps:$4 sm:$0xff]   ;;  %v7127_v36 = vcombine.high %v9876_v32, %v9876_v32 }
  0x60   :  { %1778 = vmatprep.subr.bf16.mxu1 %v8159_v37  ;;  %v7129_v37 = vcombine.high %v9881_v33, %v9881_v33 }
  0x62   :  { %1738 = vmatpush2.bf16.msra.mxu0 %v8161_v38  ;;  %v8247_v38 = vld [vmem:[%s12027_s2 + $0x204] ss:$8 sps:$4 sm:$0xff]  }
  0x63   :  { %1779 = vmatpush2.bf16.msra.mxu1 %v8162_v39  ;;  %1739 = vmatprep.subr.bf16.mxu0 %v8163_v40  ;;  %v8250_v39 = vld [vmem:[%s12027_s2 + $0x304] ss:$8 sps:$4 sm:$0xff]   ;;  %v8245_v40 = vld [vmem:[%s12027_s2 + $0x200] ss:$8 sps:$4 sm:$0xff]  }
  0x64   :  { %1780 = vmatprep.subr.bf16.mxu1 %v8165_v41  ;;  %v8248_v41 = vld [vmem:[%s12027_s2 + $0x300] ss:$8 sps:$4 sm:$0xff]  }
  0x66   :  { %1740 = vmatpush2.bf16.msra.mxu0 %v8167_v42  ;;  %v8253_v42 = vld [vmem:[%s12027_s2 + $0x2f4] ss:$8 sps:$4 sm:$0xff]  }
  0x67   :  { %1781 = vmatpush2.bf16.msra.mxu1 %v8168_v43  ;;  %1741 = vmatprep.subr.bf16.mxu0 %v8169_v44  ;;  %v8256_v43 = vld [vmem:[%s12027_s2 + $0x3f4] ss:$8 sps:$4 sm:$0xff]   ;;  %v8251_v44 = vld [vmem:[%s12027_s2 + $0x2f0] ss:$8 sps:$4 sm:$0xff]  }
  0x68   :  { %1782 = vmatprep.subr.bf16.mxu1 %v8171_v45  ;;  %v8254_v45 = vld [vmem:[%s12027_s2 + $0x3f0] ss:$8 sps:$4 sm:$0xff]  }
  0x6a   :  { %1742 = vmatpush2.bf16.msra.mxu0 %v8173_v49  ;;  %v8260_v49 = vld [vmem:[%s12027_s2 + $0x3e0] ss:$8 sps:$4 sm:$0xff]  }
  0x6b   :  { %1783 = vmatpush2.bf16.msra.mxu1 %v8174_v50  ;;  %1743 = vmatprep.subr.bf16.mxu0 %v8175_v52  ;;  %v8265_v50 = vld [vmem:[%s12027_s2 + $0x2d4] ss:$8 sps:$4 sm:$0xff]   ;;  %v8263_v52 = vld [vmem:[%s12027_s2 + $0x2d0] ss:$8 sps:$4 sm:$0xff]  }
  0x6c   :  { %1784 = vmatprep.subr.bf16.mxu1 %v8177_v53  ;;  %v8266_v53 = vld [vmem:[%s12027_s2 + $0x3d0] ss:$8 sps:$4 sm:$0xff]  }
  0x6e   :  { %1744 = vmatpush2.bf16.msra.mxu0 %v8179_v54  ;;  %v8271_v54 = vld [vmem:[%s12027_s2 + $0x2c4] ss:$8 sps:$4 sm:$0xff]  }
  0x6f   :  { %1785 = vmatpush2.bf16.msra.mxu1 %v8180_v55  ;;  %1745 = vmatprep.subr.bf16.mxu0 %v8181_v56  ;;  %v8274_v55 = vld [vmem:[%s12027_s2 + $0x3c4] ss:$8 sps:$4 sm:$0xff]   ;;  %v8269_v56 = vld [vmem:[%s12027_s2 + $0x2c0] ss:$8 sps:$4 sm:$0xff]  }
  0x70   :  { %1786 = vmatprep.subr.bf16.mxu1 %v8183_v57  ;;  %v8272_v57 = vld [vmem:[%s12027_s2 + $0x3c0] ss:$8 sps:$4 sm:$0xff]  }
  0x72   :  { %1746 = vmatpush2.bf16.msra.mxu0 %v8185_v58  ;;  %v8277_v58 = vld [vmem:[%s12027_s2 + $0x2b4] ss:$8 sps:$4 sm:$0xff]  }
  0x73   :  { %1787 = vmatpush2.bf16.msra.mxu1 %v8186_v59  ;;  %1747 = vmatprep.subr.bf16.mxu0 %v8187_v60  ;;  %v8280_v59 = vld [vmem:[%s12027_s2 + $0x3b4] ss:$8 sps:$4 sm:$0xff]   ;;  %v8275_v60 = vld [vmem:[%s12027_s2 + $0x2b0] ss:$8 sps:$4 sm:$0xff]  }
  0x74   :  { %1788 = vmatprep.subr.bf16.mxu1 %v8189_v61  ;;  %v8278_v61 = vld [vmem:[%s12027_s2 + $0x3b0] ss:$8 sps:$4 sm:$0xff]  }
  0x76   :  { %1748 = vmatpush2.bf16.msra.mxu0 %v8191_v62  ;;  %v8283_v62 = vld [vmem:[%s12027_s2 + $0x2a4] ss:$8 sps:$4 sm:$0xff]  }
  0x77   :  { %1789 = vmatpush2.bf16.msra.mxu1 %v8192_v63  ;;  %1749 = vmatprep.subr.bf16.mxu0 %v8193_v0  ;;  %v8286_v63 = vld [vmem:[%s12027_s2 + $0x3a4] ss:$8 sps:$4 sm:$0xff]   ;;  %v8281_v0 = vld [vmem:[%s12027_s2 + $0x2a0] ss:$8 sps:$4 sm:$0xff]  }
  0x78   :  { %1790 = vmatprep.subr.bf16.mxu1 %v8195_v1  ;;  %v8284_v1 = vld [vmem:[%s12027_s2 + $0x3a0] ss:$8 sps:$4 sm:$0xff]  }
  0x7a   :  { %1750 = vmatpush2.bf16.msra.mxu0 %v8197_v2  ;;  %v8289_v2 = vld [vmem:[%s12027_s2 + $0x294] ss:$8 sps:$4 sm:$0xff]  }
  0x7b   :  { %1791 = vmatpush2.bf16.msra.mxu1 %v8198_v3  ;;  %1801 = vmatprep.subr.bf16.mxu0 %v8205_v4  ;;  %v8292_v3 = vld [vmem:[%s12027_s2 + $0x394] ss:$8 sps:$4 sm:$0xff]   ;;  %v8287_v4 = vld [vmem:[%s12027_s2 + $0x290] ss:$8 sps:$4 sm:$0xff]  }
  0x7c   :  { %1842 = vmatprep.subr.bf16.mxu1 %v8208_v5  ;;  %v8290_v5 = vld [vmem:[%s12027_s2 + $0x390] ss:$8 sps:$4 sm:$0xff]  }
  0x7d   :  { %1752 = vmatmul.mubr.bf16.vlgmr.msra.gmra.mxu0 %v7122_v6  ;;  %v8295_v6 = vld [vmem:[%s12027_s2 + $0x284] ss:$8 sps:$4 sm:$0xff]  }
  0x7e   :  { %1793 = vmatmul.mubr.bf16.vlgmr.msra.gmra.mxu1 %v7124_v7  ;;  %1802 = vmatpush1.bf16.msra.mxu0 %v8203_v8  ;;  %v8298_v7 = vld [vmem:[%s12027_s2 + $0x384] ss:$8 sps:$4 sm:$0xff]   ;;  %v8293_v8 = vld [vmem:[%s12027_s2 + $0x280] ss:$8 sps:$4 sm:$0xff]  }
  0x7f   :  { %1843 = vmatpush1.bf16.msra.mxu1 %v8206_v9  ;;  %1803 = vmatprep.subr.bf16.mxu0 %v8211_v10  ;;  %v8296_v9 = vld [vmem:[%s12027_s2 + $0x380] ss:$8 sps:$4 sm:$0xff]   ;;  %v8305_v10 = vld [vmem:[%s12027_s2 + $0x474] ss:$8 sps:$4 sm:$0xff]  }
  0x80   :  { %1844 = vmatprep.subr.bf16.mxu1 %v8214_v11  ;;  %1833 = vmatprep.mubr.bf16.mxu0 %v7127_v36  ;;  %v8308_v11 = vld [vmem:[%s12027_s2 + $0x574] ss:$8 sps:$4 sm:$0xff]   ;;  %v8335_v36 = vld [vmem:[%s12027_s2 + $0x424] ss:$8 sps:$4 sm:$0xff]  }
  0x81   :  { %1874 = vmatprep.mubr.bf16.mxu1 %v7129_v37  ;;  %v8338_v37 = vld [vmem:[%s12027_s2 + $0x524] ss:$8 sps:$4 sm:$0xff]  }
  0x82   :  { %1804 = vmatpush1.bf16.msra.mxu0 %v8209_v12  ;;  %v7126_v12 = vcombine.low %v9876_v32, %v9876_v32  ;;  %v8329_v32 = vld [vmem:[%s12027_s2 + $0x434] ss:$8 sps:$4 sm:$0xff]  }
  0x83   :  { %1845 = vmatpush1.bf16.msra.mxu1 %v8212_v13  ;;  %1805 = vmatprep.subr.bf16.mxu0 %v8217_v14  ;;  %v7128_v13 = vcombine.low %v9881_v33, %v9881_v33  ;;  %v8303_v14 = vld [vmem:[%s12027_s2 + $0x470] ss:$8 sps:$4 sm:$0xff]   ;;  %v8332_v33 = vld [vmem:[%s12027_s2 + $0x534] ss:$8 sps:$4 sm:$0xff]  }
  0x84   :  { %1846 = vmatprep.subr.bf16.mxu1 %v8220_v15  ;;  %v8306_v15 = vld [vmem:[%s12027_s2 + $0x570] ss:$8 sps:$4 sm:$0xff]  }
  0x86   :  { %1806 = vmatpush1.bf16.msra.mxu0 %v8215_v16  ;;  %v8311_v16 = vld [vmem:[%s12027_s2 + $0x464] ss:$8 sps:$4 sm:$0xff]  }
  0x87   :  { %1847 = vmatpush1.bf16.msra.mxu1 %v8218_v17  ;;  %1807 = vmatprep.subr.bf16.mxu0 %v8223_v18  ;;  %v8314_v17 = vld [vmem:[%s12027_s2 + $0x564] ss:$8 sps:$4 sm:$0xff]  }
  0x88   :  { %1848 = vmatprep.subr.bf16.mxu1 %v8226_v19  ;;  %v10026_v18 = vld [vmem:[%s12025_s0 + $0x20] sm:$0xff]  ;;  %v10031_v19 = vld [vmem:[%s12025_s0 + $0x28] sm:$0xff] }
  0x8a   :  { %1808 = vmatpush1.bf16.msra.mxu0 %v8221_v20  ;;  %v7131_v20 = vcombine.high %v10026_v18, %v10026_v18 }
  0x8b   :  { %1849 = vmatpush1.bf16.msra.mxu1 %v8224_v21  ;;  %1809 = vmatprep.subr.bf16.mxu0 %v8229_v22  ;;  %v7133_v21 = vcombine.high %v10031_v19, %v10031_v19  ;;  %v8309_v22 = vld [vmem:[%s12027_s2 + $0x460] ss:$8 sps:$4 sm:$0xff]  }
  0x8c   :  { %1850 = vmatprep.subr.bf16.mxu1 %v8232_v23  ;;  %v8312_v23 = vld [vmem:[%s12027_s2 + $0x560] ss:$8 sps:$4 sm:$0xff]  }
  0x8e   :  { %1810 = vmatpush1.bf16.msra.mxu0 %v8227_v24  ;;  %v8317_v24 = vld [vmem:[%s12027_s2 + $0x454] ss:$8 sps:$4 sm:$0xff]  }
  0x8f   :  { %1851 = vmatpush1.bf16.msra.mxu1 %v8230_v25  ;;  %1811 = vmatprep.subr.bf16.mxu0 %v8235_v26  ;;  %v8320_v25 = vld [vmem:[%s12027_s2 + $0x554] ss:$8 sps:$4 sm:$0xff]   ;;  %v8315_v26 = vld [vmem:[%s12027_s2 + $0x450] ss:$8 sps:$4 sm:$0xff]  }
  0x90   :  { %1852 = vmatprep.subr.bf16.mxu1 %v8238_v27  ;;  %v8318_v27 = vld [vmem:[%s12027_s2 + $0x550] ss:$8 sps:$4 sm:$0xff]  }
  0x92   :  { %1812 = vmatpush1.bf16.msra.mxu0 %v8233_v28  ;;  %v8323_v28 = vld [vmem:[%s12027_s2 + $0x444] ss:$8 sps:$4 sm:$0xff]  }
  0x93   :  { %1853 = vmatpush1.bf16.msra.mxu1 %v8236_v29  ;;  %1813 = vmatprep.subr.bf16.mxu0 %v8241_v30  ;;  %v8326_v29 = vld [vmem:[%s12027_s2 + $0x544] ss:$8 sps:$4 sm:$0xff]   ;;  %v8321_v30 = vld [vmem:[%s12027_s2 + $0x440] ss:$8 sps:$4 sm:$0xff]  }
  0x94   :  { %1854 = vmatprep.subr.bf16.mxu1 %v8244_v31  ;;  %v8324_v31 = vld [vmem:[%s12027_s2 + $0x540] ss:$8 sps:$4 sm:$0xff]  }
  0x96   :  { %1814 = vmatpush1.bf16.msra.mxu0 %v8239_v34  ;;  %v8327_v34 = vld [vmem:[%s12027_s2 + $0x430] ss:$8 sps:$4 sm:$0xff]  }
  0x97   :  { %1855 = vmatpush1.bf16.msra.mxu1 %v8242_v35  ;;  %1815 = vmatprep.subr.bf16.mxu0 %v8247_v38  ;;  %v8330_v35 = vld [vmem:[%s12027_s2 + $0x530] ss:$8 sps:$4 sm:$0xff]   ;;  %v8333_v38 = vld [vmem:[%s12027_s2 + $0x420] ss:$8 sps:$4 sm:$0xff]  }
  0x98   :  { %1856 = vmatprep.subr.bf16.mxu1 %v8250_v39  ;;  %v8336_v39 = vld [vmem:[%s12027_s2 + $0x520] ss:$8 sps:$4 sm:$0xff]  }
  0x9a   :  { %1816 = vmatpush1.bf16.msra.mxu0 %v8245_v40  ;;  %v8341_v40 = vld [vmem:[%s12027_s2 + $0x414] ss:$8 sps:$4 sm:$0xff]  }
  0x9b   :  { %1857 = vmatpush1.bf16.msra.mxu1 %v8248_v41  ;;  %1817 = vmatprep.subr.bf16.mxu0 %v8253_v42  ;;  %v8344_v41 = vld [vmem:[%s12027_s2 + $0x514] ss:$8 sps:$4 sm:$0xff]   ;;  %v8339_v42 = vld [vmem:[%s12027_s2 + $0x410] ss:$8 sps:$4 sm:$0xff]  }
  0x9c   :  { %1858 = vmatprep.subr.bf16.mxu1 %v8256_v43  ;;  %v8342_v43 = vld [vmem:[%s12027_s2 + $0x510] ss:$8 sps:$4 sm:$0xff]  }
  0x9e   :  { %1818 = vmatpush2.bf16.msra.mxu0 %v8251_v44  ;;  %v8347_v44 = vld [vmem:[%s12027_s2 + $0x404] ss:$8 sps:$4 sm:$0xff]  }
  0x9f   :  { %1859 = vmatpush2.bf16.msra.mxu1 %v8254_v45  ;;  %1819 = vmatprep.subr.bf16.mxu0 %v8259_v46  ;;  %v8350_v45 = vld [vmem:[%s12027_s2 + $0x504] ss:$8 sps:$4 sm:$0xff]   ;;  %v8345_v46 = vld [vmem:[%s12027_s2 + $0x400] ss:$8 sps:$4 sm:$0xff]  }
  0xa0   :  { %1860 = vmatprep.subr.bf16.mxu1 %v8262_v47  ;;  %v8348_v47 = vld [vmem:[%s12027_s2 + $0x500] ss:$8 sps:$4 sm:$0xff]  }
  0xa2   :  { %1820 = vmatpush2.bf16.msra.mxu0 %v8257_v48  ;;  %v8353_v48 = vld [vmem:[%s12027_s2 + $0x4f4] ss:$8 sps:$4 sm:$0xff]  }
  0xa3   :  { %1861 = vmatpush2.bf16.msra.mxu1 %v8260_v49  ;;  %1821 = vmatprep.subr.bf16.mxu0 %v8265_v50  ;;  %v8356_v49 = vld [vmem:[%s12027_s2 + $0x5f4] ss:$8 sps:$4 sm:$0xff]   ;;  %v8351_v50 = vld [vmem:[%s12027_s2 + $0x4f0] ss:$8 sps:$4 sm:$0xff]  }
  0xa4   :  { %1862 = vmatprep.subr.bf16.mxu1 %v8268_v51  ;;  %v8354_v51 = vld [vmem:[%s12027_s2 + $0x5f0] ss:$8 sps:$4 sm:$0xff]  }
  0xa6   :  { %1822 = vmatpush2.bf16.msra.mxu0 %v8263_v52  ;;  %v8359_v52 = vld [vmem:[%s12027_s2 + $0x4e4] ss:$8 sps:$4 sm:$0xff]  }
  0xa7   :  { %1863 = vmatpush2.bf16.msra.mxu1 %v8266_v53  ;;  %1823 = vmatprep.subr.bf16.mxu0 %v8271_v54  ;;  %v8362_v53 = vld [vmem:[%s12027_s2 + $0x5e4] ss:$8 sps:$4 sm:$0xff]   ;;  %v8357_v54 = vld [vmem:[%s12027_s2 + $0x4e0] ss:$8 sps:$4 sm:$0xff]  }
  0xa8   :  { %1864 = vmatprep.subr.bf16.mxu1 %v8274_v55  ;;  %v8360_v55 = vld [vmem:[%s12027_s2 + $0x5e0] ss:$8 sps:$4 sm:$0xff]  }
  0xaa   :  { %1824 = vmatpush2.bf16.msra.mxu0 %v8269_v56  ;;  %v8365_v56 = vld [vmem:[%s12027_s2 + $0x4d4] ss:$8 sps:$4 sm:$0xff]  }
  0xab   :  { %1865 = vmatpush2.bf16.msra.mxu1 %v8272_v57  ;;  %1825 = vmatprep.subr.bf16.mxu0 %v8277_v58  ;;  %v8368_v57 = vld [vmem:[%s12027_s2 + $0x5d4] ss:$8 sps:$4 sm:$0xff]   ;;  %v8363_v58 = vld [vmem:[%s12027_s2 + $0x4d0] ss:$8 sps:$4 sm:$0xff]  }
  0xac   :  { %1866 = vmatprep.subr.bf16.mxu1 %v8280_v59  ;;  %v8366_v59 = vld [vmem:[%s12027_s2 + $0x5d0] ss:$8 sps:$4 sm:$0xff]  }
  0xae   :  { %1826 = vmatpush2.bf16.msra.mxu0 %v8275_v60  ;;  %v8371_v60 = vld [vmem:[%s12027_s2 + $0x4c4] ss:$8 sps:$4 sm:$0xff]  }
  0xaf   :  { %1867 = vmatpush2.bf16.msra.mxu1 %v8278_v61  ;;  %1827 = vmatprep.subr.bf16.mxu0 %v8283_v62  ;;  %v8374_v61 = vld [vmem:[%s12027_s2 + $0x5c4] ss:$8 sps:$4 sm:$0xff]   ;;  %v8369_v62 = vld [vmem:[%s12027_s2 + $0x4c0] ss:$8 sps:$4 sm:$0xff]  }
  0xb0   :  { %1868 = vmatprep.subr.bf16.mxu1 %v8286_v63  ;;  %v8372_v63 = vld [vmem:[%s12027_s2 + $0x5c0] ss:$8 sps:$4 sm:$0xff]  }
  0xb2   :  { %1828 = vmatpush2.bf16.msra.mxu0 %v8281_v0  ;;  %v8377_v0 = vld [vmem:[%s12027_s2 + $0x4b4] ss:$8 sps:$4 sm:$0xff]  }
  0xb3   :  { %1869 = vmatpush2.bf16.msra.mxu1 %v8284_v1  ;;  %1829 = vmatprep.subr.bf16.mxu0 %v8289_v2  ;;  %v8380_v1 = vld [vmem:[%s12027_s2 + $0x5b4] ss:$8 sps:$4 sm:$0xff]   ;;  %v8375_v2 = vld [vmem:[%s12027_s2 + $0x4b0] ss:$8 sps:$4 sm:$0xff]  }
  0xb4   :  { %1870 = vmatprep.subr.bf16.mxu1 %v8292_v3  ;;  %v8378_v3 = vld [vmem:[%s12027_s2 + $0x5b0] ss:$8 sps:$4 sm:$0xff]  }
  0xb6   :  { %1830 = vmatpush2.bf16.msra.mxu0 %v8287_v4  ;;  %v8383_v4 = vld [vmem:[%s12027_s2 + $0x4a4] ss:$8 sps:$4 sm:$0xff]  }
  0xb7   :  { %1871 = vmatpush2.bf16.msra.mxu1 %v8290_v5  ;;  %1831 = vmatprep.subr.bf16.mxu0 %v8295_v6  ;;  %v8386_v5 = vld [vmem:[%s12027_s2 + $0x5a4] ss:$8 sps:$4 sm:$0xff]   ;;  %v8381_v6 = vld [vmem:[%s12027_s2 + $0x4a0] ss:$8 sps:$4 sm:$0xff]  }
  0xb8   :  { %1872 = vmatprep.subr.bf16.mxu1 %v8298_v7  ;;  %v8384_v7 = vld [vmem:[%s12027_s2 + $0x5a0] ss:$8 sps:$4 sm:$0xff]  }
  0xba   :  { %1832 = vmatpush2.bf16.msra.mxu0 %v8293_v8  ;;  %v8389_v8 = vld [vmem:[%s12027_s2 + $0x494] ss:$8 sps:$4 sm:$0xff]  }
  0xbb   :  { %1873 = vmatpush2.bf16.msra.mxu1 %v8296_v9  ;;  %1883 = vmatprep.subr.bf16.mxu0 %v8305_v10  ;;  %v8392_v9 = vld [vmem:[%s12027_s2 + $0x594] ss:$8 sps:$4 sm:$0xff]   ;;  %v8387_v10 = vld [vmem:[%s12027_s2 + $0x490] ss:$8 sps:$4 sm:$0xff]  }
  0xbc   :  { %1924 = vmatprep.subr.bf16.mxu1 %v8308_v11  ;;  %v8390_v11 = vld [vmem:[%s12027_s2 + $0x590] ss:$8 sps:$4 sm:$0xff]  }
  0xbd   :  { %1834 = vmatmul.mubr.bf16.vlgmr.msra.gmra.mxu0 %v7126_v12  ;;  %v8395_v12 = vld [vmem:[%s12027_s2 + $0x484] ss:$8 sps:$4 sm:$0xff]  }
  0xbe   :  { %1875 = vmatmul.mubr.bf16.vlgmr.msra.gmra.mxu1 %v7128_v13  ;;  %1884 = vmatpush1.bf16.msra.mxu0 %v8303_v14  ;;  %v8398_v13 = vld [vmem:[%s12027_s2 + $0x584] ss:$8 sps:$4 sm:$0xff]   ;;  %v8393_v14 = vld [vmem:[%s12027_s2 + $0x480] ss:$8 sps:$4 sm:$0xff]  }
  0xbf   :  { %1925 = vmatpush1.bf16.msra.mxu1 %v8306_v15  ;;  %1885 = vmatprep.subr.bf16.mxu0 %v8311_v16  ;;  %v8396_v15 = vld [vmem:[%s12027_s2 + $0x580] ss:$8 sps:$4 sm:$0xff]   ;;  %v8405_v16 = vld [vmem:[%s12027_s2 + $0x674] ss:$8 sps:$4 sm:$0xff]  }
  0xc0   :  { %1926 = vmatprep.subr.bf16.mxu1 %v8314_v17  ;;  %1915 = vmatprep.mubr.bf16.mxu0 %v7131_v20  ;;  %v8408_v17 = vld [vmem:[%s12027_s2 + $0x774] ss:$8 sps:$4 sm:$0xff]  }
  0xc1   :  { %1956 = vmatprep.mubr.bf16.mxu1 %v7133_v21  ;;  %v10220_v20 = vld [vmem:[%s12025_s0 + $0x30] sm:$0xff]  ;;  %v10225_v21 = vld [vmem:[%s12025_s0 + $0x38] sm:$0xff] }
  0xc2   :  { %1886 = vmatpush1.bf16.msra.mxu0 %v8309_v22  ;;  %v8403_v22 = vld [vmem:[%s12027_s2 + $0x670] ss:$8 sps:$4 sm:$0xff]  }
  0xc3   :  { %1927 = vmatpush1.bf16.msra.mxu1 %v8312_v23  ;;  %1887 = vmatprep.subr.bf16.mxu0 %v8317_v24  ;;  %v8406_v23 = vld [vmem:[%s12027_s2 + $0x770] ss:$8 sps:$4 sm:$0xff]   ;;  %v7130_v24 = vcombine.low %v10026_v18, %v10026_v18  ;;  %v8412_v18 = vld [vmem:[%s12027_s2 + $0x760] ss:$8 sps:$4 sm:$0xff]  }
  0xc4   :  { %1928 = vmatprep.subr.bf16.mxu1 %v8320_v25  ;;  %v7132_v25 = vcombine.low %v10031_v19, %v10031_v19  ;;  %v7135_v19 = vcombine.high %v10220_v20, %v10220_v20 }
  0xc6   :  { %1888 = vmatpush1.bf16.msra.mxu0 %v8315_v26  ;;  %v8411_v26 = vld [vmem:[%s12027_s2 + $0x664] ss:$8 sps:$4 sm:$0xff]  }
  0xc7   :  { %1929 = vmatpush1.bf16.msra.mxu1 %v8318_v27  ;;  %1889 = vmatprep.subr.bf16.mxu0 %v8323_v28  ;;  %v8414_v27 = vld [vmem:[%s12027_s2 + $0x764] ss:$8 sps:$4 sm:$0xff]   ;;  %v8409_v28 = vld [vmem:[%s12027_s2 + $0x660] ss:$8 sps:$4 sm:$0xff]  }
  0xc8   :  { %1930 = vmatprep.subr.bf16.mxu1 %v8326_v29  ;;  %v7137_v29 = vcombine.high %v10225_v21, %v10225_v21 }
  0xca   :  { %1890 = vmatpush1.bf16.msra.mxu0 %v8321_v30  ;;  %v8417_v30 = vld [vmem:[%s12027_s2 + $0x654] ss:$8 sps:$4 sm:$0xff]  }
  0xcb   :  { %1931 = vmatpush1.bf16.msra.mxu1 %v8324_v31  ;;  %1891 = vmatprep.subr.bf16.mxu0 %v8329_v32  ;;  %v8420_v31 = vld [vmem:[%s12027_s2 + $0x754] ss:$8 sps:$4 sm:$0xff]   ;;  %v8415_v32 = vld [vmem:[%s12027_s2 + $0x650] ss:$8 sps:$4 sm:$0xff]  }
  0xcc   :  { %1932 = vmatprep.subr.bf16.mxu1 %v8332_v33  ;;  %v8418_v33 = vld [vmem:[%s12027_s2 + $0x750] ss:$8 sps:$4 sm:$0xff]  }
  0xce   :  { %1892 = vmatpush1.bf16.msra.mxu0 %v8327_v34  ;;  %v8423_v34 = vld [vmem:[%s12027_s2 + $0x644] ss:$8 sps:$4 sm:$0xff]  }
  0xcf   :  { %1933 = vmatpush1.bf16.msra.mxu1 %v8330_v35  ;;  %1893 = vmatprep.subr.bf16.mxu0 %v8335_v36  ;;  %v8426_v35 = vld [vmem:[%s12027_s2 + $0x744] ss:$8 sps:$4 sm:$0xff]   ;;  %v8421_v36 = vld [vmem:[%s12027_s2 + $0x640] ss:$8 sps:$4 sm:$0xff]  }
  0xd0   :  { %1934 = vmatprep.subr.bf16.mxu1 %v8338_v37  ;;  %v8424_v37 = vld [vmem:[%s12027_s2 + $0x740] ss:$8 sps:$4 sm:$0xff]  }
  0xd2   :  { %1894 = vmatpush1.bf16.msra.mxu0 %v8333_v38  ;;  %v8429_v38 = vld [vmem:[%s12027_s2 + $0x634] ss:$8 sps:$4 sm:$0xff]  }
  0xd3   :  { %1935 = vmatpush1.bf16.msra.mxu1 %v8336_v39  ;;  %1895 = vmatprep.subr.bf16.mxu0 %v8341_v40  ;;  %v8432_v39 = vld [vmem:[%s12027_s2 + $0x734] ss:$8 sps:$4 sm:$0xff]   ;;  %v8427_v40 = vld [vmem:[%s12027_s2 + $0x630] ss:$8 sps:$4 sm:$0xff]  }
  0xd4   :  { %1936 = vmatprep.subr.bf16.mxu1 %v8344_v41  ;;  %v8430_v41 = vld [vmem:[%s12027_s2 + $0x730] ss:$8 sps:$4 sm:$0xff]  }
  0xd6   :  { %1896 = vmatpush1.bf16.msra.mxu0 %v8339_v42  ;;  %v8435_v42 = vld [vmem:[%s12027_s2 + $0x624] ss:$8 sps:$4 sm:$0xff]  }
  0xd7   :  { %1937 = vmatpush1.bf16.msra.mxu1 %v8342_v43  ;;  %1897 = vmatprep.subr.bf16.mxu0 %v8347_v44  ;;  %v8438_v43 = vld [vmem:[%s12027_s2 + $0x724] ss:$8 sps:$4 sm:$0xff]   ;;  %v8433_v44 = vld [vmem:[%s12027_s2 + $0x620] ss:$8 sps:$4 sm:$0xff]  }
  0xd8   :  { %1938 = vmatprep.subr.bf16.mxu1 %v8350_v45  ;;  %v8436_v45 = vld [vmem:[%s12027_s2 + $0x720] ss:$8 sps:$4 sm:$0xff]  }
  0xda   :  { %1898 = vmatpush1.bf16.msra.mxu0 %v8345_v46  ;;  %v8441_v46 = vld [vmem:[%s12027_s2 + $0x614] ss:$8 sps:$4 sm:$0xff]  }
  0xdb   :  { %1939 = vmatpush1.bf16.msra.mxu1 %v8348_v47  ;;  %1899 = vmatprep.subr.bf16.mxu0 %v8353_v48  ;;  %v8444_v47 = vld [vmem:[%s12027_s2 + $0x714] ss:$8 sps:$4 sm:$0xff]   ;;  %v8439_v48 = vld [vmem:[%s12027_s2 + $0x610] ss:$8 sps:$4 sm:$0xff]  }
  0xdc   :  { %1940 = vmatprep.subr.bf16.mxu1 %v8356_v49  ;;  %v8442_v49 = vld [vmem:[%s12027_s2 + $0x710] ss:$8 sps:$4 sm:$0xff]  }
  0xde   :  { %1900 = vmatpush2.bf16.msra.mxu0 %v8351_v50  ;;  %v8447_v50 = vld [vmem:[%s12027_s2 + $0x604] ss:$8 sps:$4 sm:$0xff]  }
  0xdf   :  { %1941 = vmatpush2.bf16.msra.mxu1 %v8354_v51  ;;  %1901 = vmatprep.subr.bf16.mxu0 %v8359_v52  ;;  %v8450_v51 = vld [vmem:[%s12027_s2 + $0x704] ss:$8 sps:$4 sm:$0xff]   ;;  %v8445_v52 = vld [vmem:[%s12027_s2 + $0x600] ss:$8 sps:$4 sm:$0xff]  }
  0xe0   :  { %1942 = vmatprep.subr.bf16.mxu1 %v8362_v53  ;;  %v8448_v53 = vld [vmem:[%s12027_s2 + $0x700] ss:$8 sps:$4 sm:$0xff]  }
  0xe2   :  { %1902 = vmatpush2.bf16.msra.mxu0 %v8357_v54  ;;  %v8453_v54 = vld [vmem:[%s12027_s2 + $0x6f4] ss:$8 sps:$4 sm:$0xff]  }
  0xe3   :  { %1943 = vmatpush2.bf16.msra.mxu1 %v8360_v55  ;;  %1903 = vmatprep.subr.bf16.mxu0 %v8365_v56  ;;  %v8456_v55 = vld [vmem:[%s12027_s2 + $0x7f4] ss:$8 sps:$4 sm:$0xff]   ;;  %v8451_v56 = vld [vmem:[%s12027_s2 + $0x6f0] ss:$8 sps:$4 sm:$0xff]  }
  0xe4   :  { %1944 = vmatprep.subr.bf16.mxu1 %v8368_v57  ;;  %v8454_v57 = vld [vmem:[%s12027_s2 + $0x7f0] ss:$8 sps:$4 sm:$0xff]  }
  0xe6   :  { %1904 = vmatpush2.bf16.msra.mxu0 %v8363_v58  ;;  %v8459_v58 = vld [vmem:[%s12027_s2 + $0x6e4] ss:$8 sps:$4 sm:$0xff]  }
  0xe7   :  { %1945 = vmatpush2.bf16.msra.mxu1 %v8366_v59  ;;  %1905 = vmatprep.subr.bf16.mxu0 %v8371_v60  ;;  %v8462_v59 = vld [vmem:[%s12027_s2 + $0x7e4] ss:$8 sps:$4 sm:$0xff]   ;;  %v8457_v60 = vld [vmem:[%s12027_s2 + $0x6e0] ss:$8 sps:$4 sm:$0xff]  }
  0xe8   :  { %1946 = vmatprep.subr.bf16.mxu1 %v8374_v61  ;;  %v8460_v61 = vld [vmem:[%s12027_s2 + $0x7e0] ss:$8 sps:$4 sm:$0xff]  }
  0xea   :  { %1906 = vmatpush2.bf16.msra.mxu0 %v8369_v62  ;;  %v8465_v62 = vld [vmem:[%s12027_s2 + $0x6d4] ss:$8 sps:$4 sm:$0xff]  }
  0xeb   :  { %1947 = vmatpush2.bf16.msra.mxu1 %v8372_v63  ;;  %1907 = vmatprep.subr.bf16.mxu0 %v8377_v0  ;;  %v8468_v63 = vld [vmem:[%s12027_s2 + $0x7d4] ss:$8 sps:$4 sm:$0xff]   ;;  %v8463_v0 = vld [vmem:[%s12027_s2 + $0x6d0] ss:$8 sps:$4 sm:$0xff]  }
  0xec   :  { %1948 = vmatprep.subr.bf16.mxu1 %v8380_v1  ;;  %v8466_v1 = vld [vmem:[%s12027_s2 + $0x7d0] ss:$8 sps:$4 sm:$0xff]  }
  0xee   :  { %1908 = vmatpush2.bf16.msra.mxu0 %v8375_v2  ;;  %v8471_v2 = vld [vmem:[%s12027_s2 + $0x6c4] ss:$8 sps:$4 sm:$0xff]  }
  0xef   :  { %1949 = vmatpush2.bf16.msra.mxu1 %v8378_v3  ;;  %1909 = vmatprep.subr.bf16.mxu0 %v8383_v4  ;;  %v8474_v3 = vld [vmem:[%s12027_s2 + $0x7c4] ss:$8 sps:$4 sm:$0xff]   ;;  %v8469_v4 = vld [vmem:[%s12027_s2 + $0x6c0] ss:$8 sps:$4 sm:$0xff]  }
  0xf0   :  { %1950 = vmatprep.subr.bf16.mxu1 %v8386_v5  ;;  %v8472_v5 = vld [vmem:[%s12027_s2 + $0x7c0] ss:$8 sps:$4 sm:$0xff]  }
  0xf2   :  { %1910 = vmatpush2.bf16.msra.mxu0 %v8381_v6  ;;  %v8477_v6 = vld [vmem:[%s12027_s2 + $0x6b4] ss:$8 sps:$4 sm:$0xff]  }
  0xf3   :  { %1951 = vmatpush2.bf16.msra.mxu1 %v8384_v7  ;;  %1911 = vmatprep.subr.bf16.mxu0 %v8389_v8  ;;  %v8480_v7 = vld [vmem:[%s12027_s2 + $0x7b4] ss:$8 sps:$4 sm:$0xff]   ;;  %v8475_v8 = vld [vmem:[%s12027_s2 + $0x6b0] ss:$8 sps:$4 sm:$0xff]  }
  0xf4   :  { %1952 = vmatprep.subr.bf16.mxu1 %v8392_v9  ;;  %v8478_v9 = vld [vmem:[%s12027_s2 + $0x7b0] ss:$8 sps:$4 sm:$0xff]  }
  0xf6   :  { %1912 = vmatpush2.bf16.msra.mxu0 %v8387_v10  ;;  %v8483_v10 = vld [vmem:[%s12027_s2 + $0x6a4] ss:$8 sps:$4 sm:$0xff]  }
  0xf7   :  { %1953 = vmatpush2.bf16.msra.mxu1 %v8390_v11  ;;  %1913 = vmatprep.subr.bf16.mxu0 %v8395_v12  ;;  %v8486_v11 = vld [vmem:[%s12027_s2 + $0x7a4] ss:$8 sps:$4 sm:$0xff]   ;;  %v8481_v12 = vld [vmem:[%s12027_s2 + $0x6a0] ss:$8 sps:$4 sm:$0xff]  }
  0xf8   :  { %1954 = vmatprep.subr.bf16.mxu1 %v8398_v13  ;;  %v8484_v13 = vld [vmem:[%s12027_s2 + $0x7a0] ss:$8 sps:$4 sm:$0xff]  }
  0xfa   :  { %1914 = vmatpush2.bf16.msra.mxu0 %v8393_v14  ;;  %v8489_v14 = vld [vmem:[%s12027_s2 + $0x694] ss:$8 sps:$4 sm:$0xff]  }
  0xfb   :  { %1955 = vmatpush2.bf16.msra.mxu1 %v8396_v15  ;;  %1965 = vmatprep.subr.bf16.mxu0 %v8405_v16  ;;  %v8492_v15 = vld [vmem:[%s12027_s2 + $0x794] ss:$8 sps:$4 sm:$0xff]   ;;  %v373_v16 = vlaneseq }
  0xfc   :  { %2006 = vmatprep.subr.bf16.mxu1 %v8408_v17  ;;  %v8487_v17 = vld [vmem:[%s12027_s2 + $0x690] ss:$8 sps:$4 sm:$0xff]  }
  0xfd   :  { %1916 = vmatmul.mubr.bf16.vlgmr.msra.gmra.mxu0 %v7130_v24  ;;  %v8498_v24 = vld [vmem:[%s12027_s2 + $0x784] ss:$8 sps:$4 sm:$0xff]  }
  0xfe   :  { %1957 = vmatmul.mubr.bf16.vlgmr.msra.gmra.mxu1 %v7132_v25  ;;  %1966 = vmatpush1.bf16.msra.mxu0 %v8403_v22  ;;  %v8490_v22 = vld [vmem:[%s12027_s2 + $0x790] ss:$8 sps:$4 sm:$0xff]   ;;  %v10415_v25 = vshrl.u32 %v373_v16, 7  ;;  %v8544_v16 = vld [vmem:[%s12029_s4 + $0x22c] ss:$16 sps:$4 sm:$0xff]  }
  0xff   :  { %2007 = vmatpush1.bf16.msra.mxu1 %v8406_v23  ;;  %1967 = vmatprep.subr.bf16.mxu0 %v8411_v26  ;;  %v8495_v23 = vld [vmem:[%s12027_s2 + $0x684] ss:$8 sps:$4 sm:$0xff]   ;;  %v8493_v26 = vld [vmem:[%s12027_s2 + $0x680] ss:$8 sps:$4 sm:$0xff]  }
 0x100   :  { %2008 = vmatprep.subr.bf16.mxu1 %v8414_v27  ;;  %1997 = vmatprep.mubr.bf16.mxu0 %v7135_v19  ;;  %v8496_v27 = vld [vmem:[%s12027_s2 + $0x780] ss:$8 sps:$4 sm:$0xff]   ;;  %v10427_v19 = vsub.s32 1, %v10415_v25 }
 0x101   :  { %2038 = vmatprep.mubr.bf16.mxu1 %v7137_v29  ;;  %v7134_v29 = vcombine.low %v10220_v20, %v10220_v20 }
 0x102   :  { %1968 = vmatpush1.bf16.msra.mxu0 %v8409_v28  ;;  %v371_v28 = vld [vmem:[#allocation2] ss:$4 sm:$0x3] }
 0x103   :  { %2009 = vmatpush1.bf16.msra.mxu1 %v8412_v18  ;;  %1969 = vmatprep.subr.bf16.mxu0 %v8417_v30  ;;  %v10424_v18 = vsub.s32 0, %v10415_v25  ;;  %v7136_v30 = vcombine.low %v10225_v21, %v10225_v21 }
 0x104   :  { %2010 = vmatprep.subr.bf16.mxu1 %v8420_v31 }
 0x105   :  { %v376_v31 = vrot.slane %v371_v28, %v10424_v18 }
 0x106   :  { %1970 = vmatpush1.bf16.msra.mxu0 %v8415_v32  ;;  %v380_v32 = vrot.slane %v371_v28, %v10427_v19  ;;  %v8553_v28 = vld [vmem:[%s12029_s4 + $0x3e4] ss:$16 sps:$4 sm:$0xff]  }
 0x107   :  { %2011 = vmatpush1.bf16.msra.mxu1 %v8418_v33  ;;  %1971 = vmatprep.subr.bf16.mxu0 %v8423_v34 }
 0x108   :  { %2012 = vmatprep.subr.bf16.mxu1 %v8426_v35 }
 0x10a   :  { %1972 = vmatpush1.bf16.msra.mxu0 %v8421_v36 }
 0x10b   :  { %2013 = vmatpush1.bf16.msra.mxu1 %v8424_v37  ;;  %1973 = vmatprep.subr.bf16.mxu0 %v8429_v38 }
 0x10c   :  { %2014 = vmatprep.subr.bf16.mxu1 %v8432_v39 }
 0x10e   :  { %1974 = vmatpush1.bf16.msra.mxu0 %v8427_v40 }
 0x10f   :  { %2015 = vmatpush1.bf16.msra.mxu1 %v8430_v41  ;;  %1975 = vmatprep.subr.bf16.mxu0 %v8435_v42 }
 0x110   :  { %2016 = vmatprep.subr.bf16.mxu1 %v8438_v43 }
 0x112   :  { %1976 = vmatpush1.bf16.msra.mxu0 %v8433_v44 }
 0x113   :  { %2017 = vmatpush1.bf16.msra.mxu1 %v8436_v45  ;;  %1977 = vmatprep.subr.bf16.mxu0 %v8441_v46 }
 0x114   :  { %2018 = vmatprep.subr.bf16.mxu1 %v8444_v47 }
 0x116   :  { %1978 = vmatpush1.bf16.msra.mxu0 %v8439_v48  ;;  %v8505_v48 = vld [vmem:[%s12029_s4 + $0x2e4] ss:$16 sps:$4 sm:$0xff]  }
 0x117   :  { %2019 = vmatpush1.bf16.msra.mxu1 %v8442_v49  ;;  %1979 = vmatprep.subr.bf16.mxu0 %v8447_v50  ;;  %v8508_v49 = vld [vmem:[%s12029_s4 + $0x2ec] ss:$16 sps:$4 sm:$0xff]  }
 0x118   :  { %2020 = vmatprep.subr.bf16.mxu1 %v8450_v51 }
 0x11a   :  { %1980 = vmatpush1.bf16.msra.mxu0 %v8445_v52 }
 0x11b   :  { %2021 = vmatpush1.bf16.msra.mxu1 %v8448_v53  ;;  %1981 = vmatprep.subr.bf16.mxu0 %v8453_v54  ;;  %v8503_v54 = vld [vmem:[%s12029_s4 + $0x2e0] ss:$16 sps:$4 sm:$0xff]  }
 0x11c   :  { %2022 = vmatprep.subr.bf16.mxu1 %v8456_v55  ;;  %v8506_v55 = vld [vmem:[%s12029_s4 + $0x2e8] ss:$16 sps:$4 sm:$0xff]  }
 0x11e   :  { %1982 = vmatpush2.bf16.msra.mxu0 %v8451_v56 }
 0x11f   :  { %2023 = vmatpush2.bf16.msra.mxu1 %v8454_v57  ;;  %1983 = vmatprep.subr.bf16.mxu0 %v8459_v58 }
 0x120   :  { %2024 = vmatprep.subr.bf16.mxu1 %v8462_v59  ;;  %v8511_v59 = vld [vmem:[%s12029_s4 + $0x2c4] ss:$16 sps:$4 sm:$0xff]  }
 0x122   :  { %1984 = vmatpush2.bf16.msra.mxu0 %v8457_v60  ;;  %v8514_v60 = vld [vmem:[%s12029_s4 + $0x2cc] ss:$16 sps:$4 sm:$0xff]  }
 0x123   :  { %2025 = vmatpush2.bf16.msra.mxu1 %v8460_v61  ;;  %1985 = vmatprep.subr.bf16.mxu0 %v8465_v62  ;;  %v8509_v61 = vld [vmem:[%s12029_s4 + $0x2c0] ss:$16 sps:$4 sm:$0xff]   ;;  %v8512_v62 = vld [vmem:[%s12029_s4 + $0x2c8] ss:$16 sps:$4 sm:$0xff]  }
 0x124   :  { %2026 = vmatprep.subr.bf16.mxu1 %v8468_v63  ;;  %v8517_v63 = vld [vmem:[%s12029_s4 + $0x2a4] ss:$16 sps:$4 sm:$0xff]  }
 0x126   :  { %1986 = vmatpush2.bf16.msra.mxu0 %v8463_v0  ;;  %v8520_v0 = vld [vmem:[%s12029_s4 + $0x2ac] ss:$16 sps:$4 sm:$0xff]  }
 0x127   :  { %2027 = vmatpush2.bf16.msra.mxu1 %v8466_v1  ;;  %1987 = vmatprep.subr.bf16.mxu0 %v8471_v2  ;;  %v8515_v1 = vld [vmem:[%s12029_s4 + $0x2a0] ss:$16 sps:$4 sm:$0xff]   ;;  %v8518_v2 = vld [vmem:[%s12029_s4 + $0x2a8] ss:$16 sps:$4 sm:$0xff]  }
 0x128   :  { %2028 = vmatprep.subr.bf16.mxu1 %v8474_v3  ;;  %v8523_v3 = vld [vmem:[%s12029_s4 + $0x284] ss:$16 sps:$4 sm:$0xff]  }
 0x12a   :  { %1988 = vmatpush2.bf16.msra.mxu0 %v8469_v4  ;;  %v8526_v4 = vld [vmem:[%s12029_s4 + $0x28c] ss:$16 sps:$4 sm:$0xff]  }
 0x12b   :  { %2029 = vmatpush2.bf16.msra.mxu1 %v8472_v5  ;;  %1989 = vmatprep.subr.bf16.mxu0 %v8477_v6  ;;  %v8521_v5 = vld [vmem:[%s12029_s4 + $0x280] ss:$16 sps:$4 sm:$0xff]   ;;  %v8524_v6 = vld [vmem:[%s12029_s4 + $0x288] ss:$16 sps:$4 sm:$0xff]  }
 0x12c   :  { %2030 = vmatprep.subr.bf16.mxu1 %v8480_v7  ;;  %v8529_v7 = vld [vmem:[%s12029_s4 + $0x264] ss:$16 sps:$4 sm:$0xff]  }
 0x12e   :  { %1990 = vmatpush2.bf16.msra.mxu0 %v8475_v8  ;;  %v8532_v8 = vld [vmem:[%s12029_s4 + $0x26c] ss:$16 sps:$4 sm:$0xff]  }
 0x12f   :  { %2031 = vmatpush2.bf16.msra.mxu1 %v8478_v9  ;;  %1991 = vmatprep.subr.bf16.mxu0 %v8483_v10  ;;  %v8527_v9 = vld [vmem:[%s12029_s4 + $0x260] ss:$16 sps:$4 sm:$0xff]   ;;  %v8530_v10 = vld [vmem:[%s12029_s4 + $0x268] ss:$16 sps:$4 sm:$0xff]  }
 0x130   :  { %2032 = vmatprep.subr.bf16.mxu1 %v8486_v11  ;;  %v8535_v11 = vld [vmem:[%s12029_s4 + $0x244] ss:$16 sps:$4 sm:$0xff]  }
 0x132   :  { %1992 = vmatpush2.bf16.msra.mxu0 %v8481_v12  ;;  %v8538_v12 = vld [vmem:[%s12029_s4 + $0x24c] ss:$16 sps:$4 sm:$0xff]  }
 0x133   :  { %2033 = vmatpush2.bf16.msra.mxu1 %v8484_v13  ;;  %1993 = vmatprep.subr.bf16.mxu0 %v8489_v14  ;;  %v8533_v13 = vld [vmem:[%s12029_s4 + $0x240] ss:$16 sps:$4 sm:$0xff]   ;;  %v8536_v14 = vld [vmem:[%s12029_s4 + $0x248] ss:$16 sps:$4 sm:$0xff]  }
 0x134   :  { %2034 = vmatprep.subr.bf16.mxu1 %v8492_v15  ;;  %v8541_v15 = vld [vmem:[%s12029_s4 + $0x224] ss:$16 sps:$4 sm:$0xff]  }
 0x136   :  { %1994 = vmatpush2.bf16.msra.mxu0 %v8487_v17  ;;  %v8539_v17 = vld [vmem:[%s12029_s4 + $0x220] ss:$16 sps:$4 sm:$0xff]  }
 0x137   :  { %2035 = vmatpush2.bf16.msra.mxu1 %v8490_v22  ;;  %1995 = vmatprep.subr.bf16.mxu0 %v8495_v23  ;;  %v8542_v22 = vld [vmem:[%s12029_s4 + $0x228] ss:$16 sps:$4 sm:$0xff]   ;;  %v8547_v23 = vld [vmem:[%s12029_s4 + $0x204] ss:$16 sps:$4 sm:$0xff]  }
 0x138   :  { %2036 = vmatprep.subr.bf16.mxu1 %v8498_v24  ;;  %v8550_v24 = vld [vmem:[%s12029_s4 + $0x20c] ss:$16 sps:$4 sm:$0xff]  }
 0x13a   :  { %1996 = vmatpush2.bf16.msra.mxu0 %v8493_v26  ;;  %v8545_v26 = vld [vmem:[%s12029_s4 + $0x200] ss:$16 sps:$4 sm:$0xff]  }
 0x13b   :  { %2037 = vmatpush2.bf16.msra.mxu1 %v8496_v27  ;;  %2589 = vmatprep.subr.bf16.mxu0 %v8505_v48  ;;  %v8548_v27 = vld [vmem:[%s12029_s4 + $0x208] ss:$16 sps:$4 sm:$0xff]   ;;  %v8581_v48 = vld [vmem:[%s12029_s4 + $0x340] ss:$16 sps:$4 sm:$0xff]  }
 0x13c   :  { %2630 = vmatprep.subr.bf16.mxu1 %v8508_v49  ;;  %v8584_v49 = vld [vmem:[%s12029_s4 + $0x348] ss:$16 sps:$4 sm:$0xff]  }
 0x13d   :  { %v1753_v33 = vpop.f32.mrf.mxu0  ;;  %1998 = vmatmul.mubr.bf16.vlgmr.msra.gmra.mxu0 %v7134_v29  ;;  %v8556_v29 = vld [vmem:[%s12029_s4 + $0x3ec] ss:$16 sps:$4 sm:$0xff]  }
 0x13e   :  { %v1794_v34 = vpop.f32.mrf.mxu1  ;;  %2039 = vmatmul.mubr.bf16.vlgmr.msra.gmra.mxu1 %v7136_v30  ;;  %v1754_v35 = vadd.f32 %v1753_v33, %v376_v31  ;;  %2590 = vmatpush1.bf16.msra.mxu0 %v8503_v54  ;;  %v8551_v30 = vld [vmem:[%s12029_s4 + $0x3e0] ss:$16 sps:$4 sm:$0xff]   ;;  %v8554_v31 = vld [vmem:[%s12029_s4 + $0x3e8] ss:$16 sps:$4 sm:$0xff]   ;;  %v8562_v33 = vld [vmem:[%s12029_s4 + $0x3cc] ss:$16 sps:$4 sm:$0xff]  }
 0x13f   :  { %v1755_v36 = vpop.f32.mrf.mxu0  ;;  %2631 = vmatpush1.bf16.msra.mxu1 %v8506_v55  ;;  %2591 = vmatprep.subr.bf16.mxu0 %v8511_v59  ;;  %v8590_v54 = vld [vmem:[%s12029_s4 + $0x328] ss:$16 sps:$4 sm:$0xff]   ;;  %v8593_v55 = vld [vmem:[%s12029_s4 + $0x300] ss:$16 sps:$4 sm:$0xff]   ;;  %v8598_v59 = vld [vmem:[%s12029_s4 + $0x30c] ss:$16 sps:$4 sm:$0xff]  }
 0x140   :  { %v1796_v37 = vpop.f32.mrf.mxu1  ;;  %v1795_v38 = vadd.f32 %v1794_v34, %v1754_v35  ;;  %v1756_v39 = vadd.f32 %v1755_v36, %v380_v32  ;;  %2632 = vmatprep.subr.bf16.mxu1 %v8514_v60  ;;  %v8559_v32 = vld [vmem:[%s12029_s4 + $0x3c4] ss:$16 sps:$4 sm:$0xff]   ;;  %v8557_v34 = vld [vmem:[%s12029_s4 + $0x3c0] ss:$16 sps:$4 sm:$0xff]   ;;  %v8560_v35 = vld [vmem:[%s12029_s4 + $0x3c8] ss:$16 sps:$4 sm:$0xff]  }
 0x141   :  { %v1757_v40 = vpop.f32.mrf.mxu0  ;;  %v8565_v36 = vld [vmem:[%s12029_s4 + $0x3a4] ss:$16 sps:$4 sm:$0xff]  }
 0x142   :  { %v1798_v20 = vpop.f32.mrf.mxu1  ;;  %v1797_v41 = vadd.f32 %v1796_v37, %v1756_v39  ;;  %2592 = vmatpush1.bf16.msra.mxu0 %v8509_v61  ;;  %v8568_v37 = vld [vmem:[%s12029_s4 + $0x3ac] ss:$16 sps:$4 sm:$0xff]   ;;  %v8566_v39 = vld [vmem:[%s12029_s4 + $0x3a8] ss:$16 sps:$4 sm:$0xff]   ;;  %v8571_v40 = vld [vmem:[%s12029_s4 + $0x384] ss:$16 sps:$4 sm:$0xff]  }
 0x143   :  { %v1758_v42 = vpop.f32.mrf.mxu0  ;;  %2633 = vmatpush1.bf16.msra.mxu1 %v8512_v62  ;;  %2593 = vmatprep.subr.bf16.mxu0 %v8517_v63  ;;  %v8574_v20 = vld [vmem:[%s12029_s4 + $0x38c] ss:$16 sps:$4 sm:$0xff]  }
 0x144   :  { %v1799_v21 = vpop.f32.mrf.mxu1  ;;  %2634 = vmatprep.subr.bf16.mxu1 %v8520_v0  ;;  %v8572_v42 = vld [vmem:[%s12029_s4 + $0x388] ss:$16 sps:$4 sm:$0xff]  }
 0x145   :  { %v8577_v21 = vld [vmem:[%s12029_s4 + $0x364] ss:$16 sps:$4 sm:$0xff]  }
 0x146   :  { %2594 = vmatpush1.bf16.msra.mxu0 %v8515_v1  ;;  %v8601_v1 = vld [vmem:[%s12029_s4 + $0xe4] ss:$16 sps:$4 sm:$0xff]  }
 0x147   :  { %2635 = vmatpush1.bf16.msra.mxu1 %v8518_v2  ;;  %2595 = vmatprep.subr.bf16.mxu0 %v8523_v3  ;;  %v8604_v2 = vld [vmem:[%s12029_s4 + $0xec] ss:$16 sps:$4 sm:$0xff]  }
 0x148   :  { %2636 = vmatprep.subr.bf16.mxu1 %v8526_v4 }
 0x14a   :  { %2596 = vmatpush1.bf16.msra.mxu0 %v8521_v5 }
 0x14b   :  { %2637 = vmatpush1.bf16.msra.mxu1 %v8524_v6  ;;  %2597 = vmatprep.subr.bf16.mxu0 %v8529_v7 }
 0x14c   :  { %2638 = vmatprep.subr.bf16.mxu1 %v8532_v8 }
 0x14e   :  { %2598 = vmatpush1.bf16.msra.mxu0 %v8527_v9 }
 0x14f   :  { %2639 = vmatpush1.bf16.msra.mxu1 %v8530_v10  ;;  %2599 = vmatprep.subr.bf16.mxu0 %v8535_v11 }
 0x150   :  { %2640 = vmatprep.subr.bf16.mxu1 %v8538_v12 }
 0x152   :  { %2600 = vmatpush1.bf16.msra.mxu0 %v8533_v13 }
 0x153   :  { %2641 = vmatpush1.bf16.msra.mxu1 %v8536_v14  ;;  %2601 = vmatprep.subr.bf16.mxu0 %v8541_v15 }
 0x154   :  { %2642 = vmatprep.subr.bf16.mxu1 %v8544_v16 }
 0x156   :  { %2602 = vmatpush1.bf16.msra.mxu0 %v8539_v17 }
 0x157   :  { %2643 = vmatpush1.bf16.msra.mxu1 %v8542_v22  ;;  %2603 = vmatprep.subr.bf16.mxu0 %v8547_v23 }
 0x158   :  { %2644 = vmatprep.subr.bf16.mxu1 %v8550_v24 }
 0x15a   :  { %2604 = vmatpush1.bf16.msra.mxu0 %v8545_v26 }
 0x15b   :  { %2645 = vmatpush1.bf16.msra.mxu1 %v8548_v27  ;;  %2605 = vmatprep.subr.bf16.mxu0 %v8553_v28 }
 0x15c   :  { %2646 = vmatprep.subr.bf16.mxu1 %v8556_v29 }
 0x15e   :  { %2606 = vmatpush2.bf16.msra.mxu0 %v8551_v30 }
 0x15f   :  { %2647 = vmatpush2.bf16.msra.mxu1 %v8554_v31  ;;  %2607 = vmatprep.subr.bf16.mxu0 %v8559_v32 }
 0x160   :  { %2648 = vmatprep.subr.bf16.mxu1 %v8562_v33 }
 0x162   :  { %2608 = vmatpush2.bf16.msra.mxu0 %v8557_v34 }
 0x163   :  { %2649 = vmatpush2.bf16.msra.mxu1 %v8560_v35  ;;  %2609 = vmatprep.subr.bf16.mxu0 %v8565_v36 }
 0x164   :  { %2650 = vmatprep.subr.bf16.mxu1 %v8568_v37 }
 0x167   :  { %2651 = vmatpush2.bf16.msra.mxu1 %v8566_v39 }
 0x168   :  { %2652 = vmatprep.subr.bf16.mxu1 %v8574_v20 }
 0x16b   :  { %2653 = vmatpush2.bf16.msra.mxu1 %v8572_v42 }
 0x17d   :  { %v1835_v43 = vpop.f32.mrf.mxu0 }
 0x17e   :  { %v1876_v44 = vpop.f32.mrf.mxu1  ;;  %v1836_v45 = vadd.f32 %v1835_v43, %v1795_v38  ;;  %v8563_v38 = vld [vmem:[%s12029_s4 + $0x3a0] ss:$16 sps:$4 sm:$0xff]   ;;  %v8580_v43 = vld [vmem:[%s12029_s4 + $0x36c] ss:$16 sps:$4 sm:$0xff]  }
 0x17f   :  { %v1837_v46 = vpop.f32.mrf.mxu0  ;;  %2610 = vmatpush2.bf16.msra.mxu0 %v8563_v38  ;;  %2654 = vmatprep.subr.bf16.mxu1 %v8580_v43 }
 0x180   :  { %v1878_v47 = vpop.f32.mrf.mxu1  ;;  %v10441_v50 = vadd.f32 %v1876_v44, %v1836_v45  ;;  %v1838_v51 = vadd.f32 %v1837_v46, %v1797_v41  ;;  %v8569_v41 = vld [vmem:[%s12029_s4 + $0x380] ss:$16 sps:$4 sm:$0xff]   ;;  %2611 = vmatprep.subr.bf16.mxu0 %v8571_v40  ;;  %v8578_v45 = vld [vmem:[%s12029_s4 + $0x368] ss:$16 sps:$4 sm:$0xff]   ;;  %v8583_v46 = vld [vmem:[%s12029_s4 + $0x344] ss:$16 sps:$4 sm:$0xff]  }
 0x181   :  { %v1839_v52 = vpop.f32.mrf.mxu0  ;;  %v8575_v44 = vld [vmem:[%s12029_s4 + $0x360] ss:$16 sps:$4 sm:$0xff]   ;;  %2655 = vmatpush2.bf16.msra.mxu1 %v8578_v45 }
 0x182   :  { %v1880_v53 = vpop.f32.mrf.mxu1  ;;  %v10449_v56 = vadd.f32 %v1878_v47, %v1838_v51  ;;  %v8586_v47 = vld [vmem:[%s12029_s4 + $0x34c] ss:$16 sps:$4 sm:$0xff]   ;;  %v8589_v51 = vld [vmem:[%s12029_s4 + $0x324] ss:$16 sps:$4 sm:$0xff]  }
 0x183   :  { %v1840_v57 = vpop.f32.mrf.mxu0  ;;  %2612 = vmatpush2.bf16.msra.mxu0 %v8569_v41  ;;  %2656 = vmatprep.subr.bf16.mxu1 %v8586_v47  ;;  %v8592_v52 = vld [vmem:[%s12029_s4 + $0x32c] ss:$16 sps:$4 sm:$0xff]   ;;  %v8587_v53 = vld [vmem:[%s12029_s4 + $0x320] ss:$16 sps:$4 sm:$0xff]  }
 0x184   :  { %v1881_v58 = vpop.f32.mrf.mxu1  ;;  %2613 = vmatprep.subr.bf16.mxu0 %v8577_v21  ;;  %v8595_v57 = vld [vmem:[%s12029_s4 + $0x304] ss:$16 sps:$4 sm:$0xff]  }
 0x185   :  { %2657 = vmatpush2.bf16.msra.mxu1 %v8584_v49  ;;  %v8596_v58 = vld [vmem:[%s12029_s4 + $0x308] ss:$16 sps:$4 sm:$0xff]  }
 0x186   :  { %2658 = vmatprep.subr.bf16.mxu1 %v8592_v52 }
 0x187   :  { %2614 = vmatpush2.bf16.msra.mxu0 %v8575_v44 }
 0x188   :  { %2615 = vmatprep.subr.bf16.mxu0 %v8583_v46 }
 0x189   :  { %2659 = vmatpush2.bf16.msra.mxu1 %v8590_v54 }
 0x18a   :  { %2660 = vmatprep.subr.bf16.mxu1 %v8598_v59  ;;  %v2048_v59 = vld [vmem:[#allocation2 + $0x1] ss:$4 sm:$0x3] }
 0x18b   :  { %2616 = vmatpush2.bf16.msra.mxu0 %v8581_v48 }
 0x18c   :  { %2617 = vmatprep.subr.bf16.mxu0 %v8589_v51 }
 0x18d   :  { %2661 = vmatpush2.bf16.msra.mxu1 %v8596_v58 }
 0x18e   :  { %3032 = vmatprep.subr.bf16.mxu1 %v8604_v2 }
 0x18f   :  { %2618 = vmatpush2.bf16.msra.mxu0 %v8587_v53 }
 0x190   :  { %2619 = vmatprep.subr.bf16.mxu0 %v8595_v57 }
 0x193   :  { %2620 = vmatpush2.bf16.msra.mxu0 %v8593_v55 }
 0x194   :  { %2991 = vmatprep.subr.bf16.mxu0 %v8601_v1  ;;  %v2098_v1 = vrot.slane %v2048_v59, %v10427_v19 }
 0x1bd   :  { %v1917_v60 = vpop.f32.mrf.mxu0 }
 0x1be   :  { %v1958_v61 = vpop.f32.mrf.mxu1  ;;  %v1918_v62 = vadd.f32 %v1917_v60, %v10441_v50  ;;  %v2050_v60 = vld [vmem:[#allocation2 + $0x2] ss:$4 sm:$0x3] }
 0x1bf   :  { %v1919_v63 = vpop.f32.mrf.mxu0 }
 0x1c0   :  { %v1960_v0 = vpop.f32.mrf.mxu1  ;;  %v1959_v3 = vadd.f32 %v1958_v61, %v1918_v62  ;;  %v1920_v50 = vadd.f32 %v1919_v63, %v10449_v56  ;;  %v2094_v61 = vrot.slane %v2048_v59, %v10424_v18  ;;  %v8637_v59 = vld [vmem:[%s12029_s4 + $0x24] ss:$16 sps:$4 sm:$0xff]  }
 0x1c1   :  { %v1921_v4 = vpop.f32.mrf.mxu0 }
 0x1c2   :  { %v1962_v5 = vpop.f32.mrf.mxu1  ;;  %v1961_v10 = vadd.f32 %v1960_v0, %v1920_v50  ;;  %v2107_v0 = vrot.slane %v2050_v60, %v10424_v18 }
 0x1c3   :  { %v1922_v6 = vpop.f32.mrf.mxu0  ;;  %v2111_v5 = vrot.slane %v2050_v60, %v10427_v19  ;;  %v8640_v60 = vld [vmem:[%s12029_s4 + $0x2c] ss:$16 sps:$4 sm:$0xff]  }
 0x1c4   :  { %v1963_v7 = vpop.f32.mrf.mxu1 }
 0x1fd   :  { %v1999_v8 = vpop.f32.mrf.mxu0 }
 0x1fe   :  { %v2040_v9 = vpop.f32.mrf.mxu1  ;;  %v2000_v11 = vadd.f32 %v1999_v8, %v1959_v3 }
 0x1ff   :  { %v2001_v12 = vpop.f32.mrf.mxu0 }
 0x200   :  { %v2042_v13 = vpop.f32.mrf.mxu1  ;;  %v2041_v14 = vadd.f32 %v2040_v9, %v2000_v11  ;;  %v2002_v15 = vadd.f32 %v2001_v12, %v1961_v10 }
 0x201   :  { %v2003_v16 = vpop.f32.mrf.mxu0 }
 0x202   :  { %v2044_v17 = vpop.f32.mrf.mxu1  ;;  %v2051_v22 = vrot.slane %v2041_v14, 4  ;;  %v2043_v23 = vadd.f32 %v2042_v13, %v2002_v15 }
 0x203   :  { %v2004_v24 = vpop.f32.mrf.mxu0 }
 0x204   :  { %v2045_v26 = vpop.f32.mrf.mxu1  ;;  %v2052_v27 = vadd.f32 %v2051_v22, %v2041_v14  ;;  %v2057_v28 = vrot.slane %v2043_v23, 4 }
 0x206   :  { %v2053_v29 = vrot.slane %v2052_v27, 2  ;;  %v2058_v30 = vadd.f32 %v2057_v28, %v2043_v23 }
 0x208   :  { %v2054_v31 = vadd.f32 %v2053_v29, %v2052_v27  ;;  %v2059_v56 = vrot.slane %v2058_v30, 2 }
 0x20a   :  { %v2055_v32 = vrot.slane %v2054_v31, 1  ;;  %v2060_v33 = vadd.f32 %v2059_v56, %v2058_v30  ;;  %v8602_v56 = vld [vmem:[%s12029_s4 + $0xe8] ss:$16 sps:$4 sm:$0xff]  }
 0x20c   :  { %v2056_v34 = vadd.f32 %v2055_v32, %v2054_v31  ;;  %v2061_v35 = vrot.slane %v2060_v33, 1  ;;  %v8599_v31 = vld [vmem:[%s12029_s4 + $0xe0] ss:$16 sps:$4 sm:$0xff]  }
 0x20e   :  { %v2064_v36 = vmul.f32 0.125, %v2056_v34  ;;  %v2062_v37 = vadd.f32 %v2061_v35, %v2060_v33 }
 0x210   :  { %v2066_v38 = vsub.f32 %v2041_v14, %v2064_v36  ;;  %v2065_v39 = vmul.f32 0.125, %v2062_v37  ;;  %v8607_v37 = vld [vmem:[%s12029_s4 + $0xc4] ss:$16 sps:$4 sm:$0xff]  }
 0x212   :  { %v2068_v40 = vmul.f32 %v2066_v38, %v2066_v38  ;;  %v2067_v20 = vsub.f32 %v2043_v23, %v2065_v39 }
 0x214   :  { %v2070_v41 = vrot.slane %v2068_v40, 4  ;;  %v2069_v42 = vmul.f32 %v2067_v20, %v2067_v20 }
 0x216   :  { %v2071_v21 = vadd.f32 %v2070_v41, %v2068_v40  ;;  %v2076_v43 = vrot.slane %v2069_v42, 4  ;;  %v8608_v41 = vld [vmem:[%s12029_s4 + $0xc8] ss:$16 sps:$4 sm:$0xff]  }
 0x218   :  { %v2072_v44 = vrot.slane %v2071_v21, 2  ;;  %v2077_v45 = vadd.f32 %v2076_v43, %v2069_v42  ;;  %v8613_v42 = vld [vmem:[%s12029_s4 + $0xa4] ss:$16 sps:$4 sm:$0xff]   ;;  %v8611_v43 = vld [vmem:[%s12029_s4 + $0xa0] ss:$16 sps:$4 sm:$0xff]  }
 0x21a   :  { %v2073_v46 = vadd.f32 %v2072_v44, %v2071_v21  ;;  %v2078_v47 = vrot.slane %v2077_v45, 2  ;;  %v8616_v21 = vld [vmem:[%s12029_s4 + $0xac] ss:$16 sps:$4 sm:$0xff]   ;;  %v8614_v44 = vld [vmem:[%s12029_s4 + $0xa8] ss:$16 sps:$4 sm:$0xff]  }
 0x21c   :  { %v2074_v48 = vrot.slane %v2073_v46, 1  ;;  %v2079_v49 = vadd.f32 %v2078_v47, %v2077_v45  ;;  %v8619_v45 = vld [vmem:[%s12029_s4 + $0x84] ss:$16 sps:$4 sm:$0xff]   ;;  %v8617_v47 = vld [vmem:[%s12029_s4 + $0x80] ss:$16 sps:$4 sm:$0xff]  }
 0x21e   :  { %v2075_v51 = vadd.f32 %v2074_v48, %v2073_v46  ;;  %v2080_v52 = vrot.slane %v2079_v49, 1  ;;  %v8622_v46 = vld [vmem:[%s12029_s4 + $0x8c] ss:$16 sps:$4 sm:$0xff]   ;;  %v8620_v48 = vld [vmem:[%s12029_s4 + $0x88] ss:$16 sps:$4 sm:$0xff]  }
 0x220   :  { %v2082_v53 = vmul.f32 0.125, %v2075_v51  ;;  %v2081_v54 = vadd.f32 %v2080_v52, %v2079_v49  ;;  %v8625_v49 = vld [vmem:[%s12029_s4 + $0x64] ss:$16 sps:$4 sm:$0xff]   ;;  %v8628_v51 = vld [vmem:[%s12029_s4 + $0x6c] ss:$16 sps:$4 sm:$0xff]  }
 0x221   :  { %v8623_v52 = vld [vmem:[%s12029_s4 + $0x60] ss:$16 sps:$4 sm:$0xff]  }
 0x222   :  { %v2084_v55 = vadd.f32 1e-05, %v2082_v53  ;;  %v2083_v57 = vmul.f32 0.125, %v2081_v54  ;;  %v8626_v53 = vld [vmem:[%s12029_s4 + $0x68] ss:$16 sps:$4 sm:$0xff]  }
 0x223   :  { %v8631_v54 = vld [vmem:[%s12029_s4 + $0x44] ss:$16 sps:$4 sm:$0xff]  }
 0x224   :  { %9383 = vrsqrt.f32 %v2084_v55  ;;  %v2085_v58 = vadd.f32 1e-05, %v2083_v57  ;;  %v8634_v55 = vld [vmem:[%s12029_s4 + $0x4c] ss:$16 sps:$4 sm:$0xff]   ;;  %v8629_v57 = vld [vmem:[%s12029_s4 + $0x40] ss:$16 sps:$4 sm:$0xff]  }
 0x226   :  { %9385 = vrsqrt.f32 %v2085_v58  ;;  %v8632_v58 = vld [vmem:[%s12029_s4 + $0x48] ss:$16 sps:$4 sm:$0xff]  }
 0x231   :  { %v9384_v62 = vpop.eup %9383 }
 0x232   :  { %v2088_v63 = vmul.f32 %v9384_v62, %v2066_v38  ;;  %v8610_v38 = vld [vmem:[%s12029_s4 + $0xcc] ss:$16 sps:$4 sm:$0xff]   ;;  %v8638_v62 = vld [vmem:[%s12029_s4 + $0x28] ss:$16 sps:$4 sm:$0xff]  }
 0x233   :  { %v9386_v2 = vpop.eup %9385 }
 0x234   :  { %v2101_v3 = vmul.f32 %v2094_v61, %v2088_v63  ;;  %v2089_v4 = vmul.f32 %v9386_v2, %v2067_v20  ;;  %v8605_v20 = vld [vmem:[%s12029_s4 + $0xc0] ss:$16 sps:$4 sm:$0xff]   ;;  %v8643_v63 = vld [vmem:[%s12029_s4 + $0x4] ss:$16 sps:$4 sm:$0xff]   ;;  %v8644_v2 = vld [vmem:[%s12029_s4 + $0x8] ss:$16 sps:$4 sm:$0xff]  }
 0x235   :  { %v8635_v61 = vld [vmem:[%s12029_s4 + $0x20] ss:$16 sps:$4 sm:$0xff]  }
 0x236   :  { %v2114_v6 = vadd.f32 %v2107_v0, %v2101_v3  ;;  %v2102_v7 = vmul.f32 %v2098_v1, %v2089_v4  ;;  %v8646_v0 = vld [vmem:[%s12029_s4 + $0xc] ss:$16 sps:$4 sm:$0xff]   ;;  %v8641_v1 = vld [vmem:[%s12029_s4] ss:$16 sps:$4 sm:$0xff]   ;;  %v8649_v3 = vld [vmem:[%s12029_s4 + $0x1e4] ss:$16 sps:$4 sm:$0xff]  }
 0x237   :  { %v8652_v4 = vld [vmem:[%s12029_s4 + $0x1ec] ss:$16 sps:$4 sm:$0xff]  }
 0x238   :  { %v2116_v50 = vmax.f32 %v2114_v6, 0.0  ;;  %v2115_v8 = vadd.f32 %v2111_v5, %v2102_v7  ;;  %v8647_v5 = vld [vmem:[%s12029_s4 + $0x1e0] ss:$16 sps:$4 sm:$0xff]   ;;  %v8650_v6 = vld [vmem:[%s12029_s4 + $0x1e8] ss:$16 sps:$4 sm:$0xff]  }
 0x239   :  { %v8655_v7 = vld [vmem:[%s12029_s4 + $0x1c4] ss:$16 sps:$4 sm:$0xff]  }
 0x23a   :  { %v2117_v9 = vmax.f32 %v2115_v8, 0.0  ;;  %v2193_v10 = vrot.slane %v2116_v50, 1  ;;  %v2197_v11 = vrot.slane %v2116_v50, 4  ;;  %v2120_v12 = vrot.slane %v2116_v50, 3  ;;  %v8653_v8 = vld [vmem:[%s12029_s4 + $0x1c0] ss:$16 sps:$4 sm:$0xff]  }
 0x23b   :  { %v3073_v13 = vrot.slane %v2116_v50, 2  ;;  %v3077_v14 = vrot.slane %v2116_v50, 5  ;;  %v3555_v22 = vrot.slane %v2116_v50, 6 }
 0x23c   :  { %v2194_v15 = vrot.slane %v2117_v9, 1  ;;  %v2198_v16 = vrot.slane %v2117_v9, 4  ;;  %v2121_v17 = vrot.slane %v2117_v9, 3  ;;  %v2201_v23 = vsel %vm2124_vm0, %v2193_v10, %v2197_v11  ;;  %v8661_v10 = vld [vmem:[%s12029_s4 + $0x1a4] ss:$16 sps:$4 sm:$0xff]  }
 0x23d   :  { %v10645_v24 = vsel %vm2124_vm0, %v2116_v50, %v2120_v12  ;;  %v3074_v26 = vrot.slane %v2117_v9, 2  ;;  %v3078_v27 = vrot.slane %v2117_v9, 5  ;;  %v10649_v29 = vsel %vm2124_vm0, %v3073_v13, %v3077_v14  ;;  %v8658_v50 = vld [vmem:[%s12029_s4 + $0x1cc] ss:$16 sps:$4 sm:$0xff]   ;;  %v8662_v13 = vld [vmem:[%s12029_s4 + $0x1a8] ss:$16 sps:$4 sm:$0xff]  }
 0x23e   :  { %v2202_v28 = vsel %vm2124_vm0, %v2194_v15, %v2198_v16  ;;  %v2126_v32 = vsel %vm2124_vm0, %v2117_v9, %v2121_v17  ;;  %v2203_v34 = vpack.c.bf16 %v2201_v23, %v2201_v23  ;;  %v3556_v35 = vrot.slane %v2117_v9, 6  ;;  %v8656_v9 = vld [vmem:[%s12029_s4 + $0x1c8] ss:$16 sps:$4 sm:$0xff]   ;;  %v8664_v11 = vld [vmem:[%s12029_s4 + $0x1ac] ss:$16 sps:$4 sm:$0xff]  }
 0x23f   :  { %v2204_v30 = vpack.c.bf16 %v2202_v28, %v2202_v28  ;;  %v10659_v33 = vsel %vm2124_vm0, %v3074_v26, %v3078_v27  ;;  %v10662_v36 = vsel %vm2124_vm0, %v2120_v12, %v3555_v22  ;;  %v2128_v39 = vpack.c.bf16 %v2126_v32, %v2126_v32  ;;  %v8659_v12 = vld [vmem:[%s12029_s4 + $0x1a0] ss:$16 sps:$4 sm:$0xff]   ;;  %v8667_v14 = vld [vmem:[%s12029_s4 + $0x184] ss:$16 sps:$4 sm:$0xff]   ;;  %v8670_v15 = vld [vmem:[%s12029_s4 + $0x18c] ss:$16 sps:$4 sm:$0xff]  }
 0x240   :  { %v10671_v40 = vsel %vm2124_vm0, %v2121_v17, %v3556_v35  ;;  %v8665_v16 = vld [vmem:[%s12029_s4 + $0x180] ss:$16 sps:$4 sm:$0xff]   ;;  %v8668_v17 = vld [vmem:[%s12029_s4 + $0x188] ss:$16 sps:$4 sm:$0xff]   ;;  %v8673_v22 = vld [vmem:[%s12029_s4 + $0x164] ss:$16 sps:$4 sm:$0xff]  }
 0x241   :  { %2621 = vmatprep.mubr.bf16.mxu0 %v2204_v30  ;;  %2662 = vmatprep.mubr.bf16.mxu1 %v2204_v30  ;;  %v8676_v23 = vld [vmem:[%s12029_s4 + $0x16c] ss:$16 sps:$4 sm:$0xff]   ;;  %v8671_v26 = vld [vmem:[%s12029_s4 + $0x160] ss:$16 sps:$4 sm:$0xff]   ;;  %v8674_v27 = vld [vmem:[%s12029_s4 + $0x168] ss:$16 sps:$4 sm:$0xff]  }
 0x242   :  { %2622 = vmatmul.mubr.bf16.vlgmr.msra.gmra.mxu0 %v2203_v34  ;;  %2663 = vmatmul.mubr.bf16.vlgmr.msra.gmra.mxu1 %v2203_v34  ;;  %v8679_v28 = vld [vmem:[%s12029_s4 + $0x144] ss:$16 sps:$4 sm:$0xff]   ;;  %v8682_v30 = vld [vmem:[%s12029_s4 + $0x14c] ss:$16 sps:$4 sm:$0xff]   ;;  %v8683_v35 = vld [vmem:[%s12029_s4 + $0x120] ss:$16 sps:$4 sm:$0xff]  }
 0x243   :  { %2992 = vmatpush1.bf16.msra.mxu0 %v8599_v31  ;;  %3033 = vmatpush1.bf16.msra.mxu1 %v8602_v56  ;;  %v8677_v31 = vld [vmem:[%s12029_s4 + $0x140] ss:$16 sps:$4 sm:$0xff]   ;;  %v8680_v56 = vld [vmem:[%s12029_s4 + $0x148] ss:$16 sps:$4 sm:$0xff]   ;;  %v8685_v32 = vld [vmem:[%s12029_s4 + $0x124] ss:$16 sps:$4 sm:$0xff]  }
 0x244   :  { %3023 = vmatprep.mubr.bf16.mxu0 %v2128_v39  ;;  %3064 = vmatprep.mubr.bf16.mxu1 %v2128_v39  ;;  %v8688_v34 = vld [vmem:[%s12029_s4 + $0x12c] ss:$16 sps:$4 sm:$0xff]  }
 0x245   :  { %2993 = vmatprep.subr.bf16.mxu0 %v8607_v37  ;;  %3034 = vmatprep.subr.bf16.mxu1 %v8610_v38  ;;  %v8686_v37 = vld [vmem:[%s12029_s4 + $0x128] ss:$16 sps:$4 sm:$0xff]   ;;  %v8691_v38 = vld [vmem:[%s12029_s4 + $0x104] ss:$16 sps:$4 sm:$0xff]   ;;  %v8694_v39 = vld [vmem:[%s12029_s4 + $0x10c] ss:$16 sps:$4 sm:$0xff]  }
 0x247   :  { %2994 = vmatpush1.bf16.msra.mxu0 %v8605_v20  ;;  %3035 = vmatpush1.bf16.msra.mxu1 %v8608_v41  ;;  %v8689_v20 = vld [vmem:[%s12029_s4 + $0x100] ss:$16 sps:$4 sm:$0xff]   ;;  %v8692_v41 = vld [vmem:[%s12029_s4 + $0x108] ss:$16 sps:$4 sm:$0xff]  }
 0x248   :  { %2995 = vmatprep.subr.bf16.mxu0 %v8613_v42  ;;  %3036 = vmatprep.subr.bf16.mxu1 %v8616_v21  ;;  %v8697_v42 = vld [vmem:[%s12029_s4 + $0x4e4] ss:$16 sps:$4 sm:$0xff]   ;;  %v8700_v21 = vld [vmem:[%s12029_s4 + $0x4ec] ss:$16 sps:$4 sm:$0xff]  }
 0x24b   :  { %2996 = vmatpush1.bf16.msra.mxu0 %v8611_v43  ;;  %3037 = vmatpush1.bf16.msra.mxu1 %v8614_v44  ;;  %v8695_v43 = vld [vmem:[%s12029_s4 + $0x4e0] ss:$16 sps:$4 sm:$0xff]   ;;  %v2127_v44 = vpack.c.bf16 %v10645_v24, %v10645_v24 }
 0x24c   :  { %2997 = vmatprep.subr.bf16.mxu0 %v8619_v45  ;;  %3038 = vmatprep.subr.bf16.mxu1 %v8622_v46  ;;  %v8698_v45 = vld [vmem:[%s12029_s4 + $0x4e8] ss:$16 sps:$4 sm:$0xff]   ;;  %v3084_v46 = vpack.c.bf16 %v10659_v33, %v10659_v33  ;;  %v8701_v24 = vld [vmem:[%s12029_s4 + $0x4c0] ss:$16 sps:$4 sm:$0xff]  }
 0x24d   :  { %v8704_v33 = vld [vmem:[%s12029_s4 + $0x4c8] ss:$16 sps:$4 sm:$0xff]  }
 0x24f   :  { %2998 = vmatpush1.bf16.msra.mxu0 %v8617_v47  ;;  %3039 = vmatpush1.bf16.msra.mxu1 %v8620_v48  ;;  %v8703_v47 = vld [vmem:[%s12029_s4 + $0x4c4] ss:$16 sps:$4 sm:$0xff]   ;;  %v8706_v48 = vld [vmem:[%s12029_s4 + $0x4cc] ss:$16 sps:$4 sm:$0xff]  }
 0x250   :  { %2999 = vmatprep.subr.bf16.mxu0 %v8625_v49  ;;  %3040 = vmatprep.subr.bf16.mxu1 %v8628_v51  ;;  %v8709_v49 = vld [vmem:[%s12029_s4 + $0x4a4] ss:$16 sps:$4 sm:$0xff]   ;;  %v8712_v51 = vld [vmem:[%s12029_s4 + $0x4ac] ss:$16 sps:$4 sm:$0xff]  }
 0x253   :  { %3000 = vmatpush1.bf16.msra.mxu0 %v8623_v52  ;;  %3041 = vmatpush1.bf16.msra.mxu1 %v8626_v53  ;;  %v8707_v52 = vld [vmem:[%s12029_s4 + $0x4a0] ss:$16 sps:$4 sm:$0xff]   ;;  %v8710_v53 = vld [vmem:[%s12029_s4 + $0x4a8] ss:$16 sps:$4 sm:$0xff]  }
 0x254   :  { %3001 = vmatprep.subr.bf16.mxu0 %v8631_v54  ;;  %3042 = vmatprep.subr.bf16.mxu1 %v8634_v55  ;;  %v8715_v54 = vld [vmem:[%s12029_s4 + $0x484] ss:$16 sps:$4 sm:$0xff]   ;;  %v8718_v55 = vld [vmem:[%s12029_s4 + $0x48c] ss:$16 sps:$4 sm:$0xff]  }
 0x257   :  { %3002 = vmatpush1.bf16.msra.mxu0 %v8629_v57  ;;  %3043 = vmatpush1.bf16.msra.mxu1 %v8632_v58  ;;  %v8713_v57 = vld [vmem:[%s12029_s4 + $0x480] ss:$16 sps:$4 sm:$0xff]   ;;  %v8716_v58 = vld [vmem:[%s12029_s4 + $0x488] ss:$16 sps:$4 sm:$0xff]  }
 0x258   :  { %3003 = vmatprep.subr.bf16.mxu0 %v8637_v59  ;;  %3044 = vmatprep.subr.bf16.mxu1 %v8640_v60  ;;  %v8721_v59 = vld [vmem:[%s12029_s4 + $0x464] ss:$16 sps:$4 sm:$0xff]   ;;  %v8724_v60 = vld [vmem:[%s12029_s4 + $0x46c] ss:$16 sps:$4 sm:$0xff]  }
 0x25b   :  { %3004 = vmatpush1.bf16.msra.mxu0 %v8635_v61  ;;  %3045 = vmatpush1.bf16.msra.mxu1 %v8638_v62  ;;  %v8719_v61 = vld [vmem:[%s12029_s4 + $0x460] ss:$16 sps:$4 sm:$0xff]   ;;  %v8722_v62 = vld [vmem:[%s12029_s4 + $0x468] ss:$16 sps:$4 sm:$0xff]  }
 0x25c   :  { %3005 = vmatprep.subr.bf16.mxu0 %v8643_v63  ;;  %3046 = vmatprep.subr.bf16.mxu1 %v8646_v0  ;;  %v8727_v63 = vld [vmem:[%s12029_s4 + $0x444] ss:$16 sps:$4 sm:$0xff]   ;;  %v8730_v0 = vld [vmem:[%s12029_s4 + $0x44c] ss:$16 sps:$4 sm:$0xff]  }
 0x25f   :  { %3006 = vmatpush1.bf16.msra.mxu0 %v8641_v1  ;;  %3047 = vmatpush1.bf16.msra.mxu1 %v8644_v2  ;;  %v8725_v1 = vld [vmem:[%s12029_s4 + $0x440] ss:$16 sps:$4 sm:$0xff]   ;;  %v8728_v2 = vld [vmem:[%s12029_s4 + $0x448] ss:$16 sps:$4 sm:$0xff]  }
 0x260   :  { %3007 = vmatprep.subr.bf16.mxu0 %v8649_v3  ;;  %3048 = vmatprep.subr.bf16.mxu1 %v8652_v4  ;;  %v8733_v3 = vld [vmem:[%s12029_s4 + $0x424] ss:$16 sps:$4 sm:$0xff]   ;;  %v8736_v4 = vld [vmem:[%s12029_s4 + $0x42c] ss:$16 sps:$4 sm:$0xff]  }
 0x263   :  { %3008 = vmatpush2.bf16.msra.mxu0 %v8647_v5  ;;  %3049 = vmatpush2.bf16.msra.mxu1 %v8650_v6  ;;  %v8731_v5 = vld [vmem:[%s12029_s4 + $0x420] ss:$16 sps:$4 sm:$0xff]   ;;  %v8734_v6 = vld [vmem:[%s12029_s4 + $0x428] ss:$16 sps:$4 sm:$0xff]  }
 0x264   :  { %3009 = vmatprep.subr.bf16.mxu0 %v8655_v7  ;;  %3050 = vmatprep.subr.bf16.mxu1 %v8658_v50  ;;  %v8739_v7 = vld [vmem:[%s12029_s4 + $0x404] ss:$16 sps:$4 sm:$0xff]   ;;  %v8742_v50 = vld [vmem:[%s12029_s4 + $0x40c] ss:$16 sps:$4 sm:$0xff]  }
 0x267   :  { %3010 = vmatpush2.bf16.msra.mxu0 %v8653_v8  ;;  %3051 = vmatpush2.bf16.msra.mxu1 %v8656_v9  ;;  %v8737_v8 = vld [vmem:[%s12029_s4 + $0x400] ss:$16 sps:$4 sm:$0xff]   ;;  %v8740_v9 = vld [vmem:[%s12029_s4 + $0x408] ss:$16 sps:$4 sm:$0xff]  }
 0x268   :  { %3011 = vmatprep.subr.bf16.mxu0 %v8661_v10  ;;  %3052 = vmatprep.subr.bf16.mxu1 %v8664_v11  ;;  %v8745_v10 = vld [vmem:[%s12029_s4 + $0x5e4] ss:$16 sps:$4 sm:$0xff]   ;;  %v8748_v11 = vld [vmem:[%s12029_s4 + $0x5ec] ss:$16 sps:$4 sm:$0xff]  }
 0x26b   :  { %3012 = vmatpush2.bf16.msra.mxu0 %v8659_v12  ;;  %3053 = vmatpush2.bf16.msra.mxu1 %v8662_v13  ;;  %v8743_v12 = vld [vmem:[%s12029_s4 + $0x5e0] ss:$16 sps:$4 sm:$0xff]   ;;  %v8746_v13 = vld [vmem:[%s12029_s4 + $0x5e8] ss:$16 sps:$4 sm:$0xff]  }
 0x26c   :  { %3013 = vmatprep.subr.bf16.mxu0 %v8667_v14  ;;  %3054 = vmatprep.subr.bf16.mxu1 %v8670_v15  ;;  %v8751_v14 = vld [vmem:[%s12029_s4 + $0x5c4] ss:$16 sps:$4 sm:$0xff]   ;;  %v8754_v15 = vld [vmem:[%s12029_s4 + $0x5cc] ss:$16 sps:$4 sm:$0xff]  }
 0x26f   :  { %3014 = vmatpush2.bf16.msra.mxu0 %v8665_v16  ;;  %3055 = vmatpush2.bf16.msra.mxu1 %v8668_v17  ;;  %v8749_v16 = vld [vmem:[%s12029_s4 + $0x5c0] ss:$16 sps:$4 sm:$0xff]   ;;  %v8752_v17 = vld [vmem:[%s12029_s4 + $0x5c8] ss:$16 sps:$4 sm:$0xff]  }
 0x270   :  { %3015 = vmatprep.subr.bf16.mxu0 %v8673_v22  ;;  %3056 = vmatprep.subr.bf16.mxu1 %v8676_v23  ;;  %v8757_v22 = vld [vmem:[%s12029_s4 + $0x5a4] ss:$16 sps:$4 sm:$0xff]   ;;  %v8760_v23 = vld [vmem:[%s12029_s4 + $0x5ac] ss:$16 sps:$4 sm:$0xff]  }
 0x273   :  { %3016 = vmatpush2.bf16.msra.mxu0 %v8671_v26  ;;  %3057 = vmatpush2.bf16.msra.mxu1 %v8674_v27  ;;  %v8755_v26 = vld [vmem:[%s12029_s4 + $0x5a0] ss:$16 sps:$4 sm:$0xff]   ;;  %v8758_v27 = vld [vmem:[%s12029_s4 + $0x5a8] ss:$16 sps:$4 sm:$0xff]  }
 0x274   :  { %3017 = vmatprep.subr.bf16.mxu0 %v8679_v28  ;;  %3058 = vmatprep.subr.bf16.mxu1 %v8682_v30  ;;  %v8763_v28 = vld [vmem:[%s12029_s4 + $0x584] ss:$16 sps:$4 sm:$0xff]   ;;  %v8766_v30 = vld [vmem:[%s12029_s4 + $0x58c] ss:$16 sps:$4 sm:$0xff]  }
 0x277   :  { %3018 = vmatpush2.bf16.msra.mxu0 %v8677_v31  ;;  %3059 = vmatpush2.bf16.msra.mxu1 %v8680_v56  ;;  %v8761_v31 = vld [vmem:[%s12029_s4 + $0x580] ss:$16 sps:$4 sm:$0xff]   ;;  %v8764_v56 = vld [vmem:[%s12029_s4 + $0x588] ss:$16 sps:$4 sm:$0xff]  }
 0x278   :  { %3019 = vmatprep.subr.bf16.mxu0 %v8685_v32  ;;  %3060 = vmatprep.subr.bf16.mxu1 %v8688_v34  ;;  %v8769_v32 = vld [vmem:[%s12029_s4 + $0x564] ss:$16 sps:$4 sm:$0xff]   ;;  %v8772_v34 = vld [vmem:[%s12029_s4 + $0x56c] ss:$16 sps:$4 sm:$0xff]  }
 0x27b   :  { %3020 = vmatpush2.bf16.msra.mxu0 %v8683_v35  ;;  %3061 = vmatpush2.bf16.msra.mxu1 %v8686_v37  ;;  %v8767_v35 = vld [vmem:[%s12029_s4 + $0x560] ss:$16 sps:$4 sm:$0xff]   ;;  %v8770_v37 = vld [vmem:[%s12029_s4 + $0x568] ss:$16 sps:$4 sm:$0xff]  }
 0x27c   :  { %3021 = vmatprep.subr.bf16.mxu0 %v8691_v38  ;;  %3062 = vmatprep.subr.bf16.mxu1 %v8694_v39  ;;  %v8775_v38 = vld [vmem:[%s12029_s4 + $0x544] ss:$16 sps:$4 sm:$0xff]   ;;  %v8778_v39 = vld [vmem:[%s12029_s4 + $0x54c] ss:$16 sps:$4 sm:$0xff]  }
 0x27f   :  { %3022 = vmatpush2.bf16.msra.mxu0 %v8689_v20  ;;  %3063 = vmatpush2.bf16.msra.mxu1 %v8692_v41  ;;  %v8773_v20 = vld [vmem:[%s12029_s4 + $0x540] ss:$16 sps:$4 sm:$0xff]   ;;  %v8776_v41 = vld [vmem:[%s12029_s4 + $0x548] ss:$16 sps:$4 sm:$0xff]  }
 0x280   :  { %3469 = vmatprep.subr.bf16.mxu0 %v8697_v42  ;;  %3510 = vmatprep.subr.bf16.mxu1 %v8700_v21  ;;  %v8781_v42 = vld [vmem:[%s12029_s4 + $0x524] ss:$16 sps:$4 sm:$0xff]   ;;  %v8784_v21 = vld [vmem:[%s12029_s4 + $0x52c] ss:$16 sps:$4 sm:$0xff]  }
 0x282   :  { %3024 = vmatmul.mubr.bf16.vlgmr.msra.gmra.mxu0 %v2127_v44  ;;  %3065 = vmatmul.mubr.bf16.vlgmr.msra.gmra.mxu1 %v2127_v44  ;;  %v8782_v44 = vld [vmem:[%s12029_s4 + $0x528] ss:$16 sps:$4 sm:$0xff]  }
 0x283   :  { %3470 = vmatpush1.bf16.msra.mxu0 %v8695_v43  ;;  %3501 = vmatprep.mubr.bf16.mxu0 %v3084_v46  ;;  %v8779_v43 = vld [vmem:[%s12029_s4 + $0x520] ss:$16 sps:$4 sm:$0xff]  }
 0x284   :  { %3511 = vmatpush1.bf16.msra.mxu1 %v8698_v45  ;;  %3542 = vmatprep.mubr.bf16.mxu1 %v3084_v46  ;;  %v8787_v45 = vld [vmem:[%s12029_s4 + $0x504] ss:$16 sps:$4 sm:$0xff]   ;;  %v8790_v46 = vld [vmem:[%s12029_s4 + $0x50c] ss:$16 sps:$4 sm:$0xff]  }
 0x285   :  { %3471 = vmatprep.subr.bf16.mxu0 %v8703_v47  ;;  %3512 = vmatprep.subr.bf16.mxu1 %v8706_v48  ;;  %v8785_v47 = vld [vmem:[%s12029_s4 + $0x500] ss:$16 sps:$4 sm:$0xff]   ;;  %v8788_v48 = vld [vmem:[%s12029_s4 + $0x508] ss:$16 sps:$4 sm:$0xff]  }
 0x287   :  { %3472 = vmatpush1.bf16.msra.mxu0 %v8701_v24  ;;  %v8793_v24 = vld [vmem:[%s12029_s4 + $0x6e4] ss:$16 sps:$4 sm:$0xff]  }
 0x288   :  { %3513 = vmatpush1.bf16.msra.mxu1 %v8704_v33  ;;  %3473 = vmatprep.subr.bf16.mxu0 %v8709_v49  ;;  %v8796_v33 = vld [vmem:[%s12029_s4 + $0x6ec] ss:$16 sps:$4 sm:$0xff]   ;;  %v8791_v49 = vld [vmem:[%s12029_s4 + $0x6e0] ss:$16 sps:$4 sm:$0xff]  }
 0x289   :  { %3514 = vmatprep.subr.bf16.mxu1 %v8712_v51  ;;  %v3083_v51 = vpack.c.bf16 %v10649_v29, %v10649_v29  ;;  %v8797_v29 = vld [vmem:[%s12029_s4 + $0x6c0] ss:$16 sps:$4 sm:$0xff]  }
 0x28b   :  { %3474 = vmatpush1.bf16.msra.mxu0 %v8707_v52  ;;  %v8794_v52 = vld [vmem:[%s12029_s4 + $0x6e8] ss:$16 sps:$4 sm:$0xff]  }
 0x28c   :  { %3515 = vmatpush1.bf16.msra.mxu1 %v8710_v53  ;;  %3475 = vmatprep.subr.bf16.mxu0 %v8715_v54  ;;  %v8799_v53 = vld [vmem:[%s12029_s4 + $0x6c4] ss:$16 sps:$4 sm:$0xff]   ;;  %v3562_v54 = vpack.c.bf16 %v10671_v40, %v10671_v40 }
 0x28d   :  { %3516 = vmatprep.subr.bf16.mxu1 %v8718_v55  ;;  %v8802_v55 = vld [vmem:[%s12029_s4 + $0x6cc] ss:$16 sps:$4 sm:$0xff]   ;;  %v8805_v40 = vld [vmem:[%s12029_s4 + $0x6a4] ss:$16 sps:$4 sm:$0xff]  }
 0x28f   :  { %3476 = vmatpush1.bf16.msra.mxu0 %v8713_v57  ;;  %v8800_v57 = vld [vmem:[%s12029_s4 + $0x6c8] ss:$16 sps:$4 sm:$0xff]  }
 0x290   :  { %3517 = vmatpush1.bf16.msra.mxu1 %v8716_v58  ;;  %3477 = vmatprep.subr.bf16.mxu0 %v8721_v59  ;;  %v8808_v58 = vld [vmem:[%s12029_s4 + $0x6ac] ss:$16 sps:$4 sm:$0xff]   ;;  %v8803_v59 = vld [vmem:[%s12029_s4 + $0x6a0] ss:$16 sps:$4 sm:$0xff]  }
 0x291   :  { %3518 = vmatprep.subr.bf16.mxu1 %v8724_v60  ;;  %v8806_v60 = vld [vmem:[%s12029_s4 + $0x6a8] ss:$16 sps:$4 sm:$0xff]  }
 0x293   :  { %3478 = vmatpush1.bf16.msra.mxu0 %v8719_v61  ;;  %v8811_v61 = vld [vmem:[%s12029_s4 + $0x684] ss:$16 sps:$4 sm:$0xff]  }
 0x294   :  { %3519 = vmatpush1.bf16.msra.mxu1 %v8722_v62  ;;  %3479 = vmatprep.subr.bf16.mxu0 %v8727_v63  ;;  %v8814_v62 = vld [vmem:[%s12029_s4 + $0x68c] ss:$16 sps:$4 sm:$0xff]   ;;  %v8809_v63 = vld [vmem:[%s12029_s4 + $0x680] ss:$16 sps:$4 sm:$0xff]  }
 0x295   :  { %3520 = vmatprep.subr.bf16.mxu1 %v8730_v0  ;;  %v8812_v0 = vld [vmem:[%s12029_s4 + $0x688] ss:$16 sps:$4 sm:$0xff]  }
 0x297   :  { %3480 = vmatpush1.bf16.msra.mxu0 %v8725_v1  ;;  %v8817_v1 = vld [vmem:[%s12029_s4 + $0x664] ss:$16 sps:$4 sm:$0xff]  }
 0x298   :  { %3521 = vmatpush1.bf16.msra.mxu1 %v8728_v2  ;;  %3481 = vmatprep.subr.bf16.mxu0 %v8733_v3  ;;  %v8820_v2 = vld [vmem:[%s12029_s4 + $0x66c] ss:$16 sps:$4 sm:$0xff]   ;;  %v8815_v3 = vld [vmem:[%s12029_s4 + $0x660] ss:$16 sps:$4 sm:$0xff]  }
 0x299   :  { %3522 = vmatprep.subr.bf16.mxu1 %v8736_v4  ;;  %v8818_v4 = vld [vmem:[%s12029_s4 + $0x668] ss:$16 sps:$4 sm:$0xff]  }
 0x29b   :  { %3482 = vmatpush1.bf16.msra.mxu0 %v8731_v5  ;;  %v8823_v5 = vld [vmem:[%s12029_s4 + $0x644] ss:$16 sps:$4 sm:$0xff]  }
 0x29c   :  { %3523 = vmatpush1.bf16.msra.mxu1 %v8734_v6  ;;  %3483 = vmatprep.subr.bf16.mxu0 %v8739_v7  ;;  %v8826_v6 = vld [vmem:[%s12029_s4 + $0x64c] ss:$16 sps:$4 sm:$0xff]   ;;  %v8821_v7 = vld [vmem:[%s12029_s4 + $0x640] ss:$16 sps:$4 sm:$0xff]  }
 0x29d   :  { %3524 = vmatprep.subr.bf16.mxu1 %v8742_v50  ;;  %v8824_v50 = vld [vmem:[%s12029_s4 + $0x648] ss:$16 sps:$4 sm:$0xff]  }
 0x29f   :  { %3484 = vmatpush1.bf16.msra.mxu0 %v8737_v8  ;;  %v8829_v8 = vld [vmem:[%s12029_s4 + $0x624] ss:$16 sps:$4 sm:$0xff]  }
 0x2a0   :  { %3525 = vmatpush1.bf16.msra.mxu1 %v8740_v9  ;;  %3485 = vmatprep.subr.bf16.mxu0 %v8745_v10  ;;  %v8832_v9 = vld [vmem:[%s12029_s4 + $0x62c] ss:$16 sps:$4 sm:$0xff]   ;;  %v8827_v10 = vld [vmem:[%s12029_s4 + $0x620] ss:$16 sps:$4 sm:$0xff]  }
 0x2a1   :  { %3526 = vmatprep.subr.bf16.mxu1 %v8748_v11  ;;  %v8830_v11 = vld [vmem:[%s12029_s4 + $0x628] ss:$16 sps:$4 sm:$0xff]  }
 0x2a3   :  { %3486 = vmatpush2.bf16.msra.mxu0 %v8743_v12  ;;  %v8835_v12 = vld [vmem:[%s12029_s4 + $0x604] ss:$16 sps:$4 sm:$0xff]  }
 0x2a4   :  { %3527 = vmatpush2.bf16.msra.mxu1 %v8746_v13  ;;  %3487 = vmatprep.subr.bf16.mxu0 %v8751_v14  ;;  %v8838_v13 = vld [vmem:[%s12029_s4 + $0x60c] ss:$16 sps:$4 sm:$0xff]   ;;  %v8833_v14 = vld [vmem:[%s12029_s4 + $0x600] ss:$16 sps:$4 sm:$0xff]  }
 0x2a5   :  { %3528 = vmatprep.subr.bf16.mxu1 %v8754_v15  ;;  %v8836_v15 = vld [vmem:[%s12029_s4 + $0x608] ss:$16 sps:$4 sm:$0xff]  }
 0x2a7   :  { %3488 = vmatpush2.bf16.msra.mxu0 %v8749_v16  ;;  %v8841_v16 = vld [vmem:[%s12029_s4 + $0x7e4] ss:$16 sps:$4 sm:$0xff]  }
 0x2a8   :  { %3529 = vmatpush2.bf16.msra.mxu1 %v8752_v17  ;;  %3489 = vmatprep.subr.bf16.mxu0 %v8757_v22  ;;  %v8844_v17 = vld [vmem:[%s12029_s4 + $0x7ec] ss:$16 sps:$4 sm:$0xff]   ;;  %v8839_v22 = vld [vmem:[%s12029_s4 + $0x7e0] ss:$16 sps:$4 sm:$0xff]  }
 0x2a9   :  { %3530 = vmatprep.subr.bf16.mxu1 %v8760_v23  ;;  %v8842_v23 = vld [vmem:[%s12029_s4 + $0x7e8] ss:$16 sps:$4 sm:$0xff]  }
 0x2ab   :  { %3490 = vmatpush2.bf16.msra.mxu0 %v8755_v26  ;;  %v8847_v26 = vld [vmem:[%s12029_s4 + $0x7c4] ss:$16 sps:$4 sm:$0xff]  }
 0x2ac   :  { %3531 = vmatpush2.bf16.msra.mxu1 %v8758_v27  ;;  %3491 = vmatprep.subr.bf16.mxu0 %v8763_v28  ;;  %v8850_v27 = vld [vmem:[%s12029_s4 + $0x7cc] ss:$16 sps:$4 sm:$0xff]   ;;  %v8845_v28 = vld [vmem:[%s12029_s4 + $0x7c0] ss:$16 sps:$4 sm:$0xff]  }
 0x2ad   :  { %3532 = vmatprep.subr.bf16.mxu1 %v8766_v30  ;;  %v8848_v30 = vld [vmem:[%s12029_s4 + $0x7c8] ss:$16 sps:$4 sm:$0xff]  }
 0x2af   :  { %3492 = vmatpush2.bf16.msra.mxu0 %v8761_v31  ;;  %v8853_v31 = vld [vmem:[%s12029_s4 + $0x7a4] ss:$16 sps:$4 sm:$0xff]  }
 0x2b0   :  { %3533 = vmatpush2.bf16.msra.mxu1 %v8764_v56  ;;  %3493 = vmatprep.subr.bf16.mxu0 %v8769_v32  ;;  %v8856_v56 = vld [vmem:[%s12029_s4 + $0x7ac] ss:$16 sps:$4 sm:$0xff]   ;;  %v8851_v32 = vld [vmem:[%s12029_s4 + $0x7a0] ss:$16 sps:$4 sm:$0xff]  }
 0x2b1   :  { %3534 = vmatprep.subr.bf16.mxu1 %v8772_v34  ;;  %v8854_v34 = vld [vmem:[%s12029_s4 + $0x7a8] ss:$16 sps:$4 sm:$0xff]  }
 0x2b3   :  { %3494 = vmatpush2.bf16.msra.mxu0 %v8767_v35  ;;  %v8859_v35 = vld [vmem:[%s12029_s4 + $0x784] ss:$16 sps:$4 sm:$0xff]  }
 0x2b4   :  { %3535 = vmatpush2.bf16.msra.mxu1 %v8770_v37  ;;  %3495 = vmatprep.subr.bf16.mxu0 %v8775_v38  ;;  %v8862_v37 = vld [vmem:[%s12029_s4 + $0x78c] ss:$16 sps:$4 sm:$0xff]   ;;  %v8857_v38 = vld [vmem:[%s12029_s4 + $0x780] ss:$16 sps:$4 sm:$0xff]  }
 0x2b5   :  { %3536 = vmatprep.subr.bf16.mxu1 %v8778_v39  ;;  %v8860_v39 = vld [vmem:[%s12029_s4 + $0x788] ss:$16 sps:$4 sm:$0xff]  }
 0x2b7   :  { %3496 = vmatpush2.bf16.msra.mxu0 %v8773_v20  ;;  %v8865_v20 = vld [vmem:[%s12029_s4 + $0x764] ss:$16 sps:$4 sm:$0xff]  }
 0x2b8   :  { %3537 = vmatpush2.bf16.msra.mxu1 %v8776_v41  ;;  %3497 = vmatprep.subr.bf16.mxu0 %v8781_v42  ;;  %v8868_v41 = vld [vmem:[%s12029_s4 + $0x76c] ss:$16 sps:$4 sm:$0xff]   ;;  %v8863_v42 = vld [vmem:[%s12029_s4 + $0x760] ss:$16 sps:$4 sm:$0xff]  }
 0x2b9   :  { %3538 = vmatprep.subr.bf16.mxu1 %v8784_v21  ;;  %v8866_v21 = vld [vmem:[%s12029_s4 + $0x768] ss:$16 sps:$4 sm:$0xff]  }
 0x2bb   :  { %3498 = vmatpush2.bf16.msra.mxu0 %v8779_v43  ;;  %v8871_v43 = vld [vmem:[%s12029_s4 + $0x744] ss:$16 sps:$4 sm:$0xff]  }
 0x2bc   :  { %3539 = vmatpush2.bf16.msra.mxu1 %v8782_v44  ;;  %3499 = vmatprep.subr.bf16.mxu0 %v8787_v45  ;;  %v8874_v44 = vld [vmem:[%s12029_s4 + $0x74c] ss:$16 sps:$4 sm:$0xff]   ;;  %v8869_v45 = vld [vmem:[%s12029_s4 + $0x740] ss:$16 sps:$4 sm:$0xff]  }
 0x2bd   :  { %3540 = vmatprep.subr.bf16.mxu1 %v8790_v46  ;;  %v8872_v46 = vld [vmem:[%s12029_s4 + $0x748] ss:$16 sps:$4 sm:$0xff]  }
 0x2bf   :  { %3500 = vmatpush2.bf16.msra.mxu0 %v8785_v47  ;;  %v8877_v47 = vld [vmem:[%s12029_s4 + $0x724] ss:$16 sps:$4 sm:$0xff]  }
 0x2c0   :  { %3541 = vmatpush2.bf16.msra.mxu1 %v8788_v48  ;;  %3947 = vmatprep.subr.bf16.mxu0 %v8793_v24  ;;  %v8880_v48 = vld [vmem:[%s12029_s4 + $0x72c] ss:$16 sps:$4 sm:$0xff]   ;;  %v8875_v24 = vld [vmem:[%s12029_s4 + $0x720] ss:$16 sps:$4 sm:$0xff]  }
 0x2c1   :  { %3988 = vmatprep.subr.bf16.mxu1 %v8796_v33  ;;  %v8878_v33 = vld [vmem:[%s12029_s4 + $0x728] ss:$16 sps:$4 sm:$0xff]  }
 0x2c2   :  { %3502 = vmatmul.mubr.bf16.vlgmr.msra.gmra.mxu0 %v3083_v51 }
 0x2c3   :  { %3543 = vmatmul.mubr.bf16.vlgmr.msra.gmra.mxu1 %v3083_v51  ;;  %3948 = vmatpush1.bf16.msra.mxu0 %v8791_v49  ;;  %v8883_v49 = vld [vmem:[%s12029_s4 + $0x704] ss:$16 sps:$4 sm:$0xff]   ;;  %v8886_v51 = vld [vmem:[%s12029_s4 + $0x70c] ss:$16 sps:$4 sm:$0xff]  }
 0x2c4   :  { %3979 = vmatprep.mubr.bf16.mxu0 %v3562_v54  ;;  %3989 = vmatpush1.bf16.msra.mxu1 %v8794_v52  ;;  %v8881_v52 = vld [vmem:[%s12029_s4 + $0x700] ss:$16 sps:$4 sm:$0xff]  }
 0x2c5   :  { %4020 = vmatprep.mubr.bf16.mxu1 %v3562_v54  ;;  %3949 = vmatprep.subr.bf16.mxu0 %v8799_v53  ;;  %v8884_v53 = vld [vmem:[%s12029_s4 + $0x708] ss:$16 sps:$4 sm:$0xff]   ;;  %v3561_v54 = vpack.c.bf16 %v10662_v36, %v10662_v36 }
 0x2c6   :  { %3990 = vmatprep.subr.bf16.mxu1 %v8802_v55 }
 0x2c7   :  { %3950 = vmatpush1.bf16.msra.mxu0 %v8797_v29 }
 0x2c8   :  { %3991 = vmatpush1.bf16.msra.mxu1 %v8800_v57  ;;  %3951 = vmatprep.subr.bf16.mxu0 %v8805_v40 }
 0x2c9   :  { %3992 = vmatprep.subr.bf16.mxu1 %v8808_v58 }
 0x2cb   :  { %3952 = vmatpush1.bf16.msra.mxu0 %v8803_v59 }
 0x2cc   :  { %3993 = vmatpush1.bf16.msra.mxu1 %v8806_v60  ;;  %3953 = vmatprep.subr.bf16.mxu0 %v8811_v61 }
 0x2cd   :  { %3994 = vmatprep.subr.bf16.mxu1 %v8814_v62 }
 0x2cf   :  { %3954 = vmatpush1.bf16.msra.mxu0 %v8809_v63 }
 0x2d0   :  { %3995 = vmatpush1.bf16.msra.mxu1 %v8812_v0  ;;  %3955 = vmatprep.subr.bf16.mxu0 %v8817_v1 }
 0x2d1   :  { %3996 = vmatprep.subr.bf16.mxu1 %v8820_v2 }
 0x2d3   :  { %3956 = vmatpush1.bf16.msra.mxu0 %v8815_v3 }
 0x2d4   :  { %3997 = vmatpush1.bf16.msra.mxu1 %v8818_v4  ;;  %3957 = vmatprep.subr.bf16.mxu0 %v8823_v5 }
 0x2d5   :  { %3998 = vmatprep.subr.bf16.mxu1 %v8826_v6 }
 0x2d7   :  { %3958 = vmatpush1.bf16.msra.mxu0 %v8821_v7  ;;  %v8889_v7 = vld [vmem:[%s12033_s8 + $0xe4] ss:$16 sps:$4 sm:$0xff]  }
 0x2d8   :  { %3999 = vmatpush1.bf16.msra.mxu1 %v8824_v50  ;;  %3959 = vmatprep.subr.bf16.mxu0 %v8829_v8  ;;  %v8892_v50 = vld [vmem:[%s12033_s8 + $0x2e4] ss:$16 sps:$4 sm:$0xff]   ;;  %v8887_v8 = vld [vmem:[%s12033_s8 + $0xe0] ss:$16 sps:$4 sm:$0xff]  }
 0x2d9   :  { %4000 = vmatprep.subr.bf16.mxu1 %v8832_v9  ;;  %v8890_v9 = vld [vmem:[%s12033_s8 + $0x2e0] ss:$16 sps:$4 sm:$0xff]  }
 0x2db   :  { %3960 = vmatpush1.bf16.msra.mxu0 %v8827_v10 }
 0x2dc   :  { %4001 = vmatpush1.bf16.msra.mxu1 %v8830_v11  ;;  %3961 = vmatprep.subr.bf16.mxu0 %v8835_v12  ;;  %v8895_v12 = vld [vmem:[%s12033_s8 + $0xc4] ss:$16 sps:$4 sm:$0xff]  }
 0x2dd   :  { %4002 = vmatprep.subr.bf16.mxu1 %v8838_v13  ;;  %v8898_v13 = vld [vmem:[%s12033_s8 + $0x2c4] ss:$16 sps:$4 sm:$0xff]  }
 0x2df   :  { %3962 = vmatpush1.bf16.msra.mxu0 %v8833_v14  ;;  %v8893_v14 = vld [vmem:[%s12033_s8 + $0xc0] ss:$16 sps:$4 sm:$0xff]  }
 0x2e0   :  { %4003 = vmatpush1.bf16.msra.mxu1 %v8836_v15  ;;  %3963 = vmatprep.subr.bf16.mxu0 %v8841_v16  ;;  %v8896_v15 = vld [vmem:[%s12033_s8 + $0x2c0] ss:$16 sps:$4 sm:$0xff]   ;;  %v8901_v16 = vld [vmem:[%s12033_s8 + $0xa4] ss:$16 sps:$4 sm:$0xff]  }
 0x2e1   :  { %4004 = vmatprep.subr.bf16.mxu1 %v8844_v17  ;;  %v8904_v17 = vld [vmem:[%s12033_s8 + $0x2a4] ss:$16 sps:$4 sm:$0xff]  }
 0x2e3   :  { %3964 = vmatpush2.bf16.msra.mxu0 %v8839_v22  ;;  %v8899_v22 = vld [vmem:[%s12033_s8 + $0xa0] ss:$16 sps:$4 sm:$0xff]  }
 0x2e4   :  { %4005 = vmatpush2.bf16.msra.mxu1 %v8842_v23  ;;  %3965 = vmatprep.subr.bf16.mxu0 %v8847_v26  ;;  %v8902_v23 = vld [vmem:[%s12033_s8 + $0x2a0] ss:$16 sps:$4 sm:$0xff]   ;;  %v8907_v26 = vld [vmem:[%s12033_s8 + $0x84] ss:$16 sps:$4 sm:$0xff]  }
 0x2e5   :  { %4006 = vmatprep.subr.bf16.mxu1 %v8850_v27  ;;  %v8910_v27 = vld [vmem:[%s12033_s8 + $0x284] ss:$16 sps:$4 sm:$0xff]  }
 0x2e7   :  { %3966 = vmatpush2.bf16.msra.mxu0 %v8845_v28  ;;  %v8905_v28 = vld [vmem:[%s12033_s8 + $0x80] ss:$16 sps:$4 sm:$0xff]  }
 0x2e8   :  { %4007 = vmatpush2.bf16.msra.mxu1 %v8848_v30  ;;  %3967 = vmatprep.subr.bf16.mxu0 %v8853_v31  ;;  %v8908_v30 = vld [vmem:[%s12033_s8 + $0x280] ss:$16 sps:$4 sm:$0xff]   ;;  %v8913_v31 = vld [vmem:[%s12033_s8 + $0x64] ss:$16 sps:$4 sm:$0xff]  }
 0x2e9   :  { %4008 = vmatprep.subr.bf16.mxu1 %v8856_v56  ;;  %v8916_v56 = vld [vmem:[%s12033_s8 + $0x264] ss:$16 sps:$4 sm:$0xff]  }
 0x2eb   :  { %3968 = vmatpush2.bf16.msra.mxu0 %v8851_v32  ;;  %v8911_v32 = vld [vmem:[%s12033_s8 + $0x60] ss:$16 sps:$4 sm:$0xff]  }
 0x2ec   :  { %4009 = vmatpush2.bf16.msra.mxu1 %v8854_v34  ;;  %3969 = vmatprep.subr.bf16.mxu0 %v8859_v35  ;;  %v8914_v34 = vld [vmem:[%s12033_s8 + $0x260] ss:$16 sps:$4 sm:$0xff]   ;;  %v8919_v35 = vld [vmem:[%s12033_s8 + $0x44] ss:$16 sps:$4 sm:$0xff]  }
 0x2ed   :  { %4010 = vmatprep.subr.bf16.mxu1 %v8862_v37  ;;  %v8922_v37 = vld [vmem:[%s12033_s8 + $0x244] ss:$16 sps:$4 sm:$0xff]  }
 0x2ef   :  { %3970 = vmatpush2.bf16.msra.mxu0 %v8857_v38  ;;  %v8917_v38 = vld [vmem:[%s12033_s8 + $0x40] ss:$16 sps:$4 sm:$0xff]  }
 0x2f0   :  { %4011 = vmatpush2.bf16.msra.mxu1 %v8860_v39  ;;  %3971 = vmatprep.subr.bf16.mxu0 %v8865_v20  ;;  %v8920_v39 = vld [vmem:[%s12033_s8 + $0x240] ss:$16 sps:$4 sm:$0xff]   ;;  %v8925_v20 = vld [vmem:[%s12033_s8 + $0x24] ss:$16 sps:$4 sm:$0xff]  }
 0x2f1   :  { %4012 = vmatprep.subr.bf16.mxu1 %v8868_v41  ;;  %v8928_v41 = vld [vmem:[%s12033_s8 + $0x224] ss:$16 sps:$4 sm:$0xff]  }
 0x2f3   :  { %3972 = vmatpush2.bf16.msra.mxu0 %v8863_v42  ;;  %v8923_v42 = vld [vmem:[%s12033_s8 + $0x20] ss:$16 sps:$4 sm:$0xff]  }
 0x2f4   :  { %4013 = vmatpush2.bf16.msra.mxu1 %v8866_v21  ;;  %3973 = vmatprep.subr.bf16.mxu0 %v8871_v43  ;;  %v8926_v21 = vld [vmem:[%s12033_s8 + $0x220] ss:$16 sps:$4 sm:$0xff]   ;;  %v8931_v43 = vld [vmem:[%s12033_s8 + $0x4] ss:$16 sps:$4 sm:$0xff]  }
 0x2f5   :  { %4014 = vmatprep.subr.bf16.mxu1 %v8874_v44  ;;  %v8934_v44 = vld [vmem:[%s12033_s8 + $0x204] ss:$16 sps:$4 sm:$0xff]  }
 0x2f7   :  { %3974 = vmatpush2.bf16.msra.mxu0 %v8869_v45  ;;  %v8929_v45 = vld [vmem:[%s12033_s8] ss:$16 sps:$4 sm:$0xff]  }
 0x2f8   :  { %4015 = vmatpush2.bf16.msra.mxu1 %v8872_v46  ;;  %3975 = vmatprep.subr.bf16.mxu0 %v8877_v47  ;;  %v8932_v46 = vld [vmem:[%s12033_s8 + $0x200] ss:$16 sps:$4 sm:$0xff]   ;;  %v8937_v47 = vld [vmem:[%s12033_s8 + $0x1e4] ss:$16 sps:$4 sm:$0xff]  }
 0x2f9   :  { %4016 = vmatprep.subr.bf16.mxu1 %v8880_v48  ;;  %v8940_v48 = vld [vmem:[%s12033_s8 + $0x3e4] ss:$16 sps:$4 sm:$0xff]  }
 0x2fb   :  { %3976 = vmatpush2.bf16.msra.mxu0 %v8875_v24  ;;  %v8935_v24 = vld [vmem:[%s12033_s8 + $0x1e0] ss:$16 sps:$4 sm:$0xff]  }
 0x2fc   :  { %4017 = vmatpush2.bf16.msra.mxu1 %v8878_v33  ;;  %3977 = vmatprep.subr.bf16.mxu0 %v8883_v49  ;;  %v8938_v33 = vld [vmem:[%s12033_s8 + $0x3e0] ss:$16 sps:$4 sm:$0xff]   ;;  %v8943_v49 = vld [vmem:[%s12033_s8 + $0x1c4] ss:$16 sps:$4 sm:$0xff]  }
 0x2fd   :  { %4018 = vmatprep.subr.bf16.mxu1 %v8886_v51  ;;  %v8946_v51 = vld [vmem:[%s12033_s8 + $0x3c4] ss:$16 sps:$4 sm:$0xff]  }
 0x2ff   :  { %3978 = vmatpush2.bf16.msra.mxu0 %v8881_v52  ;;  %v8941_v52 = vld [vmem:[%s12033_s8 + $0x1c0] ss:$16 sps:$4 sm:$0xff]  }
 0x300   :  { %4019 = vmatpush2.bf16.msra.mxu1 %v8884_v53  ;;  %4997 = vmatprep.subr.bf16.mxu0 %v8889_v7  ;;  %v8944_v53 = vld [vmem:[%s12033_s8 + $0x3c0] ss:$16 sps:$4 sm:$0xff]  }
 0x301   :  { %5038 = vmatprep.subr.bf16.mxu1 %v8892_v50  ;;  %v8968_v7 = vld [vmem:[%s12033_s8 + $0x340] ss:$16 sps:$4 sm:$0xff]   ;;  %v8973_v50 = vld [vmem:[%s12033_s8 + $0x124] ss:$16 sps:$4 sm:$0xff]  }
 0x302   :  { %3980 = vmatmul.mubr.bf16.vlgmr.msra.gmra.mxu0 %v3561_v54  ;;  %v2623_v55 = vpop.f32.mrf.mxu0  ;;  %v2664_v29 = vpop.f32.mrf.mxu1 }
 0x303   :  { %4021 = vmatmul.mubr.bf16.vlgmr.msra.gmra.mxu1 %v3561_v54  ;;  %4998 = vmatpush1.bf16.msra.mxu0 %v8887_v8  ;;  %v8949_v54 = vld [vmem:[%s12033_s8 + $0x1a4] ss:$16 sps:$4 sm:$0xff]   ;;  %v8971_v8 = vld [vmem:[%s12033_s8 + $0x120] ss:$16 sps:$4 sm:$0xff]  }
 0x304   :  { %v2625_v57 = vpop.f32.mrf.mxu0  ;;  %v2666_v40 = vpop.f32.mrf.mxu1  ;;  %5039 = vmatpush1.bf16.msra.mxu1 %v8890_v9  ;;  %4999 = vmatprep.subr.bf16.mxu0 %v8895_v12  ;;  %v8974_v9 = vld [vmem:[%s12033_s8 + $0x320] ss:$16 sps:$4 sm:$0xff]   ;;  %v8982_v12 = vld [vmem:[%s12033_s8 + $0x304] ss:$16 sps:$4 sm:$0xff]  }
 0x305   :  { %5040 = vmatprep.subr.bf16.mxu1 %v8898_v13  ;;  %v8977_v13 = vld [vmem:[%s12033_s8 + $0x100] ss:$16 sps:$4 sm:$0xff]  }
 0x306   :  { %v2627_v58 = vpop.f32.mrf.mxu0  ;;  %v2668_v59 = vpop.f32.mrf.mxu1 }
 0x307   :  { %5000 = vmatpush1.bf16.msra.mxu0 %v8893_v14  ;;  %v8958_v58 = vld [vmem:[%s12033_s8 + $0x384] ss:$16 sps:$4 sm:$0xff]   ;;  %v8953_v59 = vld [vmem:[%s12033_s8 + $0x180] ss:$16 sps:$4 sm:$0xff]  }
 0x308   :  { %v2628_v60 = vpop.f32.mrf.mxu0  ;;  %v2669_v61 = vpop.f32.mrf.mxu1  ;;  %5041 = vmatpush1.bf16.msra.mxu1 %v8896_v15  ;;  %5001 = vmatprep.subr.bf16.mxu0 %v8901_v16  ;;  %v8980_v14 = vld [vmem:[%s12033_s8 + $0x300] ss:$16 sps:$4 sm:$0xff]  }
 0x309   :  { %5042 = vmatprep.subr.bf16.mxu1 %v8904_v17  ;;  %v8956_v60 = vld [vmem:[%s12033_s8 + $0x380] ss:$16 sps:$4 sm:$0xff]   ;;  %v8961_v61 = vld [vmem:[%s12033_s8 + $0x164] ss:$16 sps:$4 sm:$0xff]  }
 0x30b   :  { %5002 = vmatpush1.bf16.msra.mxu0 %v8899_v22 }
 0x30c   :  { %5043 = vmatpush1.bf16.msra.mxu1 %v8902_v23  ;;  %5003 = vmatprep.subr.bf16.mxu0 %v8907_v26 }
 0x30d   :  { %5044 = vmatprep.subr.bf16.mxu1 %v8910_v27 }
 0x30f   :  { %5004 = vmatpush1.bf16.msra.mxu0 %v8905_v28  ;;  %v8985_v28 = vld [vmem:[%s12033_s8 + $0xec] ss:$16 sps:$4 sm:$0xff]  }
 0x310   :  { %5045 = vmatpush1.bf16.msra.mxu1 %v8908_v30  ;;  %5005 = vmatprep.subr.bf16.mxu0 %v8913_v31  ;;  %v8988_v31 = vld [vmem:[%s12033_s8 + $0x2ec] ss:$16 sps:$4 sm:$0xff]  }
 0x311   :  { %5046 = vmatprep.subr.bf16.mxu1 %v8916_v56 }
 0x313   :  { %5006 = vmatpush1.bf16.msra.mxu0 %v8911_v32  ;;  %v11453_v32 = vsub.s32 2, %v10415_v25 }
 0x314   :  { %5047 = vmatpush1.bf16.msra.mxu1 %v8914_v34  ;;  %5007 = vmatprep.subr.bf16.mxu0 %v8919_v35  ;;  %v11456_v34 = vsub.s32 3, %v10415_v25 }
 0x315   :  { %5048 = vmatprep.subr.bf16.mxu1 %v8922_v37 }
 0x317   :  { %5008 = vmatpush1.bf16.msra.mxu0 %v8917_v38 }
 0x318   :  { %5049 = vmatpush1.bf16.msra.mxu1 %v8920_v39  ;;  %5009 = vmatprep.subr.bf16.mxu0 %v8925_v20 }
 0x319   :  { %5050 = vmatprep.subr.bf16.mxu1 %v8928_v41 }
 0x31b   :  { %5010 = vmatpush1.bf16.msra.mxu0 %v8923_v42 }
 0x31c   :  { %5051 = vmatpush1.bf16.msra.mxu1 %v8926_v21  ;;  %5011 = vmatprep.subr.bf16.mxu0 %v8931_v43 }
 0x31d   :  { %5052 = vmatprep.subr.bf16.mxu1 %v8934_v44 }
 0x31f   :  { %5012 = vmatpush1.bf16.msra.mxu0 %v8929_v45 }
 0x320   :  { %5053 = vmatpush1.bf16.msra.mxu1 %v8932_v46  ;;  %5013 = vmatprep.subr.bf16.mxu0 %v8937_v47 }
 0x321   :  { %5054 = vmatprep.subr.bf16.mxu1 %v8940_v48 }
 0x323   :  { %5014 = vmatpush2.bf16.msra.mxu0 %v8935_v24 }
 0x324   :  { %5055 = vmatpush2.bf16.msra.mxu1 %v8938_v33  ;;  %5015 = vmatprep.subr.bf16.mxu0 %v8943_v49 }
 0x325   :  { %5056 = vmatprep.subr.bf16.mxu1 %v8946_v51 }
 0x327   :  { %5016 = vmatpush2.bf16.msra.mxu0 %v8941_v52 }
 0x328   :  { %5057 = vmatpush2.bf16.msra.mxu1 %v8944_v53  ;;  %5017 = vmatprep.subr.bf16.mxu0 %v8949_v54 }
 0x342   :  { %v3025_v62 = vpop.f32.mrf.mxu0  ;;  %v3066_v63 = vpop.f32.mrf.mxu1 }
 0x343   :  { %v11241_v0 = vadd.f32 %v3025_v62, %v2623_v55  ;;  %v11243_v1 = vadd.f32 %v3066_v63, %v2664_v29  ;;  %v8952_v55 = vld [vmem:[%s12033_s8 + $0x3a4] ss:$16 sps:$4 sm:$0xff]   ;;  %v8947_v29 = vld [vmem:[%s12033_s8 + $0x1a0] ss:$16 sps:$4 sm:$0xff]  }
 0x344   :  { %v3027_v2 = vpop.f32.mrf.mxu0  ;;  %v3068_v3 = vpop.f32.mrf.mxu1  ;;  %5058 = vmatprep.subr.bf16.mxu1 %v8952_v55  ;;  %5018 = vmatpush2.bf16.msra.mxu0 %v8947_v29  ;;  %v8964_v62 = vld [vmem:[%s12033_s8 + $0x364] ss:$16 sps:$4 sm:$0xff]   ;;  %v8959_v63 = vld [vmem:[%s12033_s8 + $0x160] ss:$16 sps:$4 sm:$0xff]  }
 0x345   :  { %v11245_v4 = vadd.f32 %v3027_v2, %v2625_v57  ;;  %v11247_v36 = vadd.f32 %v3068_v3, %v2666_v40  ;;  %v8950_v57 = vld [vmem:[%s12033_s8 + $0x3a0] ss:$16 sps:$4 sm:$0xff]   ;;  %v8955_v40 = vld [vmem:[%s12033_s8 + $0x184] ss:$16 sps:$4 sm:$0xff]  }
 0x346   :  { %v3029_v5 = vpop.f32.mrf.mxu0  ;;  %v3070_v6 = vpop.f32.mrf.mxu1  ;;  %5059 = vmatpush2.bf16.msra.mxu1 %v8950_v57  ;;  %5019 = vmatprep.subr.bf16.mxu0 %v8955_v40  ;;  %v8962_v2 = vld [vmem:[%s12033_s8 + $0x360] ss:$16 sps:$4 sm:$0xff]   ;;  %v8967_v3 = vld [vmem:[%s12033_s8 + $0x144] ss:$16 sps:$4 sm:$0xff]  }
 0x347   :  { %5060 = vmatprep.subr.bf16.mxu1 %v8958_v58  ;;  %v8970_v5 = vld [vmem:[%s12033_s8 + $0x344] ss:$16 sps:$4 sm:$0xff]   ;;  %v8965_v6 = vld [vmem:[%s12033_s8 + $0x140] ss:$16 sps:$4 sm:$0xff]  }
 0x348   :  { %v3030_v10 = vpop.f32.mrf.mxu0  ;;  %v3071_v11 = vpop.f32.mrf.mxu1  ;;  %5020 = vmatpush2.bf16.msra.mxu0 %v8953_v59 }
 0x349   :  { %5021 = vmatprep.subr.bf16.mxu0 %v8961_v61  ;;  %v8976_v10 = vld [vmem:[%s12033_s8 + $0x324] ss:$16 sps:$4 sm:$0xff]  }
 0x34a   :  { %5061 = vmatpush2.bf16.msra.mxu1 %v8956_v60  ;;  %v8979_v11 = vld [vmem:[%s12033_s8 + $0x104] ss:$16 sps:$4 sm:$0xff]  }
 0x34b   :  { %5062 = vmatprep.subr.bf16.mxu1 %v8964_v62 }
 0x34c   :  { %5022 = vmatpush2.bf16.msra.mxu0 %v8959_v63 }
 0x34d   :  { %5023 = vmatprep.subr.bf16.mxu0 %v8967_v3 }
 0x34e   :  { %5063 = vmatpush2.bf16.msra.mxu1 %v8962_v2 }
 0x34f   :  { %5064 = vmatprep.subr.bf16.mxu1 %v8970_v5 }
 0x350   :  { %5024 = vmatpush2.bf16.msra.mxu0 %v8965_v6 }
 0x351   :  { %5025 = vmatprep.subr.bf16.mxu0 %v8973_v50 }
 0x352   :  { %5065 = vmatpush2.bf16.msra.mxu1 %v8968_v7 }
 0x353   :  { %5066 = vmatprep.subr.bf16.mxu1 %v8976_v10 }
 0x354   :  { %5026 = vmatpush2.bf16.msra.mxu0 %v8971_v8 }
 0x355   :  { %5027 = vmatprep.subr.bf16.mxu0 %v8979_v11 }
 0x356   :  { %5067 = vmatpush2.bf16.msra.mxu1 %v8974_v9 }
 0x357   :  { %5068 = vmatprep.subr.bf16.mxu1 %v8982_v12 }
 0x358   :  { %5028 = vmatpush2.bf16.msra.mxu0 %v8977_v13 }
 0x359   :  { %5079 = vmatprep.subr.bf16.mxu0 %v8985_v28 }
 0x35a   :  { %5069 = vmatpush2.bf16.msra.mxu1 %v8980_v14 }
 0x35b   :  { %5120 = vmatprep.subr.bf16.mxu1 %v8988_v31 }
 0x382   :  { %v3503_v15 = vpop.f32.mrf.mxu0 }
 0x383   :  { %v3551_v16 = vadd.f32 %v3503_v15, %v11241_v0  ;;  %v3544_v17 = vpop.f32.mrf.mxu1 }
 0x384   :  { %v3553_v22 = vadd.f32 %v3544_v17, %v11243_v1  ;;  %v3505_v23 = vpop.f32.mrf.mxu0  ;;  %v4033_v1 = vld [vmem:[%s12030_s5] ss:$4 sm:$0xf] }
 0x385   :  { %v3546_v26 = vpop.f32.mrf.mxu1  ;;  %v4038_v35 = vrot.slane %v4033_v1, %v10424_v18  ;;  %v4046_v38 = vrot.slane %v4033_v1, %v11453_v32  ;;  %v3552_v39 = vadd.f32 %v3505_v23, %v11245_v4  ;;  %v4042_v42 = vrot.slane %v4033_v1, %v10427_v19 }
 0x386   :  { %v3507_v27 = vpop.f32.mrf.mxu0  ;;  %v3554_v21 = vadd.f32 %v3546_v26, %v11247_v36  ;;  %v4050_v45 = vrot.slane %v4033_v1, %v11456_v34 }
 0x387   :  { %v3548_v30 = vpop.f32.mrf.mxu1 }
 0x388   :  { %v3508_v56 = vpop.f32.mrf.mxu0 }
 0x389   :  { %v3549_v0 = vpop.f32.mrf.mxu1 }
 0x3c2   :  { %v3981_v37 = vpop.f32.mrf.mxu0 }
 0x3c3   :  { %v4029_v20 = vadd.f32 %v3981_v37, %v3551_v16  ;;  %v4022_v41 = vpop.f32.mrf.mxu1 }
 0x3c4   :  { %v4031_v43 = vadd.f32 %v4022_v41, %v3553_v22  ;;  %v3983_v44 = vpop.f32.mrf.mxu0 }
 0x3c5   :  { %v4055_v46 = vadd.f32 %v4038_v35, %v4029_v20  ;;  %v4030_v47 = vadd.f32 %v3983_v44, %v3552_v39  ;;  %v4024_v48 = vpop.f32.mrf.mxu1 }
 0x3c6   :  { %v4057_v24 = vadd.f32 %v4046_v38, %v4031_v43  ;;  %v4032_v33 = vadd.f32 %v4024_v48, %v3554_v21  ;;  %v3985_v49 = vpop.f32.mrf.mxu0 }
 0x3c7   :  { %v4064_v51 = vsel %vm4063_vm1, %v4055_v46, 0.0  ;;  %v4056_v4 = vadd.f32 %v4042_v42, %v4030_v47  ;;  %v4026_v52 = vpop.f32.mrf.mxu1 }
 0x3c8   :  { %v4065_v53 = vrot.slane %v4064_v51, 4  ;;  %v4078_v54 = vsel %vm4063_vm1, %v4057_v24, 0.0  ;;  %v4058_v55 = vadd.f32 %v4050_v45, %v4032_v33  ;;  %v3986_v36 = vpop.f32.mrf.mxu0 }
 0x3c9   :  { %v4079_v29 = vrot.slane %v4078_v54, 4  ;;  %v4071_v57 = vsel %vm4063_vm1, %v4056_v4, 0.0  ;;  %v4027_v40 = vpop.f32.mrf.mxu1 }
 0x3ca   :  { %v4066_v58 = vadd.f32 %v4065_v53, %v4064_v51  ;;  %v4072_v59 = vrot.slane %v4071_v57, 4  ;;  %v4085_v60 = vsel %vm4063_vm1, %v4058_v55, 0.0 }
 0x3cb   :  { %v4080_v61 = vadd.f32 %v4079_v29, %v4078_v54  ;;  %v4086_v62 = vrot.slane %v4085_v60, 4 }
 0x3cc   :  { %v4067_v63 = vrot.slane %v4066_v58, 2  ;;  %v4073_v2 = vadd.f32 %v4072_v59, %v4071_v57 }
 0x3cd   :  { %v4081_v3 = vrot.slane %v4080_v61, 2  ;;  %v4087_v5 = vadd.f32 %v4086_v62, %v4085_v60 }
 0x3ce   :  { %v4068_v6 = vadd.f32 %v4067_v63, %v4066_v58  ;;  %v4074_v7 = vrot.slane %v4073_v2, 2 }
 0x3cf   :  { %v4082_v50 = vadd.f32 %v4081_v3, %v4080_v61  ;;  %v4088_v8 = vrot.slane %v4087_v5, 2 }
 0x3d0   :  { %v4069_v9 = vrot.slane %v4068_v6, 1  ;;  %v4075_v10 = vadd.f32 %v4074_v7, %v4073_v2 }
 0x3d1   :  { %v4083_v11 = vrot.slane %v4082_v50, 1  ;;  %v4089_v12 = vadd.f32 %v4088_v8, %v4087_v5  ;;  %v7650_v8 = vld [vmem:[%s12030_s5 + $0x1] ss:$4 sm:$0xf] }
 0x3d2   :  { %v4070_v13 = vadd.f32 %v4069_v9, %v4068_v6  ;;  %v4076_v14 = vrot.slane %v4075_v10, 1  ;;  %v7651_v9 = vld [vmem:[%s12030_s5 + $0x2] ss:$4 sm:$0xf] }
 0x3d3   :  { %v4084_v15 = vadd.f32 %v4083_v11, %v4082_v50  ;;  %v4090_v16 = vrot.slane %v4089_v12, 1 }
 0x3d4   :  { %v4093_v17 = vmul.f32 0.5, %v4070_v13  ;;  %v4077_v22 = vadd.f32 %v4076_v14, %v4075_v10  ;;  %v4153_v10 = vrot.slane %v7650_v8, %v10424_v18 }
 0x3d5   :  { %v4095_v23 = vmul.f32 0.5, %v4084_v15  ;;  %v4091_v26 = vadd.f32 %v4090_v16, %v4089_v12  ;;  %v4161_v12 = vrot.slane %v7650_v8, %v11453_v32  ;;  %v4157_v15 = vrot.slane %v7650_v8, %v10427_v19 }
 0x3d6   :  { %v4097_v27 = vsub.f32 %v4055_v46, %v4093_v17  ;;  %v4094_v28 = vmul.f32 0.5, %v4077_v22  ;;  %v4178_v16 = vrot.slane %v7651_v9, %v10424_v18 }
 0x3d7   :  { %v4099_v30 = vsub.f32 %v4057_v24, %v4095_v23  ;;  %v4096_v31 = vmul.f32 0.5, %v4091_v26  ;;  %v4165_v23 = vrot.slane %v7650_v8, %v11456_v34  ;;  %v4186_v26 = vrot.slane %v7651_v9, %v11453_v32  ;;  %v9022_v8 = vld [vmem:[%s12033_s8 + $0x228] ss:$16 sps:$4 sm:$0xff]  }
 0x3d8   :  { %v4101_v56 = vmul.f32 %v4097_v27, %v4097_v27  ;;  %v4098_v0 = vsub.f32 %v4056_v4, %v4094_v28 }
 0x3d9   :  { %v4103_v1 = vmul.f32 %v4099_v30, %v4099_v30  ;;  %v4100_v35 = vsub.f32 %v4058_v55, %v4096_v31 }
 0x3da   :  { %v4105_v37 = vsel %vm4063_vm1, %v4101_v56, 0.0  ;;  %v4102_v38 = vmul.f32 %v4098_v0, %v4098_v0 }
 0x3db   :  { %v4106_v39 = vrot.slane %v4105_v37, 4  ;;  %v4119_v20 = vsel %vm4063_vm1, %v4103_v1, 0.0  ;;  %v4104_v41 = vmul.f32 %v4100_v35, %v4100_v35  ;;  %v4182_v1 = vrot.slane %v7651_v9, %v10427_v19 }
 0x3dc   :  { %v4120_v42 = vrot.slane %v4119_v20, 4  ;;  %v4112_v21 = vsel %vm4063_vm1, %v4102_v38, 0.0 }
 0x3dd   :  { %v4107_v43 = vadd.f32 %v4106_v39, %v4105_v37  ;;  %v4113_v44 = vrot.slane %v4112_v21, 4  ;;  %v4126_v45 = vsel %vm4063_vm1, %v4104_v41, 0.0  ;;  %v4190_v39 = vrot.slane %v7651_v9, %v11456_v34  ;;  %v9027_v9 = vld [vmem:[%s12033_s8 + $0xc] ss:$16 sps:$4 sm:$0xff]  }
 0x3de   :  { %v4121_v46 = vadd.f32 %v4120_v42, %v4119_v20  ;;  %v4127_v47 = vrot.slane %v4126_v45, 4 }
 0x3df   :  { %v4108_v48 = vrot.slane %v4107_v43, 2  ;;  %v4114_v24 = vadd.f32 %v4113_v44, %v4112_v21 }
 0x3e0   :  { %v4122_v33 = vrot.slane %v4121_v46, 2  ;;  %v4128_v49 = vadd.f32 %v4127_v47, %v4126_v45 }
 0x3e1   :  { %v4109_v51 = vadd.f32 %v4108_v48, %v4107_v43  ;;  %v4115_v4 = vrot.slane %v4114_v24, 2 }
 0x3e2   :  { %v4123_v52 = vadd.f32 %v4122_v33, %v4121_v46  ;;  %v4129_v53 = vrot.slane %v4128_v49, 2 }
 0x3e3   :  { %v4110_v54 = vrot.slane %v4109_v51, 1  ;;  %v4116_v55 = vadd.f32 %v4115_v4, %v4114_v24  ;;  %v8989_v4 = vld [vmem:[%s12033_s8 + $0xc8] ss:$16 sps:$4 sm:$0xff]  }
 0x3e4   :  { %v4124_v36 = vrot.slane %v4123_v52, 1  ;;  %v4130_v29 = vadd.f32 %v4129_v53, %v4128_v49  ;;  %v8991_v49 = vld [vmem:[%s12033_s8 + $0xcc] ss:$16 sps:$4 sm:$0xff]  }
 0x3e5   :  { %v4111_v57 = vadd.f32 %v4110_v54, %v4109_v51  ;;  %v4117_v40 = vrot.slane %v4116_v55, 1  ;;  %v8994_v51 = vld [vmem:[%s12033_s8 + $0x2cc] ss:$16 sps:$4 sm:$0xff]  }
 0x3e6   :  { %v4125_v58 = vadd.f32 %v4124_v36, %v4123_v52  ;;  %v4131_v59 = vrot.slane %v4130_v29, 1  ;;  %v8992_v52 = vld [vmem:[%s12033_s8 + $0x2c8] ss:$16 sps:$4 sm:$0xff]   ;;  %v8997_v53 = vld [vmem:[%s12033_s8 + $0xac] ss:$16 sps:$4 sm:$0xff]  }
 0x3e7   :  { %v4133_v60 = vmul.f32 0.5, %v4111_v57  ;;  %v4118_v61 = vadd.f32 %v4117_v40, %v4116_v55  ;;  %v9000_v54 = vld [vmem:[%s12033_s8 + $0x2ac] ss:$16 sps:$4 sm:$0xff]   ;;  %v8995_v55 = vld [vmem:[%s12033_s8 + $0xa8] ss:$16 sps:$4 sm:$0xff]  }
 0x3e8   :  { %v4135_v62 = vmul.f32 0.5, %v4125_v58  ;;  %v4132_v63 = vadd.f32 %v4131_v59, %v4130_v29  ;;  %v8998_v36 = vld [vmem:[%s12033_s8 + $0x2a8] ss:$16 sps:$4 sm:$0xff]   ;;  %v9003_v29 = vld [vmem:[%s12033_s8 + $0x8c] ss:$16 sps:$4 sm:$0xff]  }
 0x3e9   :  { %v4137_v2 = vadd.f32 1e-05, %v4133_v60  ;;  %v4134_v3 = vmul.f32 0.5, %v4118_v61  ;;  %v9006_v57 = vld [vmem:[%s12033_s8 + $0x28c] ss:$16 sps:$4 sm:$0xff]  }
 0x3ea   :  { %v4139_v5 = vadd.f32 1e-05, %v4135_v62  ;;  %v4136_v6 = vmul.f32 0.5, %v4132_v63  ;;  %v9001_v40 = vld [vmem:[%s12033_s8 + $0x88] ss:$16 sps:$4 sm:$0xff]  }
 0x3eb   :  { %9387 = vrsqrt.f32 %v4137_v2  ;;  %v4138_v7 = vadd.f32 1e-05, %v4134_v3  ;;  %v9004_v58 = vld [vmem:[%s12033_s8 + $0x288] ss:$16 sps:$4 sm:$0xff]   ;;  %v9009_v59 = vld [vmem:[%s12033_s8 + $0x6c] ss:$16 sps:$4 sm:$0xff]  }
 0x3ec   :  { %9389 = vrsqrt.f32 %v4139_v5  ;;  %v4140_v50 = vadd.f32 1e-05, %v4136_v6  ;;  %v9012_v60 = vld [vmem:[%s12033_s8 + $0x26c] ss:$16 sps:$4 sm:$0xff]   ;;  %v9007_v61 = vld [vmem:[%s12033_s8 + $0x68] ss:$16 sps:$4 sm:$0xff]  }
 0x3ed   :  { %9391 = vrsqrt.f32 %v4138_v7  ;;  %v9010_v62 = vld [vmem:[%s12033_s8 + $0x268] ss:$16 sps:$4 sm:$0xff]   ;;  %v9015_v63 = vld [vmem:[%s12033_s8 + $0x4c] ss:$16 sps:$4 sm:$0xff]  }
 0x3ee   :  { %9393 = vrsqrt.f32 %v4140_v50  ;;  %v9018_v2 = vld [vmem:[%s12033_s8 + $0x24c] ss:$16 sps:$4 sm:$0xff]   ;;  %v9013_v3 = vld [vmem:[%s12033_s8 + $0x48] ss:$16 sps:$4 sm:$0xff]  }
 0x3ef   :  { %v9016_v5 = vld [vmem:[%s12033_s8 + $0x248] ss:$16 sps:$4 sm:$0xff]   ;;  %v9021_v6 = vld [vmem:[%s12033_s8 + $0x2c] ss:$16 sps:$4 sm:$0xff]  }
 0x3f0   :  { %v9024_v7 = vld [vmem:[%s12033_s8 + $0x22c] ss:$16 sps:$4 sm:$0xff]   ;;  %v9019_v50 = vld [vmem:[%s12033_s8 + $0x28] ss:$16 sps:$4 sm:$0xff]  }
 0x3f8   :  { %v9388_v11 = vpop.eup %9387 }
 0x3f9   :  { %v9390_v13 = vpop.eup %9389  ;;  %v4145_v14 = vmul.f32 %v9388_v11, %v4097_v27  ;;  %v9025_v11 = vld [vmem:[%s12033_s8 + $0x8] ss:$16 sps:$4 sm:$0xff]  }
 0x3fa   :  { %v9392_v17 = vpop.eup %9391  ;;  %v4147_v22 = vmul.f32 %v9390_v13, %v4099_v30  ;;  %v9033_v13 = vld [vmem:[%s12033_s8 + $0x1ec] ss:$16 sps:$4 sm:$0xff]  }
 0x3fb   :  { %v9394_v28 = vpop.eup %9393  ;;  %v4170_v31 = vmul.f32 %v4153_v10, %v4145_v14  ;;  %v4146_v56 = vmul.f32 %v9392_v17, %v4098_v0  ;;  %v8983_v0 = vld [vmem:[%s12033_s8 + $0xe8] ss:$16 sps:$4 sm:$0xff]   ;;  %v9030_v10 = vld [vmem:[%s12033_s8 + $0x20c] ss:$16 sps:$4 sm:$0xff]  }
 0x3fc   :  { %v4172_v37 = vmul.f32 %v4161_v12, %v4147_v22  ;;  %v4148_v38 = vmul.f32 %v9394_v28, %v4100_v35  ;;  %v8986_v35 = vld [vmem:[%s12033_s8 + $0x2e8] ss:$16 sps:$4 sm:$0xff]   ;;  %v9036_v14 = vld [vmem:[%s12033_s8 + $0x3ec] ss:$16 sps:$4 sm:$0xff]  }
 0x3fd   :  { %v4171_v27 = vmul.f32 %v4157_v15, %v4146_v56  ;;  %v4195_v20 = vadd.f32 %v4178_v16, %v4170_v31  ;;  %v9028_v12 = vld [vmem:[%s12033_s8 + $0x208] ss:$16 sps:$4 sm:$0xff]   ;;  %v9039_v17 = vld [vmem:[%s12033_s8 + $0x1cc] ss:$16 sps:$4 sm:$0xff]  }
 0x3fe   :  { %v4173_v41 = vmul.f32 %v4165_v23, %v4148_v38  ;;  %v4197_v42 = vadd.f32 %v4186_v26, %v4172_v37  ;;  %v9031_v15 = vld [vmem:[%s12033_s8 + $0x1e8] ss:$16 sps:$4 sm:$0xff]   ;;  %v9042_v22 = vld [vmem:[%s12033_s8 + $0x3cc] ss:$16 sps:$4 sm:$0xff]  }
 0x3ff   :  { %v4196_v21 = vadd.f32 %v4182_v1, %v4171_v27  ;;  %v4199_v30 = vmax.f32 %v4195_v20, 0.0  ;;  %v9034_v16 = vld [vmem:[%s12033_s8 + $0x3e8] ss:$16 sps:$4 sm:$0xff]   ;;  %v9045_v28 = vld [vmem:[%s12033_s8 + $0x1ac] ss:$16 sps:$4 sm:$0xff]  }
 0x400   :  { %v4198_v43 = vadd.f32 %v4190_v39, %v4173_v41  ;;  %v4201_v45 = vmax.f32 %v4197_v42, 0.0  ;;  %v9037_v23 = vld [vmem:[%s12033_s8 + $0x1c8] ss:$16 sps:$4 sm:$0xff]   ;;  %v9048_v31 = vld [vmem:[%s12033_s8 + $0x3ac] ss:$16 sps:$4 sm:$0xff]  }
 0x401   :  { %v4200_v44 = vmax.f32 %v4196_v21, 0.0  ;;  %v11492_v24 = vpack.c.bf16 %v4199_v30, %v4199_v30  ;;  %v9040_v26 = vld [vmem:[%s12033_s8 + $0x3c8] ss:$16 sps:$4 sm:$0xff]   ;;  %v9051_v37 = vld [vmem:[%s12033_s8 + $0x18c] ss:$16 sps:$4 sm:$0xff]  }
 0x402   :  { %v4202_v46 = vmax.f32 %v4198_v43, 0.0  ;;  %v11494_v33 = vpack.c.bf16 %v4201_v45, %v4201_v45  ;;  %v9043_v56 = vld [vmem:[%s12033_s8 + $0x1a8] ss:$16 sps:$4 sm:$0xff]   ;;  %v9054_v38 = vld [vmem:[%s12033_s8 + $0x38c] ss:$16 sps:$4 sm:$0xff]  }
 0x403   :  { %v4204_v47 = vpack.c.bf16 %v4200_v44, %v4200_v44  ;;  %v9046_v1 = vld [vmem:[%s12033_s8 + $0x3a8] ss:$16 sps:$4 sm:$0xff]   ;;  %v9057_v20 = vld [vmem:[%s12033_s8 + $0x16c] ss:$16 sps:$4 sm:$0xff]  }
 0x404   :  { %v4206_v48 = vpack.c.bf16 %v4202_v46, %v4202_v46  ;;  %v9049_v39 = vld [vmem:[%s12033_s8 + $0x188] ss:$16 sps:$4 sm:$0xff]   ;;  %v9060_v41 = vld [vmem:[%s12033_s8 + $0x36c] ss:$16 sps:$4 sm:$0xff]  }
 0x405   :  { %5029 = vmatprep.mubr.bf16.mxu0 %v4204_v47  ;;  %v9052_v27 = vld [vmem:[%s12033_s8 + $0x388] ss:$16 sps:$4 sm:$0xff]   ;;  %v9063_v43 = vld [vmem:[%s12033_s8 + $0x14c] ss:$16 sps:$4 sm:$0xff]  }
 0x406   :  { %5070 = vmatprep.mubr.bf16.mxu1 %v4206_v48  ;;  %5030 = vmatmul.mubr.bf16.vlgmr.msra.gmra.mxu0 %v11492_v24  ;;  %v9055_v42 = vld [vmem:[%s12033_s8 + $0x168] ss:$16 sps:$4 sm:$0xff]   ;;  %v9066_v30 = vld [vmem:[%s12033_s8 + $0x34c] ss:$16 sps:$4 sm:$0xff]  }
 0x407   :  { %5071 = vmatmul.mubr.bf16.vlgmr.msra.gmra.mxu1 %v11494_v33  ;;  %5080 = vmatpush1.bf16.msra.mxu0 %v8983_v0  ;;  %v9058_v21 = vld [vmem:[%s12033_s8 + $0x368] ss:$16 sps:$4 sm:$0xff]   ;;  %v9069_v46 = vld [vmem:[%s12033_s8 + $0x12c] ss:$16 sps:$4 sm:$0xff]  }
 0x408   :  { %5121 = vmatpush1.bf16.msra.mxu1 %v8986_v35  ;;  %5111 = vmatprep.mubr.bf16.mxu0 %v4204_v47  ;;  %v9061_v44 = vld [vmem:[%s12033_s8 + $0x148] ss:$16 sps:$4 sm:$0xff]   ;;  %v9072_v47 = vld [vmem:[%s12033_s8 + $0x32c] ss:$16 sps:$4 sm:$0xff]  }
 0x409   :  { %5152 = vmatprep.mubr.bf16.mxu1 %v4206_v48  ;;  %5081 = vmatprep.subr.bf16.mxu0 %v8991_v49  ;;  %v9064_v45 = vld [vmem:[%s12033_s8 + $0x348] ss:$16 sps:$4 sm:$0xff]   ;;  %v9075_v35 = vld [vmem:[%s12033_s8 + $0x10c] ss:$16 sps:$4 sm:$0xff]  }
 0x40a   :  { %5122 = vmatprep.subr.bf16.mxu1 %v8994_v51  ;;  %v9067_v0 = vld [vmem:[%s12033_s8 + $0x128] ss:$16 sps:$4 sm:$0xff]   ;;  %v9078_v49 = vld [vmem:[%s12033_s8 + $0x30c] ss:$16 sps:$4 sm:$0xff]  }
 0x40b   :  { %5082 = vmatpush1.bf16.msra.mxu0 %v8989_v4  ;;  %v9070_v48 = vld [vmem:[%s12033_s8 + $0x328] ss:$16 sps:$4 sm:$0xff]  }
 0x40c   :  { %5123 = vmatpush1.bf16.msra.mxu1 %v8992_v52  ;;  %5083 = vmatprep.subr.bf16.mxu0 %v8997_v53  ;;  %v9073_v51 = vld [vmem:[%s12033_s8 + $0x108] ss:$16 sps:$4 sm:$0xff]   ;;  %v9081_v52 = vld [vmem:[#allocation4 + $0xe4] ss:$16 sps:$4 sm:$0xff]   ;;  %v9084_v53 = vld [vmem:[#allocation4 + $0xec] ss:$16 sps:$4 sm:$0xff]  }
 0x40d   :  { %5124 = vmatprep.subr.bf16.mxu1 %v9000_v54  ;;  %v9076_v4 = vld [vmem:[%s12033_s8 + $0x308] ss:$16 sps:$4 sm:$0xff]  }
 0x40e   :  { %v9079_v54 = vld [vmem:[#allocation4 + $0xe0] ss:$16 sps:$4 sm:$0xff]  }
 0x40f   :  { %5084 = vmatpush1.bf16.msra.mxu0 %v8995_v55  ;;  %v9082_v55 = vld [vmem:[#allocation4 + $0xe8] ss:$16 sps:$4 sm:$0xff]  }
 0x410   :  { %5125 = vmatpush1.bf16.msra.mxu1 %v8998_v36  ;;  %5085 = vmatprep.subr.bf16.mxu0 %v9003_v29  ;;  %v9087_v36 = vld [vmem:[#allocation4 + $0xc4] ss:$16 sps:$4 sm:$0xff]   ;;  %v9090_v29 = vld [vmem:[#allocation4 + $0xcc] ss:$16 sps:$4 sm:$0xff]  }
 0x411   :  { %5126 = vmatprep.subr.bf16.mxu1 %v9006_v57  ;;  %v9085_v57 = vld [vmem:[#allocation4 + $0xc0] ss:$16 sps:$4 sm:$0xff]  }
 0x413   :  { %5086 = vmatpush1.bf16.msra.mxu0 %v9001_v40  ;;  %v9088_v40 = vld [vmem:[#allocation4 + $0xc8] ss:$16 sps:$4 sm:$0xff]  }
 0x414   :  { %5127 = vmatpush1.bf16.msra.mxu1 %v9004_v58  ;;  %5087 = vmatprep.subr.bf16.mxu0 %v9009_v59  ;;  %v9093_v58 = vld [vmem:[#allocation4 + $0xa4] ss:$16 sps:$4 sm:$0xff]   ;;  %v9096_v59 = vld [vmem:[#allocation4 + $0xac] ss:$16 sps:$4 sm:$0xff]  }
 0x415   :  { %5128 = vmatprep.subr.bf16.mxu1 %v9012_v60  ;;  %v9510_v60 = vmov 0  }
 0x417   :  { %5088 = vmatpush1.bf16.msra.mxu0 %v9007_v61  ;;  %v9091_v61 = vld [vmem:[#allocation4 + $0xa0] ss:$16 sps:$4 sm:$0xff]  }
 0x418   :  { %5129 = vmatpush1.bf16.msra.mxu1 %v9010_v62  ;;  %5089 = vmatprep.subr.bf16.mxu0 %v9015_v63  ;;  %v9094_v62 = vld [vmem:[#allocation4 + $0xa8] ss:$16 sps:$4 sm:$0xff]   ;;  %v9099_v63 = vld [vmem:[#allocation4 + $0x84] ss:$16 sps:$4 sm:$0xff]  }
 0x419   :  { %5130 = vmatprep.subr.bf16.mxu1 %v9018_v2  ;;  %v9100_v2 = vld [vmem:[#allocation4 + $0x88] ss:$16 sps:$4 sm:$0xff]  }
 0x41b   :  { %5090 = vmatpush1.bf16.msra.mxu0 %v9013_v3  ;;  %v9105_v3 = vld [vmem:[#allocation4 + $0x64] ss:$16 sps:$4 sm:$0xff]  }
 0x41c   :  { %5131 = vmatpush1.bf16.msra.mxu1 %v9016_v5  ;;  %5091 = vmatprep.subr.bf16.mxu0 %v9021_v6  ;;  %v9108_v5 = vld [vmem:[#allocation4 + $0x6c] ss:$16 sps:$4 sm:$0xff]   ;;  %v9103_v6 = vld [vmem:[#allocation4 + $0x60] ss:$16 sps:$4 sm:$0xff]  }
 0x41d   :  { %5132 = vmatprep.subr.bf16.mxu1 %v9024_v7  ;;  %v9106_v7 = vld [vmem:[#allocation4 + $0x68] ss:$16 sps:$4 sm:$0xff]  }
 0x41f   :  { %5092 = vmatpush1.bf16.msra.mxu0 %v9019_v50  ;;  %v9111_v50 = vld [vmem:[#allocation4 + $0x44] ss:$16 sps:$4 sm:$0xff]  }
 0x420   :  { %5133 = vmatpush1.bf16.msra.mxu1 %v9022_v8  ;;  %5093 = vmatprep.subr.bf16.mxu0 %v9027_v9  ;;  %v9114_v8 = vld [vmem:[#allocation4 + $0x4c] ss:$16 sps:$4 sm:$0xff]   ;;  %v9109_v9 = vld [vmem:[#allocation4 + $0x40] ss:$16 sps:$4 sm:$0xff]  }
 0x421   :  { %5134 = vmatprep.subr.bf16.mxu1 %v9030_v10  ;;  %v9112_v10 = vld [vmem:[#allocation4 + $0x48] ss:$16 sps:$4 sm:$0xff]  }
 0x423   :  { %5094 = vmatpush1.bf16.msra.mxu0 %v9025_v11  ;;  %v9117_v11 = vld [vmem:[#allocation4 + $0x24] ss:$16 sps:$4 sm:$0xff]  }
 0x424   :  { %5135 = vmatpush1.bf16.msra.mxu1 %v9028_v12  ;;  %5095 = vmatprep.subr.bf16.mxu0 %v9033_v13  ;;  %v9120_v12 = vld [vmem:[#allocation4 + $0x2c] ss:$16 sps:$4 sm:$0xff]   ;;  %v9115_v13 = vld [vmem:[#allocation4 + $0x20] ss:$16 sps:$4 sm:$0xff]  }
 0x425   :  { %5136 = vmatprep.subr.bf16.mxu1 %v9036_v14  ;;  %v9118_v14 = vld [vmem:[#allocation4 + $0x28] ss:$16 sps:$4 sm:$0xff]  }
 0x427   :  { %5096 = vmatpush2.bf16.msra.mxu0 %v9031_v15  ;;  %v9123_v15 = vld [vmem:[#allocation4 + $0x4] ss:$16 sps:$4 sm:$0xff]  }
 0x428   :  { %5137 = vmatpush2.bf16.msra.mxu1 %v9034_v16  ;;  %5097 = vmatprep.subr.bf16.mxu0 %v9039_v17  ;;  %v9126_v16 = vld [vmem:[#allocation4 + $0xc] ss:$16 sps:$4 sm:$0xff]   ;;  %v9121_v17 = vld [vmem:[#allocation4] ss:$16 sps:$4 sm:$0xff]  }
 0x429   :  { %5138 = vmatprep.subr.bf16.mxu1 %v9042_v22  ;;  %v9124_v22 = vld [vmem:[#allocation4 + $0x8] ss:$16 sps:$4 sm:$0xff]  }
 0x42b   :  { %5098 = vmatpush2.bf16.msra.mxu0 %v9037_v23  ;;  %v9129_v23 = vld [vmem:[#allocation9 + $0xac] ss:$12 sps:$4 sm:$0xff]  }
 0x42c   :  { %5139 = vmatpush2.bf16.msra.mxu1 %v9040_v26  ;;  %5099 = vmatprep.subr.bf16.mxu0 %v9045_v28  ;;  %v9132_v26 = vld [vmem:[#allocation9 + $0x22c] ss:$12 sps:$4 sm:$0xff]   ;;  %v5165_v28 = vld [vmem:[%s12026_s1] sm:$0x1] }
 0x42d   :  { %5140 = vmatprep.subr.bf16.mxu1 %v9048_v31  ;;  %v9127_v31 = vld [vmem:[#allocation9 + $0xa8] ss:$12 sps:$4 sm:$0xff]  }
 0x42f   :  { %5100 = vmatpush2.bf16.msra.mxu0 %v9043_v56  ;;  %v9130_v56 = vld [vmem:[#allocation9 + $0x228] ss:$12 sps:$4 sm:$0xff]  }
 0x430   :  { %5141 = vmatpush2.bf16.msra.mxu1 %v9046_v1  ;;  %5101 = vmatprep.subr.bf16.mxu0 %v9051_v37  ;;  %v9135_v1 = vld [vmem:[#allocation9 + $0x94] ss:$12 sps:$4 sm:$0xff]  }
 0x431   :  { %5142 = vmatprep.subr.bf16.mxu1 %v9054_v38  ;;  %v9138_v37 = vld [vmem:[#allocation9 + $0x214] ss:$12 sps:$4 sm:$0xff]   ;;  %v9133_v38 = vld [vmem:[#allocation9 + $0x90] ss:$12 sps:$4 sm:$0xff]  }
 0x433   :  { %5102 = vmatpush2.bf16.msra.mxu0 %v9049_v39  ;;  %v9136_v39 = vld [vmem:[#allocation9 + $0x210] ss:$12 sps:$4 sm:$0xff]  }
 0x434   :  { %5143 = vmatpush2.bf16.msra.mxu1 %v9052_v27  ;;  %5103 = vmatprep.subr.bf16.mxu0 %v9057_v20  ;;  %v9141_v27 = vld [vmem:[#allocation9 + $0x7c] ss:$12 sps:$4 sm:$0xff]  }
 0x435   :  { %5144 = vmatprep.subr.bf16.mxu1 %v9060_v41  ;;  %v9144_v20 = vld [vmem:[#allocation9 + $0x1fc] ss:$12 sps:$4 sm:$0xff]   ;;  %v9139_v41 = vld [vmem:[#allocation9 + $0x78] ss:$12 sps:$4 sm:$0xff]  }
 0x437   :  { %5104 = vmatpush2.bf16.msra.mxu0 %v9055_v42  ;;  %v9142_v42 = vld [vmem:[#allocation9 + $0x1f8] ss:$12 sps:$4 sm:$0xff]  }
 0x438   :  { %5145 = vmatpush2.bf16.msra.mxu1 %v9058_v21  ;;  %5105 = vmatprep.subr.bf16.mxu0 %v9063_v43  ;;  %v9147_v21 = vld [vmem:[#allocation9 + $0x64] ss:$12 sps:$4 sm:$0xff]  }
 0x439   :  { %5146 = vmatprep.subr.bf16.mxu1 %v9066_v30  ;;  %v9150_v43 = vld [vmem:[#allocation9 + $0x1e4] ss:$12 sps:$4 sm:$0xff]   ;;  %v9145_v30 = vld [vmem:[#allocation9 + $0x60] ss:$12 sps:$4 sm:$0xff]  }
 0x43b   :  { %5106 = vmatpush2.bf16.msra.mxu0 %v9061_v44  ;;  %v9148_v44 = vld [vmem:[#allocation9 + $0x1e0] ss:$12 sps:$4 sm:$0xff]  }
 0x43c   :  { %5147 = vmatpush2.bf16.msra.mxu1 %v9064_v45  ;;  %5107 = vmatprep.subr.bf16.mxu0 %v9069_v46  ;;  %v9153_v45 = vld [vmem:[#allocation9 + $0x4c] ss:$12 sps:$4 sm:$0xff]  }
 0x43d   :  { %5148 = vmatprep.subr.bf16.mxu1 %v9072_v47  ;;  %v9156_v46 = vld [vmem:[#allocation9 + $0x1cc] ss:$12 sps:$4 sm:$0xff]   ;;  %v9151_v47 = vld [vmem:[#allocation9 + $0x48] ss:$12 sps:$4 sm:$0xff]  }
 0x43f   :  { %5108 = vmatpush2.bf16.msra.mxu0 %v9067_v0  ;;  %v9154_v0 = vld [vmem:[#allocation9 + $0x1c8] ss:$12 sps:$4 sm:$0xff]  }
 0x440   :  { %5149 = vmatpush2.bf16.msra.mxu1 %v9070_v48  ;;  %5109 = vmatprep.subr.bf16.mxu0 %v9075_v35  ;;  %v9159_v48 = vld [vmem:[#allocation9 + $0x34] ss:$12 sps:$4 sm:$0xff]  }
 0x441   :  { %5150 = vmatprep.subr.bf16.mxu1 %v9078_v49  ;;  %v9162_v35 = vld [vmem:[#allocation9 + $0x1b4] ss:$12 sps:$4 sm:$0xff]   ;;  %v9157_v49 = vld [vmem:[#allocation9 + $0x30] ss:$12 sps:$4 sm:$0xff]  }
 0x443   :  { %5110 = vmatpush2.bf16.msra.mxu0 %v9073_v51  ;;  %v9160_v51 = vld [vmem:[#allocation9 + $0x1b0] ss:$12 sps:$4 sm:$0xff]  }
 0x444   :  { %5151 = vmatpush2.bf16.msra.mxu1 %v9076_v4  ;;  %5380 = vmatprep.subr.bf16.mxu0 %v9081_v52  ;;  %v9165_v4 = vld [vmem:[#allocation9 + $0x1c] ss:$12 sps:$4 sm:$0xff]  }
 0x445   :  { %5421 = vmatprep.subr.bf16.mxu1 %v9084_v53  ;;  %v9168_v52 = vld [vmem:[#allocation9 + $0x19c] ss:$12 sps:$4 sm:$0xff]   ;;  %v9163_v53 = vld [vmem:[#allocation9 + $0x18] ss:$12 sps:$4 sm:$0xff]  }
 0x446   :  { %5112 = vmatmul.mubr.bf16.vlgmr.msra.gmra.mxu0 %v11492_v24  ;;  %v9102_v24 = vld [vmem:[#allocation4 + $0x8c] ss:$16 sps:$4 sm:$0xff]  }
 0x447   :  { %5153 = vmatmul.mubr.bf16.vlgmr.msra.gmra.mxu1 %v11494_v33  ;;  %5381 = vmatpush1.bf16.msra.mxu0 %v9079_v54  ;;  %v9097_v33 = vld [vmem:[#allocation4 + $0x80] ss:$16 sps:$4 sm:$0xff]  }
 0x448   :  { %5422 = vmatpush1.bf16.msra.mxu1 %v9082_v55  ;;  %5382 = vmatprep.subr.bf16.mxu0 %v9087_v36  ;;  %v9166_v54 = vld [vmem:[#allocation9 + $0x198] ss:$12 sps:$4 sm:$0xff]  }
 0x449   :  { %5423 = vmatprep.subr.bf16.mxu1 %v9090_v29  ;;  %5412 = vmatprep.mubr.bf16.mxu0 %v9510_v60  ;;  %v9171_v55 = vld [vmem:[#allocation9 + $0x4] ss:$12 sps:$4 sm:$0xff]   ;;  %v9169_v29 = vld [vmem:[#allocation9] ss:$12 sps:$4 sm:$0xff]  }
 0x44a   :  { %5453 = vmatprep.mubr.bf16.mxu1 %v9510_v60  ;;  %v9174_v36 = vld [vmem:[#allocation9 + $0x184] ss:$12 sps:$4 sm:$0xff]   ;;  %v9178_v60 = vld [vmem:[#allocation9 + $0x2e8] ss:$12 sps:$4 sm:$0xff]  }
 0x44b   :  { %5383 = vmatpush1.bf16.msra.mxu0 %v9085_v57  ;;  %v9172_v57 = vld [vmem:[#allocation9 + $0x180] ss:$12 sps:$4 sm:$0xff]  }
 0x44c   :  { %5424 = vmatpush1.bf16.msra.mxu1 %v9088_v40  ;;  %5384 = vmatprep.subr.bf16.mxu0 %v9093_v58  ;;  %v9177_v40 = vld [vmem:[#allocation9 + $0x16c] ss:$12 sps:$4 sm:$0xff]  }
 0x44d   :  { %5425 = vmatprep.subr.bf16.mxu1 %v9096_v59  ;;  %v9180_v58 = vld [vmem:[#allocation9 + $0x2ec] ss:$12 sps:$4 sm:$0xff]   ;;  %v9175_v59 = vld [vmem:[#allocation9 + $0x168] ss:$12 sps:$4 sm:$0xff]  }
 0x44f   :  { %5385 = vmatpush1.bf16.msra.mxu0 %v9091_v61  ;;  %v9183_v61 = vld [vmem:[#allocation9 + $0x154] ss:$12 sps:$4 sm:$0xff]  }
 0x450   :  { %5426 = vmatpush1.bf16.msra.mxu1 %v9094_v62  ;;  %5386 = vmatprep.subr.bf16.mxu0 %v9099_v63  ;;  %v9181_v62 = vld [vmem:[#allocation9 + $0x150] ss:$12 sps:$4 sm:$0xff]  }
 0x451   :  { %5427 = vmatprep.subr.bf16.mxu1 %v9102_v24  ;;  %v9184_v63 = vld [vmem:[#allocation9 + $0x2d0] ss:$12 sps:$4 sm:$0xff]   ;;  %v9186_v24 = vld [vmem:[#allocation9 + $0x2d4] ss:$12 sps:$4 sm:$0xff]  }
 0x453   :  { %5387 = vmatpush1.bf16.msra.mxu0 %v9097_v33  ;;  %v9189_v33 = vld [vmem:[#allocation9 + $0x13c] ss:$12 sps:$4 sm:$0xff]  }
 0x454   :  { %5428 = vmatpush1.bf16.msra.mxu1 %v9100_v2  ;;  %5388 = vmatprep.subr.bf16.mxu0 %v9105_v3  ;;  %v9192_v2 = vld [vmem:[#allocation9 + $0x2bc] ss:$12 sps:$4 sm:$0xff]   ;;  %v9187_v3 = vld [vmem:[#allocation9 + $0x138] ss:$12 sps:$4 sm:$0xff]  }
 0x455   :  { %5429 = vmatprep.subr.bf16.mxu1 %v9108_v5  ;;  %v9190_v5 = vld [vmem:[#allocation9 + $0x2b8] ss:$12 sps:$4 sm:$0xff]  }
 0x457   :  { %5389 = vmatpush1.bf16.msra.mxu0 %v9103_v6  ;;  %v9195_v6 = vld [vmem:[#allocation9 + $0x124] ss:$12 sps:$4 sm:$0xff]  }
 0x458   :  { %5430 = vmatpush1.bf16.msra.mxu1 %v9106_v7  ;;  %5390 = vmatprep.subr.bf16.mxu0 %v9111_v50  ;;  %v9198_v7 = vld [vmem:[#allocation9 + $0x2a4] ss:$12 sps:$4 sm:$0xff]   ;;  %v9193_v50 = vld [vmem:[#allocation9 + $0x120] ss:$12 sps:$4 sm:$0xff]  }
 0x459   :  { %5431 = vmatprep.subr.bf16.mxu1 %v9114_v8  ;;  %v9196_v8 = vld [vmem:[#allocation9 + $0x2a0] ss:$12 sps:$4 sm:$0xff]  }
 0x45b   :  { %5391 = vmatpush1.bf16.msra.mxu0 %v9109_v9  ;;  %v9201_v9 = vld [vmem:[#allocation9 + $0x10c] ss:$12 sps:$4 sm:$0xff]  }
 0x45c   :  { %5432 = vmatpush1.bf16.msra.mxu1 %v9112_v10  ;;  %5392 = vmatprep.subr.bf16.mxu0 %v9117_v11  ;;  %v9204_v10 = vld [vmem:[#allocation9 + $0x28c] ss:$12 sps:$4 sm:$0xff]   ;;  %v9199_v11 = vld [vmem:[#allocation9 + $0x108] ss:$12 sps:$4 sm:$0xff]  }
 0x45d   :  { %5433 = vmatprep.subr.bf16.mxu1 %v9120_v12  ;;  %v9202_v12 = vld [vmem:[#allocation9 + $0x288] ss:$12 sps:$4 sm:$0xff]  }
 0x45f   :  { %5393 = vmatpush1.bf16.msra.mxu0 %v9115_v13  ;;  %v9207_v13 = vld [vmem:[#allocation9 + $0xf4] ss:$12 sps:$4 sm:$0xff]  }
 0x460   :  { %5434 = vmatpush1.bf16.msra.mxu1 %v9118_v14  ;;  %5394 = vmatprep.subr.bf16.mxu0 %v9123_v15  ;;  %v9210_v14 = vld [vmem:[#allocation9 + $0x274] ss:$12 sps:$4 sm:$0xff]   ;;  %v9205_v15 = vld [vmem:[#allocation9 + $0xf0] ss:$12 sps:$4 sm:$0xff]  }
 0x461   :  { %5435 = vmatprep.subr.bf16.mxu1 %v9126_v16  ;;  %v9208_v16 = vld [vmem:[#allocation9 + $0x270] ss:$12 sps:$4 sm:$0xff]  }
 0x463   :  { %5395 = vmatpush1.bf16.msra.mxu0 %v9121_v17  ;;  %v9213_v17 = vld [vmem:[#allocation9 + $0xdc] ss:$12 sps:$4 sm:$0xff]  }
 0x464   :  { %5436 = vmatpush1.bf16.msra.mxu1 %v9124_v22  ;;  %6238 = vmatprep.subr.bf16.mxu0 %v9129_v23  ;;  %v9216_v22 = vld [vmem:[#allocation9 + $0x25c] ss:$12 sps:$4 sm:$0xff]   ;;  %v9211_v23 = vld [vmem:[#allocation9 + $0xd8] ss:$12 sps:$4 sm:$0xff]  }
 0x465   :  { %6279 = vmatprep.subr.bf16.mxu1 %v9132_v26  ;;  %v9214_v26 = vld [vmem:[#allocation9 + $0x258] ss:$12 sps:$4 sm:$0xff]  }
 0x466   :  { %5413 = vmatmul.mubr.bf16.vlgmr.msra.gmra.mxu0 %v5165_v28 }
 0x467   :  { %5454 = vmatmul.mubr.bf16.vlgmr.msra.gmra.mxu1 %v5165_v28  ;;  %6239 = vmatpush1.bf16.msra.mxu0 %v9127_v31  ;;  %v9219_v28 = vld [vmem:[#allocation9 + $0xc4] ss:$12 sps:$4 sm:$0xff]  }
 0x468   :  { %6280 = vmatpush1.bf16.msra.mxu1 %v9130_v56  ;;  %6240 = vmatprep.subr.bf16.mxu0 %v9135_v1  ;;  %v9222_v31 = vld [vmem:[#allocation9 + $0x244] ss:$12 sps:$4 sm:$0xff]   ;;  %v9217_v56 = vld [vmem:[#allocation9 + $0xc0] ss:$12 sps:$4 sm:$0xff]  }
 0x469   :  { %6281 = vmatprep.subr.bf16.mxu1 %v9138_v37  ;;  %v9220_v1 = vld [vmem:[#allocation9 + $0x240] ss:$12 sps:$4 sm:$0xff]   ;;  %v9223_v37 = vld [vmem:[#allocation9 + $0x170] ss:$12 sps:$4 sm:$0xff]  }
 0x46b   :  { %6241 = vmatpush1.bf16.msra.mxu0 %v9133_v38  ;;  %v9224_v38 = vld [vmem:[#allocation9 + $0x2f0] ss:$12 sps:$4 sm:$0xff]  }
 0x46c   :  { %6282 = vmatpush1.bf16.msra.mxu1 %v9136_v39  ;;  %6242 = vmatprep.subr.bf16.mxu0 %v9141_v27  ;;  %v4335_v39 = vld [vmem:[#allocation7] sm:$0xf] }
 0x46d   :  { %6283 = vmatprep.subr.bf16.mxu1 %v9144_v20  ;;  %v4340_v27 = vrot.slane %v4335_v39, %v10424_v18  ;;  %v4344_v20 = vrot.slane %v4335_v39, %v10427_v19 }
 0x46f   :  { %6243 = vmatpush1.bf16.msra.mxu0 %v9139_v41 }
 0x470   :  { %6284 = vmatpush1.bf16.msra.mxu1 %v9142_v42  ;;  %6244 = vmatprep.subr.bf16.mxu0 %v9147_v21 }
 0x471   :  { %6285 = vmatprep.subr.bf16.mxu1 %v9150_v43 }
 0x473   :  { %6245 = vmatpush1.bf16.msra.mxu0 %v9145_v30 }
 0x474   :  { %6286 = vmatpush1.bf16.msra.mxu1 %v9148_v44  ;;  %6246 = vmatprep.subr.bf16.mxu0 %v9153_v45 }
 0x475   :  { %6287 = vmatprep.subr.bf16.mxu1 %v9156_v46 }
 0x477   :  { %6247 = vmatpush1.bf16.msra.mxu0 %v9151_v47 }
 0x478   :  { %6288 = vmatpush1.bf16.msra.mxu1 %v9154_v0  ;;  %6248 = vmatprep.subr.bf16.mxu0 %v9159_v48 }
 0x479   :  { %6289 = vmatprep.subr.bf16.mxu1 %v9162_v35 }
 0x47b   :  { %6249 = vmatpush1.bf16.msra.mxu0 %v9157_v49  ;;  %v4348_v49 = vrot.slane %v4335_v39, %v11453_v32 }
 0x47c   :  { %6290 = vmatpush1.bf16.msra.mxu1 %v9160_v51  ;;  %6250 = vmatprep.subr.bf16.mxu0 %v9165_v4  ;;  %v4352_v51 = vrot.slane %v4335_v39, %v11456_v34  ;;  %v9235_v39 = vld [vmem:[#allocation9 + $0x128] ss:$12 sps:$4 sm:$0xff]  }
 0x47d   :  { %6291 = vmatprep.subr.bf16.mxu1 %v9168_v52 }
 0x47f   :  { %6251 = vmatpush1.bf16.msra.mxu0 %v9163_v53 }
 0x480   :  { %6292 = vmatpush1.bf16.msra.mxu1 %v9166_v54  ;;  %6252 = vmatprep.subr.bf16.mxu0 %v9171_v55 }
 0x481   :  { %6293 = vmatprep.subr.bf16.mxu1 %v9174_v36 }
 0x483   :  { %6253 = vmatpush1.bf16.msra.mxu0 %v9169_v29 }
 0x484   :  { %6294 = vmatpush1.bf16.msra.mxu1 %v9172_v57  ;;  %6254 = vmatprep.subr.bf16.mxu0 %v9177_v40 }
 0x485   :  { %6295 = vmatprep.subr.bf16.mxu1 %v9180_v58 }
 0x487   :  { %6255 = vmatpush2.bf16.msra.mxu0 %v9175_v59 }
 0x488   :  { %6296 = vmatpush2.bf16.msra.mxu1 %v9178_v60  ;;  %6256 = vmatprep.subr.bf16.mxu0 %v9183_v61  ;;  %v5198_v61 = vld [vmem:[#allocation6] sm:$0xf] }
 0x489   :  { %6297 = vmatprep.subr.bf16.mxu1 %v9186_v24  ;;  %v5207_v24 = vrot.slane %v5198_v61, %v10427_v19 }
 0x48b   :  { %6257 = vmatpush2.bf16.msra.mxu0 %v9181_v62  ;;  %v5203_v62 = vrot.slane %v5198_v61, %v10424_v18 }
 0x48c   :  { %6298 = vmatpush2.bf16.msra.mxu1 %v9184_v63  ;;  %6258 = vmatprep.subr.bf16.mxu0 %v9189_v33  ;;  %v5211_v63 = vrot.slane %v5198_v61, %v11453_v32 }
 0x48d   :  { %6299 = vmatprep.subr.bf16.mxu1 %v9192_v2  ;;  %v5215_v2 = vrot.slane %v5198_v61, %v11456_v34  ;;  %v9227_v34 = vld [vmem:[#allocation9 + $0x158] ss:$12 sps:$4 sm:$0xff]  }
 0x48e   :  { %v9258_v61 = vld [vmem:[%s12035_s10 + $0x228] ss:$12 sps:$4 sm:$0xff]  }
 0x48f   :  { %6259 = vmatpush2.bf16.msra.mxu0 %v9187_v3 }
 0x490   :  { %6300 = vmatpush2.bf16.msra.mxu1 %v9190_v5  ;;  %6260 = vmatprep.subr.bf16.mxu0 %v9195_v6 }
 0x491   :  { %6301 = vmatprep.subr.bf16.mxu1 %v9198_v7 }
 0x493   :  { %6261 = vmatpush2.bf16.msra.mxu0 %v9193_v50 }
 0x494   :  { %6302 = vmatpush2.bf16.msra.mxu1 %v9196_v8  ;;  %6262 = vmatprep.subr.bf16.mxu0 %v9201_v9 }
 0x495   :  { %6303 = vmatprep.subr.bf16.mxu1 %v9204_v10 }
 0x497   :  { %6263 = vmatpush2.bf16.msra.mxu0 %v9199_v11 }
 0x498   :  { %6304 = vmatpush2.bf16.msra.mxu1 %v9202_v12  ;;  %6264 = vmatprep.subr.bf16.mxu0 %v9207_v13 }
 0x499   :  { %6305 = vmatprep.subr.bf16.mxu1 %v9210_v14  ;;  %v9225_v14 = vld [vmem:[#allocation9 + $0xb0] ss:$12 sps:$4 sm:$0xff]  }
 0x49b   :  { %6265 = vmatpush2.bf16.msra.mxu0 %v9205_v15 }
 0x49c   :  { %6306 = vmatpush2.bf16.msra.mxu1 %v9208_v16  ;;  %6266 = vmatprep.subr.bf16.mxu0 %v9213_v17 }
 0x49d   :  { %6307 = vmatprep.subr.bf16.mxu1 %v9216_v22  ;;  %v9226_v22 = vld [vmem:[#allocation9 + $0x230] ss:$12 sps:$4 sm:$0xff]  }
 0x49f   :  { %6267 = vmatpush2.bf16.msra.mxu0 %v9211_v23 }
 0x4a0   :  { %6308 = vmatpush2.bf16.msra.mxu1 %v9214_v26  ;;  %6268 = vmatprep.subr.bf16.mxu0 %v9219_v28  ;;  %v9228_v26 = vld [vmem:[#allocation9 + $0x2d8] ss:$12 sps:$4 sm:$0xff]  }
 0x4a1   :  { %6309 = vmatprep.subr.bf16.mxu1 %v9222_v31  ;;  %v9229_v28 = vld [vmem:[#allocation9 + $0x98] ss:$12 sps:$4 sm:$0xff]  }
 0x4a2   :  { %v9230_v31 = vld [vmem:[#allocation9 + $0x218] ss:$12 sps:$4 sm:$0xff]  }
 0x4a3   :  { %6269 = vmatpush2.bf16.msra.mxu0 %v9217_v56  ;;  %v9231_v56 = vld [vmem:[#allocation9 + $0x140] ss:$12 sps:$4 sm:$0xff]  }
 0x4a4   :  { %6310 = vmatpush2.bf16.msra.mxu1 %v9220_v1  ;;  %8004 = vmatprep.subr.bf16.mxu0 %v9223_v37  ;;  %v9232_v1 = vld [vmem:[#allocation9 + $0x2c0] ss:$12 sps:$4 sm:$0xff]  }
 0x4a5   :  { %8026 = vmatprep.subr.bf16.mxu1 %v9224_v38  ;;  %v9233_v37 = vld [vmem:[#allocation9 + $0x80] ss:$12 sps:$4 sm:$0xff]  }
 0x4a6   :  { %v9234_v38 = vld [vmem:[#allocation9 + $0x200] ss:$12 sps:$4 sm:$0xff]  }
 0x4c6   :  { %v5031_v41 = vpop.f32.mrf.mxu0 }
 0x4c7   :  { %v5032_v42 = vadd.f32 %v5031_v41, %v4340_v27  ;;  %v5072_v21 = vpop.f32.mrf.mxu1  ;;  %v9236_v27 = vld [vmem:[#allocation9 + $0x2a8] ss:$12 sps:$4 sm:$0xff]  }
 0x4c8   :  { %v5033_v43 = vpop.f32.mrf.mxu0  ;;  %v9238_v41 = vld [vmem:[#allocation9 + $0x1e8] ss:$12 sps:$4 sm:$0xff]  }
 0x4c9   :  { %v11685_v30 = vadd.f32 %v5072_v21, %v5032_v42  ;;  %v5034_v44 = vadd.f32 %v5033_v43, %v4344_v20  ;;  %v5074_v45 = vpop.f32.mrf.mxu1  ;;  %v9237_v20 = vld [vmem:[#allocation9 + $0x68] ss:$12 sps:$4 sm:$0xff]   ;;  %v9239_v42 = vld [vmem:[#allocation9 + $0x110] ss:$12 sps:$4 sm:$0xff]  }
 0x4ca   :  { %v5035_v46 = vpop.f32.mrf.mxu0  ;;  %v9240_v21 = vld [vmem:[#allocation9 + $0x290] ss:$12 sps:$4 sm:$0xff]  }
 0x4cb   :  { %v11687_v47 = vadd.f32 %v5074_v45, %v5034_v44  ;;  %v5076_v0 = vpop.f32.mrf.mxu1  ;;  %v9241_v43 = vld [vmem:[#allocation9 + $0x50] ss:$12 sps:$4 sm:$0xff]   ;;  %v9243_v45 = vld [vmem:[#allocation9 + $0xf8] ss:$12 sps:$4 sm:$0xff]  }
 0x4cc   :  { %v5036_v48 = vpop.f32.mrf.mxu0  ;;  %v9242_v44 = vld [vmem:[#allocation9 + $0x1d0] ss:$12 sps:$4 sm:$0xff]   ;;  %v9244_v46 = vld [vmem:[#allocation9 + $0x278] ss:$12 sps:$4 sm:$0xff]  }
 0x4cd   :  { %v5077_v35 = vpop.f32.mrf.mxu1  ;;  %v9245_v0 = vld [vmem:[#allocation9 + $0x38] ss:$12 sps:$4 sm:$0xff]  }
 0x4ce   :  { %v9246_v48 = vld [vmem:[#allocation9 + $0x1b8] ss:$12 sps:$4 sm:$0xff]   ;;  %v9247_v35 = vld [vmem:[#allocation9 + $0xe0] ss:$12 sps:$4 sm:$0xff]  }
 0x506   :  { %v5113_v4 = vpop.f32.mrf.mxu0 }
 0x507   :  { %v5114_v52 = vadd.f32 %v5113_v4, %v4348_v49  ;;  %v5154_v53 = vpop.f32.mrf.mxu1  ;;  %v9248_v49 = vld [vmem:[#allocation9 + $0x260] ss:$12 sps:$4 sm:$0xff]  }
 0x508   :  { %v5115_v54 = vpop.f32.mrf.mxu0  ;;  %v9250_v4 = vld [vmem:[#allocation9 + $0x1a0] ss:$12 sps:$4 sm:$0xff]  }
 0x509   :  { %v11691_v55 = vadd.f32 %v5154_v53, %v5114_v52  ;;  %v5116_v36 = vadd.f32 %v5115_v54, %v4352_v51  ;;  %v5156_v29 = vpop.f32.mrf.mxu1  ;;  %v9249_v51 = vld [vmem:[#allocation9 + $0x20] ss:$12 sps:$4 sm:$0xff]   ;;  %v9251_v52 = vld [vmem:[#allocation9 + $0xc8] ss:$12 sps:$4 sm:$0xff]  }
 0x50a   :  { %v5117_v57 = vpop.f32.mrf.mxu0  ;;  %v9252_v53 = vld [vmem:[#allocation9 + $0x248] ss:$12 sps:$4 sm:$0xff]  }
 0x50b   :  { %v11693_v40 = vadd.f32 %v5156_v29, %v5116_v36  ;;  %v5158_v58 = vpop.f32.mrf.mxu1  ;;  %v9253_v54 = vld [vmem:[#allocation9 + $0x8] ss:$12 sps:$4 sm:$0xff]  }
 0x50c   :  { %v5118_v59 = vpop.f32.mrf.mxu0  ;;  %v9254_v36 = vld [vmem:[#allocation9 + $0x188] ss:$12 sps:$4 sm:$0xff]   ;;  %v5162_v58 = vmax.f32 %v11687_v47, 0.0  ;;  %v9266_v47 = vld [vmem:[%s12035_s10 + $0x214] ss:$12 sps:$4 sm:$0xff]  }
 0x50d   :  { %v5159_v60 = vpop.f32.mrf.mxu1  ;;  %v9257_v29 = vld [vmem:[%s12035_s10 + $0xac] ss:$12 sps:$4 sm:$0xff]   ;;  %v5164_v59 = vmax.f32 %v11693_v40, 0.0 }
 0x50e   :  { %v9260_v57 = vld [vmem:[%s12035_s10 + $0x22c] ss:$12 sps:$4 sm:$0xff]   ;;  %v9255_v60 = vld [vmem:[%s12035_s10 + $0xa8] ss:$12 sps:$4 sm:$0xff]  }
 0x50f   :  { %v11728_v40 = vpack.c.bf16 %v5164_v59, %v5164_v59  ;;  %v9344_v59 = vld [vmem:[%s12035_s10 + $0x25c] ss:$12 sps:$4 sm:$0xff]  }
 0x526   :  { %v5414_v33 = vpop.f32.mrf.mxu0 }
 0x527   :  { %v5455_v3 = vpop.f32.mrf.mxu1  ;;  %v5415_v5 = vadd.f32 %v5414_v33, %v5203_v62  ;;  %v9263_v62 = vld [vmem:[%s12035_s10 + $0x94] ss:$12 sps:$4 sm:$0xff]   ;;  %v9264_v33 = vld [vmem:[%s12035_s10 + $0x210] ss:$12 sps:$4 sm:$0xff]  }
 0x528   :  { %v5456_v6 = vadd.f32 %v5455_v3, %v5211_v63  ;;  %v5416_v7 = vpop.f32.mrf.mxu0  ;;  %v11722_v63 = vpack.c.bf16 %v5162_v58, %v5162_v58  ;;  %v9272_v3 = vld [vmem:[%s12035_s10 + $0x1fc] ss:$12 sps:$4 sm:$0xff]  }
 0x529   :  { %v5417_v50 = vadd.f32 %v5416_v7, %v5207_v24  ;;  %v5457_v8 = vpop.f32.mrf.mxu1  ;;  %v11701_v15 = vpack.c.bf16 %v5415_v5, %v5415_v5  ;;  %v9261_v24 = vld [vmem:[%s12035_s10 + $0x90] ss:$12 sps:$4 sm:$0xff]   ;;  %v9267_v5 = vld [vmem:[%s12035_s10 + $0x78] ss:$12 sps:$4 sm:$0xff]  }
 0x52a   :  { %v5458_v9 = vadd.f32 %v5457_v8, %v5215_v2  ;;  %v5418_v10 = vpop.f32.mrf.mxu0  ;;  %v11699_v11 = vpack.c.bf16 %v5456_v6, %v5456_v6  ;;  %v9269_v2 = vld [vmem:[%s12035_s10 + $0x7c] ss:$12 sps:$4 sm:$0xff]   ;;  %v9270_v6 = vld [vmem:[%s12035_s10 + $0x1f8] ss:$12 sps:$4 sm:$0xff]   ;;  %v9273_v8 = vld [vmem:[%s12035_s10 + $0x60] ss:$12 sps:$4 sm:$0xff]  }
 0x52b   :  { %v5595_v12 = vpack.c.bf16 %v5417_v50, %v5417_v50  ;;  %v5459_v13 = vpop.f32.mrf.mxu1  ;;  %v9275_v7 = vld [vmem:[%s12035_s10 + $0x64] ss:$12 sps:$4 sm:$0xff]   ;;  %v9281_v10 = vld [vmem:[%s12035_s10 + $0x4c] ss:$12 sps:$4 sm:$0xff]   ;;  %v9341_v58 = vld [vmem:[%s12035_s10 + $0xdc] ss:$12 sps:$4 sm:$0xff]  }
 0x52c   :  { %v5597_v16 = vpack.c.bf16 %v5458_v9, %v5458_v9  ;;  %v5419_v17 = vpop.f32.mrf.mxu0  ;;  %v9278_v50 = vld [vmem:[%s12035_s10 + $0x1e4] ss:$12 sps:$4 sm:$0xff]   ;;  %v9276_v9 = vld [vmem:[%s12035_s10 + $0x1e0] ss:$12 sps:$4 sm:$0xff]   ;;  %v9282_v13 = vld [vmem:[%s12035_s10 + $0x1c8] ss:$12 sps:$4 sm:$0xff]  }
 0x52d   :  { %v5460_v23 = vpop.f32.mrf.mxu1  ;;  %6270 = vmatprep.mubr.bf16.mxu0 %v5595_v12  ;;  %v9288_v17 = vld [vmem:[%s12035_s10 + $0x1b0] ss:$12 sps:$4 sm:$0xff]  }
 0x52e   :  { %6311 = vmatprep.mubr.bf16.mxu1 %v5597_v16  ;;  %6271 = vmatmul.mubr.bf16.vlgmr.msra.gmra.mxu0 %v11701_v15  ;;  %v9296_v23 = vld [vmem:[%s12035_s10 + $0x19c] ss:$12 sps:$4 sm:$0xff]  }
 0x52f   :  { %6312 = vmatmul.mubr.bf16.vlgmr.msra.gmra.mxu1 %v11699_v11  ;;  %8005 = vmatpush3.bf16.msra.mxu0 %v9225_v14  ;;  %v9287_v14 = vld [vmem:[%s12035_s10 + $0x34] ss:$12 sps:$4 sm:$0xff]  }
 0x530   :  { %8027 = vmatpush3.bf16.msra.mxu1 %v9226_v22  ;;  %6352 = vmatprep.mubr.bf16.mxu0 %v5595_v12  ;;  %v9279_v12 = vld [vmem:[%s12035_s10 + $0x48] ss:$12 sps:$4 sm:$0xff]  }
 0x531   :  { %6392 = vmatprep.mubr.bf16.mxu1 %v5597_v16  ;;  %8006 = vmatprep.subr.bf16.mxu0 %v9227_v34  ;;  %v9285_v16 = vld [vmem:[%s12035_s10 + $0x30] ss:$12 sps:$4 sm:$0xff]   ;;  %v9291_v34 = vld [vmem:[%s12035_s10 + $0x18] ss:$12 sps:$4 sm:$0xff]  }
 0x532   :  { %8028 = vmatprep.subr.bf16.mxu1 %v9228_v26  ;;  %v9293_v22 = vld [vmem:[%s12035_s10 + $0x1c] ss:$12 sps:$4 sm:$0xff]   ;;  %v9294_v26 = vld [vmem:[%s12035_s10 + $0x198] ss:$12 sps:$4 sm:$0xff]  }
 0x533   :  { %8007 = vmatpush3.bf16.msra.mxu0 %v9229_v28  ;;  %v9299_v28 = vld [vmem:[%s12035_s10 + $0x4] ss:$12 sps:$4 sm:$0xff]  }
 0x534   :  { %8029 = vmatpush3.bf16.msra.mxu1 %v9230_v31  ;;  %8008 = vmatprep.subr.bf16.mxu0 %v9231_v56  ;;  %v9302_v31 = vld [vmem:[%s12035_s10 + $0x184] ss:$12 sps:$4 sm:$0xff]   ;;  %v9297_v56 = vld [vmem:[%s12035_s10] ss:$12 sps:$4 sm:$0xff]  }
 0x535   :  { %8030 = vmatprep.subr.bf16.mxu1 %v9232_v1  ;;  %v9300_v1 = vld [vmem:[%s12035_s10 + $0x180] ss:$12 sps:$4 sm:$0xff]  }
 0x537   :  { %8009 = vmatpush3.bf16.msra.mxu0 %v9233_v37  ;;  %v9305_v37 = vld [vmem:[%s12035_s10 + $0x16c] ss:$12 sps:$4 sm:$0xff]  }
 0x538   :  { %8031 = vmatpush3.bf16.msra.mxu1 %v9234_v38  ;;  %8010 = vmatprep.subr.bf16.mxu0 %v9235_v39  ;;  %v9308_v38 = vld [vmem:[%s12035_s10 + $0x2ec] ss:$12 sps:$4 sm:$0xff]   ;;  %v9303_v39 = vld [vmem:[%s12035_s10 + $0x168] ss:$12 sps:$4 sm:$0xff]  }
 0x539   :  { %8032 = vmatprep.subr.bf16.mxu1 %v9236_v27  ;;  %v9306_v27 = vld [vmem:[%s12035_s10 + $0x2e8] ss:$12 sps:$4 sm:$0xff]  }
 0x53b   :  { %8011 = vmatpush3.bf16.msra.mxu0 %v9237_v20  ;;  %v9311_v20 = vld [vmem:[%s12035_s10 + $0x154] ss:$12 sps:$4 sm:$0xff]  }
 0x53c   :  { %8033 = vmatpush3.bf16.msra.mxu1 %v9238_v41  ;;  %8012 = vmatprep.subr.bf16.mxu0 %v9239_v42  ;;  %v9314_v41 = vld [vmem:[%s12035_s10 + $0x2d4] ss:$12 sps:$4 sm:$0xff]   ;;  %v9309_v42 = vld [vmem:[%s12035_s10 + $0x150] ss:$12 sps:$4 sm:$0xff]  }
 0x53d   :  { %8034 = vmatprep.subr.bf16.mxu1 %v9240_v21  ;;  %v9312_v21 = vld [vmem:[%s12035_s10 + $0x2d0] ss:$12 sps:$4 sm:$0xff]  }
 0x53f   :  { %8013 = vmatpush3.bf16.msra.mxu0 %v9241_v43  ;;  %v9317_v43 = vld [vmem:[%s12035_s10 + $0x13c] ss:$12 sps:$4 sm:$0xff]  }
 0x540   :  { %8035 = vmatpush3.bf16.msra.mxu1 %v9242_v44  ;;  %8014 = vmatprep.subr.bf16.mxu0 %v9243_v45  ;;  %v9320_v44 = vld [vmem:[%s12035_s10 + $0x2bc] ss:$12 sps:$4 sm:$0xff]   ;;  %v9315_v45 = vld [vmem:[%s12035_s10 + $0x138] ss:$12 sps:$4 sm:$0xff]  }
 0x541   :  { %8036 = vmatprep.subr.bf16.mxu1 %v9244_v46  ;;  %v9318_v46 = vld [vmem:[%s12035_s10 + $0x2b8] ss:$12 sps:$4 sm:$0xff]  }
 0x543   :  { %8015 = vmatpush3.bf16.msra.mxu0 %v9245_v0  ;;  %v9323_v0 = vld [vmem:[%s12035_s10 + $0x124] ss:$12 sps:$4 sm:$0xff]  }
 0x544   :  { %8037 = vmatpush3.bf16.msra.mxu1 %v9246_v48  ;;  %8016 = vmatprep.subr.bf16.mxu0 %v9247_v35  ;;  %v9326_v48 = vld [vmem:[%s12035_s10 + $0x2a4] ss:$12 sps:$4 sm:$0xff]   ;;  %v9321_v35 = vld [vmem:[%s12035_s10 + $0x120] ss:$12 sps:$4 sm:$0xff]  }
 0x545   :  { %8038 = vmatprep.subr.bf16.mxu1 %v9248_v49  ;;  %v9324_v49 = vld [vmem:[%s12035_s10 + $0x2a0] ss:$12 sps:$4 sm:$0xff]  }
 0x547   :  { %8017 = vmatpush3.bf16.msra.mxu0 %v9249_v51  ;;  %v9329_v51 = vld [vmem:[%s12035_s10 + $0x10c] ss:$12 sps:$4 sm:$0xff]  }
 0x548   :  { %8039 = vmatpush3.bf16.msra.mxu1 %v9250_v4  ;;  %8018 = vmatprep.subr.bf16.mxu0 %v9251_v52  ;;  %v9332_v4 = vld [vmem:[%s12035_s10 + $0x28c] ss:$12 sps:$4 sm:$0xff]   ;;  %v9327_v52 = vld [vmem:[%s12035_s10 + $0x108] ss:$12 sps:$4 sm:$0xff]  }
 0x549   :  { %8040 = vmatprep.subr.bf16.mxu1 %v9252_v53  ;;  %v9330_v53 = vld [vmem:[%s12035_s10 + $0x288] ss:$12 sps:$4 sm:$0xff]  }
 0x54b   :  { %8019 = vmatpush3.bf16.msra.mxu0 %v9253_v54  ;;  %v9335_v54 = vld [vmem:[%s12035_s10 + $0xf4] ss:$12 sps:$4 sm:$0xff]  }
 0x54c   :  { %8041 = vmatpush3.bf16.msra.mxu1 %v9254_v36  ;;  %6912 = vmatprep.subr.bf16.mxu0 %v9257_v29  ;;  %v9338_v36 = vld [vmem:[%s12035_s10 + $0x274] ss:$12 sps:$4 sm:$0xff]   ;;  %v9333_v29 = vld [vmem:[%s12035_s10 + $0xf0] ss:$12 sps:$4 sm:$0xff]  }
 0x54d   :  { %6953 = vmatprep.subr.bf16.mxu1 %v9260_v57  ;;  %v9336_v57 = vld [vmem:[%s12035_s10 + $0x270] ss:$12 sps:$4 sm:$0xff]  }
 0x54e   :  { %6353 = vmatmul.mubr.bf16.vlgmr.msra.gmra.mxu0 %v11701_v15  ;;  %v9290_v15 = vld [vmem:[%s12035_s10 + $0x1b4] ss:$12 sps:$4 sm:$0xff]  }
 0x54f   :  { %6393 = vmatmul.mubr.bf16.vlgmr.msra.gmra.mxu1 %v11699_v11  ;;  %6913 = vmatpush1.bf16.msra.mxu0 %v9255_v60  ;;  %v9284_v11 = vld [vmem:[%s12035_s10 + $0x1cc] ss:$12 sps:$4 sm:$0xff]  }
 0x550   :  { %6944 = vmatprep.mubr.bf16.mxu0 %v11722_v63  ;;  %6954 = vmatpush1.bf16.msra.mxu1 %v9258_v61  ;;  %v9339_v60 = vld [vmem:[%s12035_s10 + $0xd8] ss:$12 sps:$4 sm:$0xff]  }
 0x551   :  { %6985 = vmatprep.mubr.bf16.mxu1 %v11728_v40  ;;  %6914 = vmatprep.subr.bf16.mxu0 %v9263_v62  ;;  %v9342_v61 = vld [vmem:[%s12035_s10 + $0x258] ss:$12 sps:$4 sm:$0xff]  }
 0x552   :  { %6955 = vmatprep.subr.bf16.mxu1 %v9266_v47  ;;  %v9347_v62 = vld [vmem:[%s12035_s10 + $0xc4] ss:$12 sps:$4 sm:$0xff]  }
 0x553   :  { %6915 = vmatpush1.bf16.msra.mxu0 %v9261_v24  ;;  %v9350_v47 = vld [vmem:[%s12035_s10 + $0x244] ss:$12 sps:$4 sm:$0xff]   ;;  %v9345_v24 = vld [vmem:[%s12035_s10 + $0xc0] ss:$12 sps:$4 sm:$0xff]  }
 0x554   :  { %6956 = vmatpush1.bf16.msra.mxu1 %v9264_v33  ;;  %6916 = vmatprep.subr.bf16.mxu0 %v9269_v2  ;;  %v5161_v33 = vmax.f32 %v11685_v30, 0.0  ;;  %v9348_v2 = vld [vmem:[%s12035_s10 + $0x240] ss:$12 sps:$4 sm:$0xff]   ;;  %v9353_v30 = vld [vmem:[%s12035_s10 + $0xb0] ss:$12 sps:$4 sm:$0xff]  }
 0x555   :  { %6957 = vmatprep.subr.bf16.mxu1 %v9272_v3  ;;  %v9351_v3 = vld [vmem:[%s12035_s10 + $0x170] ss:$12 sps:$4 sm:$0xff]  }
 0x557   :  { %6917 = vmatpush1.bf16.msra.mxu0 %v9267_v5  ;;  %v5163_v5 = vmax.f32 %v11691_v55, 0.0  ;;  %v9355_v55 = vld [vmem:[%s12035_s10 + $0x158] ss:$12 sps:$4 sm:$0xff]  }
 0x558   :  { %6958 = vmatpush1.bf16.msra.mxu1 %v9270_v6  ;;  %6918 = vmatprep.subr.bf16.mxu0 %v9275_v7  ;;  %v9352_v6 = vld [vmem:[%s12035_s10 + $0x2f0] ss:$12 sps:$4 sm:$0xff]   ;;  %v11918_v7 = vpack.c.bf16 %v5161_v33, %v5161_v33 }
 0x559   :  { %6959 = vmatprep.subr.bf16.mxu1 %v9278_v50  ;;  %v9354_v50 = vld [vmem:[%s12035_s10 + $0x230] ss:$12 sps:$4 sm:$0xff]  }
 0x55b   :  { %6919 = vmatpush1.bf16.msra.mxu0 %v9273_v8  ;;  %v11923_v8 = vpack.c.bf16 %v5163_v5, %v5163_v5 }
 0x55c   :  { %6960 = vmatpush1.bf16.msra.mxu1 %v9276_v9  ;;  %6920 = vmatprep.subr.bf16.mxu0 %v9281_v10  ;;  %v9356_v9 = vld [vmem:[%s12035_s10 + $0x2d8] ss:$12 sps:$4 sm:$0xff]  }
 0x55d   :  { %6961 = vmatprep.subr.bf16.mxu1 %v9284_v11  ;;  %v9357_v10 = vld [vmem:[%s12035_s10 + $0x98] ss:$12 sps:$4 sm:$0xff]  }
 0x55e   :  { %v9358_v11 = vld [vmem:[%s12035_s10 + $0x218] ss:$12 sps:$4 sm:$0xff]  }
 0x55f   :  { %6921 = vmatpush1.bf16.msra.mxu0 %v9279_v12  ;;  %v9359_v12 = vld [vmem:[%s12035_s10 + $0x140] ss:$12 sps:$4 sm:$0xff]  }
 0x560   :  { %6962 = vmatpush1.bf16.msra.mxu1 %v9282_v13  ;;  %6922 = vmatprep.subr.bf16.mxu0 %v9287_v14  ;;  %v9360_v13 = vld [vmem:[%s12035_s10 + $0x2c0] ss:$12 sps:$4 sm:$0xff]  }
 0x561   :  { %6963 = vmatprep.subr.bf16.mxu1 %v9290_v15  ;;  %v9362_v14 = vld [vmem:[%s12035_s10 + $0x200] ss:$12 sps:$4 sm:$0xff]   ;;  %v9364_v15 = vld [vmem:[%s12035_s10 + $0x2a8] ss:$12 sps:$4 sm:$0xff]  }
 0x563   :  { %6923 = vmatpush1.bf16.msra.mxu0 %v9285_v16  ;;  %v9365_v16 = vld [vmem:[%s12035_s10 + $0x68] ss:$12 sps:$4 sm:$0xff]  }
 0x564   :  { %6964 = vmatpush1.bf16.msra.mxu1 %v9288_v17  ;;  %6924 = vmatprep.subr.bf16.mxu0 %v9293_v22  ;;  %v9366_v17 = vld [vmem:[%s12035_s10 + $0x1e8] ss:$12 sps:$4 sm:$0xff]   ;;  %v9367_v22 = vld [vmem:[%s12035_s10 + $0x110] ss:$12 sps:$4 sm:$0xff]  }
 0x565   :  { %6965 = vmatprep.subr.bf16.mxu1 %v9296_v23  ;;  %v9368_v23 = vld [vmem:[%s12035_s10 + $0x290] ss:$12 sps:$4 sm:$0xff]  }
 0x567   :  { %6925 = vmatpush1.bf16.msra.mxu0 %v9291_v34  ;;  %v9369_v34 = vld [vmem:[%s12035_s10 + $0x50] ss:$12 sps:$4 sm:$0xff]  }
 0x568   :  { %6966 = vmatpush1.bf16.msra.mxu1 %v9294_v26  ;;  %6926 = vmatprep.subr.bf16.mxu0 %v9299_v28  ;;  %v9370_v26 = vld [vmem:[%s12035_s10 + $0x1d0] ss:$12 sps:$4 sm:$0xff]   ;;  %v9371_v28 = vld [vmem:[%s12035_s10 + $0xf8] ss:$12 sps:$4 sm:$0xff]  }
 0x569   :  { %6967 = vmatprep.subr.bf16.mxu1 %v9302_v31  ;;  %v9372_v31 = vld [vmem:[%s12035_s10 + $0x278] ss:$12 sps:$4 sm:$0xff]  }
 0x56b   :  { %6927 = vmatpush1.bf16.msra.mxu0 %v9297_v56  ;;  %v9373_v56 = vld [vmem:[%s12035_s10 + $0x38] ss:$12 sps:$4 sm:$0xff]  }
 0x56c   :  { %6968 = vmatpush1.bf16.msra.mxu1 %v9300_v1  ;;  %6928 = vmatprep.subr.bf16.mxu0 %v9305_v37  ;;  %v9374_v1 = vld [vmem:[%s12035_s10 + $0x1b8] ss:$12 sps:$4 sm:$0xff]   ;;  %v9375_v37 = vld [vmem:[%s12035_s10 + $0xe0] ss:$12 sps:$4 sm:$0xff]  }
 0x56d   :  { %6969 = vmatprep.subr.bf16.mxu1 %v9308_v38  ;;  %v9376_v38 = vld [vmem:[%s12035_s10 + $0x260] ss:$12 sps:$4 sm:$0xff]  }
 0x56f   :  { %6929 = vmatpush2.bf16.msra.mxu0 %v9303_v39  ;;  %v9377_v39 = vld [vmem:[%s12035_s10 + $0x20] ss:$12 sps:$4 sm:$0xff]  }
 0x570   :  { %6970 = vmatpush2.bf16.msra.mxu1 %v9306_v27  ;;  %6930 = vmatprep.subr.bf16.mxu0 %v9311_v20  ;;  %v9378_v27 = vld [vmem:[%s12035_s10 + $0x1a0] ss:$12 sps:$4 sm:$0xff]   ;;  %v9379_v20 = vld [vmem:[%s12035_s10 + $0xc8] ss:$12 sps:$4 sm:$0xff]  }
 0x571   :  { %6971 = vmatprep.subr.bf16.mxu1 %v9314_v41  ;;  %v9380_v41 = vld [vmem:[%s12035_s10 + $0x248] ss:$12 sps:$4 sm:$0xff]  }
 0x573   :  { %6931 = vmatpush2.bf16.msra.mxu0 %v9309_v42  ;;  %v9381_v42 = vld [vmem:[%s12035_s10 + $0x8] ss:$12 sps:$4 sm:$0xff]  }
 0x574   :  { %6972 = vmatpush2.bf16.msra.mxu1 %v9312_v21  ;;  %6932 = vmatprep.subr.bf16.mxu0 %v9317_v43  ;;  %v9382_v21 = vld [vmem:[%s12035_s10 + $0x188] ss:$12 sps:$4 sm:$0xff]  }
 0x575   :  { %6973 = vmatprep.subr.bf16.mxu1 %v9320_v44 }
 0x577   :  { %6933 = vmatpush2.bf16.msra.mxu0 %v9315_v45 }
 0x578   :  { %6974 = vmatpush2.bf16.msra.mxu1 %v9318_v46  ;;  %6934 = vmatprep.subr.bf16.mxu0 %v9323_v0 }
 0x579   :  { %6975 = vmatprep.subr.bf16.mxu1 %v9326_v48 }
 0x57b   :  { %6935 = vmatpush2.bf16.msra.mxu0 %v9321_v35 }
 0x57c   :  { %6976 = vmatpush2.bf16.msra.mxu1 %v9324_v49  ;;  %6936 = vmatprep.subr.bf16.mxu0 %v9329_v51 }
 0x57d   :  { %6977 = vmatprep.subr.bf16.mxu1 %v9332_v4 }
 0x57f   :  { %6937 = vmatpush2.bf16.msra.mxu0 %v9327_v52 }
 0x580   :  { %6978 = vmatpush2.bf16.msra.mxu1 %v9330_v53  ;;  %6938 = vmatprep.subr.bf16.mxu0 %v9335_v54 }
 0x581   :  { %6979 = vmatprep.subr.bf16.mxu1 %v9338_v36 }
 0x583   :  { %6939 = vmatpush2.bf16.msra.mxu0 %v9333_v29 }
 0x584   :  { %6980 = vmatpush2.bf16.msra.mxu1 %v9336_v57  ;;  %6940 = vmatprep.subr.bf16.mxu0 %v9341_v58 }
 0x585   :  { %6981 = vmatprep.subr.bf16.mxu1 %v9344_v59 }
 0x587   :  { %6941 = vmatpush2.bf16.msra.mxu0 %v9339_v60 }
 0x588   :  { %6982 = vmatpush2.bf16.msra.mxu1 %v9342_v61  ;;  %6942 = vmatprep.subr.bf16.mxu0 %v9347_v62 }
 0x589   :  { %6983 = vmatprep.subr.bf16.mxu1 %v9350_v47 }
 0x58b   :  { %6943 = vmatpush2.bf16.msra.mxu0 %v9345_v24  ;;  %v7074_v24 = vld [vmem:[%s12037_s12] sm:$0x7] }
 0x58c   :  { %6984 = vmatpush2.bf16.msra.mxu1 %v9348_v2  ;;  %8048 = vmatprep.subr.bf16.mxu0 %v9351_v3 }
 0x58d   :  { %8070 = vmatprep.subr.bf16.mxu1 %v9352_v6  ;;  %v7079_v6 = vrot.slane %v7074_v24, %v10424_v18 }
 0x58e   :  { %6945 = vmatmul.mubr.bf16.vlgmr.msra.gmra.mxu0 %v11918_v7 }
 0x58f   :  { %6986 = vmatmul.mubr.bf16.vlgmr.msra.gmra.mxu1 %v11923_v8  ;;  %8049 = vmatpush3.bf16.msra.mxu0 %v9353_v30 }
 0x590   :  { %7026 = vmatprep.mubr.bf16.mxu0 %v11722_v63  ;;  %8071 = vmatpush3.bf16.msra.mxu1 %v9354_v50  ;;  %v9361_v63 = vld [vmem:[%s12035_s10 + $0x80] ss:$12 sps:$4 sm:$0xff]   ;;  %v7083_v50 = vrot.slane %v7074_v24, %v10427_v19  ;;  %v7087_v19 = vrot.slane %v7074_v24, %v11453_v32 }
 0x591   :  { %7066 = vmatprep.mubr.bf16.mxu1 %v11728_v40  ;;  %8050 = vmatprep.subr.bf16.mxu0 %v9355_v55  ;;  %v9363_v40 = vld [vmem:[%s12035_s10 + $0x128] ss:$12 sps:$4 sm:$0xff]  }
 0x592   :  { %8072 = vmatprep.subr.bf16.mxu1 %v9356_v9 }
 0x593   :  { %8051 = vmatpush3.bf16.msra.mxu0 %v9357_v10 }
 0x594   :  { %8073 = vmatpush3.bf16.msra.mxu1 %v9358_v11  ;;  %8052 = vmatprep.subr.bf16.mxu0 %v9359_v12 }
 0x595   :  { %8074 = vmatprep.subr.bf16.mxu1 %v9360_v13 }
 0x597   :  { %8053 = vmatpush3.bf16.msra.mxu0 %v9361_v63 }
 0x598   :  { %8075 = vmatpush3.bf16.msra.mxu1 %v9362_v14  ;;  %8054 = vmatprep.subr.bf16.mxu0 %v9363_v40  ;;  %v9511_v14 = vmov 1983009808  }
 0x599   :  { %8076 = vmatprep.subr.bf16.mxu1 %v9364_v15  ;;  %v7099_v40 = vunpack.c.l.s4 %v9511_v14 }
 0x59b   :  { %8055 = vmatpush3.bf16.msra.mxu0 %v9365_v16 }
 0x59c   :  { %8077 = vmatpush3.bf16.msra.mxu1 %v9366_v17  ;;  %8056 = vmatprep.subr.bf16.mxu0 %v9367_v22  ;;  %v7100_v22 = vunpack.c.0.s8 %v7099_v40 }
 0x59d   :  { %8078 = vmatprep.subr.bf16.mxu1 %v9368_v23 }
 0x59f   :  { %8057 = vmatpush3.bf16.msra.mxu0 %v9369_v34 }
 0x5a0   :  { %8079 = vmatpush3.bf16.msra.mxu1 %v9370_v26  ;;  %8058 = vmatprep.subr.bf16.mxu0 %v9371_v28 }
 0x5a1   :  { %8080 = vmatprep.subr.bf16.mxu1 %v9372_v31 }
 0x5a3   :  { %8059 = vmatpush3.bf16.msra.mxu0 %v9373_v56 }
 0x5a4   :  { %8081 = vmatpush3.bf16.msra.mxu1 %v9374_v1  ;;  %8060 = vmatprep.subr.bf16.mxu0 %v9375_v37  ;;  %v7103_v1 = vsub.s32 %v7100_v22, %v10415_v25 }
 0x5a5   :  { %8082 = vmatprep.subr.bf16.mxu1 %v9376_v38 }
 0x5a7   :  { %8061 = vmatpush3.bf16.msra.mxu0 %v9377_v39 }
 0x5a8   :  { %8083 = vmatpush3.bf16.msra.mxu1 %v9378_v27  ;;  %8062 = vmatprep.subr.bf16.mxu0 %v9379_v20 }
 0x5a9   :  { %8084 = vmatprep.subr.bf16.mxu1 %v9380_v41 }
 0x5ab   :  { %8063 = vmatpush3.bf16.msra.mxu0 %v9381_v42 }
 0x5ac   :  { %8085 = vmatpush3.bf16.msra.mxu1 %v9382_v21 }
 0x5ae   :  { %7027 = vmatmul.mubr.bf16.vlgmr.msra.gmra.mxu0 %v11918_v7 }
 0x5af   :  { %7067 = vmatmul.mubr.bf16.vlgmr.msra.gmra.mxu1 %v11923_v8 }
 0x5ee   :  { %v6272_v43 = vpop.f32.mrf.mxu0 }
 0x5ef   :  { %v6313_v44 = vpop.f32.mrf.mxu1 }
 0x5f0   :  { %v6314_v45 = vadd.f32 %v6313_v44, %v6272_v43  ;;  %v6274_v46 = vpop.f32.mrf.mxu0 }
 0x5f1   :  { %v6315_v0 = vpop.f32.mrf.mxu1 }
 0x5f2   :  { %v6316_v48 = vadd.f32 %v6315_v0, %v6274_v46  ;;  %v6276_v35 = vpop.f32.mrf.mxu0 }
 0x5f3   :  { %v6317_v49 = vpop.f32.mrf.mxu1 }
 0x5f4   :  { %v6277_v51 = vpop.f32.mrf.mxu0 }
 0x5f5   :  { %v6318_v4 = vpop.f32.mrf.mxu1 }
 0x60e   :  { %v8020_v52 = vpop.f32.mrf.mxu0 }
 0x60f   :  { %v8042_v53 = vpop.f32.mrf.mxu1 }
 0x610   :  { %v8021_v54 = vpop.f32.mrf.mxu0 }
 0x611   :  { %v8022_v36 = vadd.f32 %v8021_v54, %v8020_v52  ;;  %v8043_v29 = vpop.f32.mrf.mxu1 }
 0x612   :  { %v8044_v57 = vadd.f32 %v8043_v29, %v8042_v53  ;;  %v8023_v58 = vpop.f32.mrf.mxu0 }
 0x613   :  { %v8045_v59 = vpop.f32.mrf.mxu1 }
 0x614   :  { %v6395_v60 = vadd.f32 %v8044_v57, %v8022_v36  ;;  %v8024_v61 = vpop.f32.mrf.mxu0 }
 0x615   :  { %v8046_v62 = vpop.f32.mrf.mxu1 }
 0x64e   :  { %v6946_v47 = vpop.f32.mrf.mxu0 }
 0x64f   :  { %v6947_v33 = vadd.f32 %v6946_v47, %v6314_v45  ;;  %v6987_v2 = vpop.f32.mrf.mxu1 }
 0x650   :  { %v6948_v3 = vpop.f32.mrf.mxu0 }
 0x651   :  { %v6988_v5 = vadd.f32 %v6987_v2, %v6947_v33  ;;  %v6949_v30 = vadd.f32 %v6948_v3, %v6316_v48  ;;  %v6989_v7 = vpop.f32.mrf.mxu1 }
 0x652   :  { %v6950_v8 = vpop.f32.mrf.mxu0 }
 0x653   :  { %v6990_v55 = vadd.f32 %v6989_v7, %v6949_v30  ;;  %v6991_v9 = vpop.f32.mrf.mxu1  ;;  %v7091_v11 = vadd.f32 %v7079_v6, %v6988_v5 }
 0x654   :  { %v6951_v10 = vpop.f32.mrf.mxu0 }
 0x655   :  { %v7092_v12 = vadd.f32 %v7083_v50, %v6990_v55  ;;  %v6992_v13 = vpop.f32.mrf.mxu1 }
 0x657   :  { %v7097_v63 = vcombine.low %v7091_v11, %v7092_v12 }
 0x659   :  { %v7104_v27 = vrot.slane %v7097_v63, %v7103_v1 }
 0x66e   :  { %v8064_v15 = vpop.f32.mrf.mxu0 }
 0x66f   :  { %v8086_v16 = vpop.f32.mrf.mxu1 }
 0x670   :  { %v8065_v17 = vpop.f32.mrf.mxu0 }
 0x671   :  { %v8066_v23 = vadd.f32 %v8065_v17, %v8064_v15  ;;  %v8087_v18 = vpop.f32.mrf.mxu1 }
 0x672   :  { %v8067_v34 = vpop.f32.mrf.mxu0  ;;  %v8088_v28 = vadd.f32 %v8087_v18, %v8086_v16 }
 0x673   :  { %v7029_v26 = vadd.f32 %v8066_v23, %v6395_v60  ;;  %v8089_v31 = vpop.f32.mrf.mxu1 }
 0x674   :  { %v8068_v56 = vpop.f32.mrf.mxu0 }
 0x675   :  { %v7069_v37 = vadd.f32 %v8088_v28, %v7029_v26  ;;  %v8090_v38 = vpop.f32.mrf.mxu1 }
 0x677   :  { %v7093_v39 = vadd.f32 %v7087_v19, %v7069_v37 }
 0x679   :  { %v7111_v20 = vrot.slane %v7093_v39, %v7103_v1 }
 0x67b   :  { %v7112_v41 = vcombine.low %v7104_v27, %v7111_v20 }
 0x67d   :  { %7114 = vst [vmem:[%s12038_s13] sm:$0x3f] %v7112_v41 }
 0x67e   :  { %7119 = vsyncpa [#allocation3], 1 }
 0x67f   :  { %7120 = vsyncpa [#allocation5], 1 }
 0x680   :  { %7121 = vsyncpa [#allocation8], 1 }

</bundles_post_ra>
